<compile_context>
chip_gen: v6e
topology: v6e:2x2x1
jax: 0.10.0
libtpu: 0.0.40
codegen_flags: <defaults>
</compile_context>

<pallas_src>
import jax
import jax.numpy as jnp
from jax.experimental import pallas as pl
from jax.experimental.pallas import tpu as pltpu


def make_cbam_kernel(C, H, W, BB, PADL):
    HW = H * W
    KS, KH = 7, 3
    TOT = HW + 2 * PADL

    def kernel(x_ref, w1_ref, b1_ref, w2_ref, b2_ref,
               amat_ref, emat_ref, wtap_ref, cb_ref, o_ref):
        x2 = x_ref[...]                                           # (BB*C, HW) f32

        # ---------------- channel attention: shared fc weights, per-batch tiny dots ----------------
        avg_col = jnp.mean(x2, axis=1, keepdims=True)             # (BB*C, 1)
        max_col = jnp.max(x2, axis=1, keepdims=True)              # (BB*C, 1)
        v = jnp.concatenate([avg_col, max_col], axis=1)           # (BB*C, 2): [avg | max]
        w1 = w1_ref[...]
        b1 = b1_ref[...]
        w2 = w2_ref[...]
        b2 = b2_ref[...]
        ch_parts = []
        for b in range(BB):                                       # O(BB) FLOPs, O(1) weights (no kron)
            vb = v[b * C:(b + 1) * C, :]                          # (C, 2)
            hb = jnp.maximum(
                jnp.dot(w1, vb, preferred_element_type=jnp.float32) + b1, 0.0)   # ReLU
            zb = jnp.dot(w2, hb, preferred_element_type=jnp.float32) + b2        # (C, 2)
            zs = zb[:, 0:1] + zb[:, 1:2]                          # fc(avg) + fc(max)
            ch_parts.append(1.0 / (1.0 + jnp.exp(-zs)))           # sigmoid -> (C, 1)
        ch_col = ch_parts[0] if BB == 1 else jnp.concatenate(ch_parts, axis=0)    # (BB*C, 1)

        # ---------------- spatial attention ----------------
        # Channel-average map for every batch in ONE MXU dot; channel-max via reduces.
        avg_map = jnp.dot(amat_ref[...], x2, preferred_element_type=jnp.float32)  # (BB, HW)
        max_rows = [jnp.max(x2[b * C:(b + 1) * C, :], axis=0, keepdims=True)
                    for b in range(BB)]
        max_map = max_rows[0] if BB == 1 else jnp.concatenate(max_rows, axis=0)   # (BB, HW)

        # Merged zero-padded avg/max slab, built once in registers (no scratch round-trip).
        wing = jnp.zeros((2 * BB, PADL), jnp.float32)
        maps = jnp.concatenate([avg_map, max_map], axis=0)                        # (2*BB, HW)
        pad_full = jnp.concatenate([wing, maps, wing], axis=1)                    # (2*BB, TOT)

        # 7x7 conv as 49 taps: one aligned slab, each tap a static lane-shifted window
        # multiplied by a pre-broadcast, row-wrap-masked weight plane.  Two alternating
        # accumulators break the 49-deep add chain; avg/max rows combine once after.
        # TODO(synk): for large feature maps, tile the HW axis inside this loop (and add
        # an HW grid axis) to bound vreg/VMEM pressure; monolithic is fastest at toy sizes.
        acc0 = jnp.zeros((2 * BB, HW), jnp.float32)
        acc1 = jnp.zeros((2 * BB, HW), jnp.float32)
        for tap in range(KS * KS):
            dh = tap // KS - KH
            dw = tap % KS - KH
            lo = PADL + dh * W + dw                               # |dh*W+dw| <= 3*W+3 <= PADL
            window = pad_full[:, lo:lo + HW]                      # (2*BB, HW) shifted view
            contrib = wtap_ref[tap] * window
            if tap % 2 == 0:
                acc0 = acc0 + contrib
            else:
                acc1 = acc1 + contrib
        acc = acc0 + acc1                                         # (2*BB, HW)
        conv = acc[:BB, :] + acc[BB:, :] + cb_ref[...]            # avg part + max part + bias
        sp_att = 1.0 / (1.0 + jnp.exp(-conv))                     # sigmoid, (BB, HW)

        # ---------------- apply both attentions: one fused multiply + one full store ----------------
        if BB == 1:
            sp_full = sp_att                                      # (1, HW) sublane-broadcasts
        else:
            # Expand (BB, HW) -> (BB*C, HW) with a 0/1 matrix on the otherwise-idle MXU.
            sp_full = jnp.dot(emat_ref[...], sp_att, preferred_element_type=jnp.float32)
        o_ref[...] = (x2 * ch_col * sp_full).astype(o_ref.dtype)

    return kernel


def cbam_forward(x, fc1_w, fc1_b, fc2_w, fc2_b, conv_w, conv_b):
    """x: (B, C, H, W) float32, NCHW, matching the PyTorch module."""
    B, C, H, W = x.shape
    HW = H * W
    hidden = fc1_w.shape[0]
    PADL = 128
    assert 3 * W + 3 <= PADL, "lane padding must cover the largest 7x7 tap offset (W <= 41)"
    # TODO(synk): for W > 41 or very large H*W, tile the HW axis with a halo instead of a
    # single flattened padded slab.

    # ---- batch-block selection ----
    BB = max(1, min(B, 8))
    if B >= 2:
        BB = min(BB, max(1, B // 2))       # >=2 'parallel' grid steps (keeps both v7x TCs busy)
    while BB > 1 and 4 * BB * C * HW * 4 > (32 << 20):
        BB -= 1                            # keep double-buffered in+out blocks well under v7x's 64 MiB
    Bp = ((B + BB - 1) // BB) * BB
    G = Bp // BB
    assert (BB * C) % 8 == 0 or G == 1, "BB*C must be a multiple of 8 when the batch grid has >1 step"

    xf = x.astype(jnp.float32).reshape(B, C, HW)
    if Bp != B:
        xf = jnp.concatenate([xf, jnp.zeros((Bp - B, C, HW), jnp.float32)], axis=0)
    x2 = xf.reshape(Bp * C, HW)

    # ---- shared (no-kron) channel-MLP weights ----
    w1 = fc1_w.astype(jnp.float32)                                # (hidden, C)
    b1 = fc1_b.astype(jnp.float32).reshape(hidden, 1)
    w2 = fc2_w.astype(jnp.float32)                                # (C, hidden)
    b2 = fc2_b.astype(jnp.float32).reshape(C, 1)

    # Block-averaging matrix (one MXU dot -> all BB channel-mean maps) and the 0/1
    # expansion matrix broadcasting per-batch spatial attention to all C rows.
    eye = jnp.eye(BB, dtype=jnp.float32)
    amat = jnp.kron(eye, jnp.full((1, C), 1.0 / C, jnp.float32))  # (BB, BB*C)
    emat = jnp.kron(eye, jnp.ones((C, 1), jnp.float32))           # (BB*C, BB)

    # Pre-broadcast, row-wrap-masked per-tap conv weight planes: rows [:BB] carry the
    # avg-channel weight, rows [BB:] the max-channel weight (merged accumulator layout).
    col = jnp.arange(HW, dtype=jnp.int32) % W
    cw = conv_w.astype(jnp.float32)                               # (1, 2, 7, 7): in = [avg, max]
    planes = []
    for dh in range(-3, 4):
        for dw in range(-3, 4):
            m = jnp.logical_and(col + dw >= 0, col + dw < W).astype(jnp.float32)   # (HW,)
            pa = jnp.tile((m * cw[0, 0, dh + 3, dw + 3])[None, :], (BB, 1))
            pm = jnp.tile((m * cw[0, 1, dh + 3, dw + 3])[None, :], (BB, 1))
            planes.append(jnp.concatenate([pa, pm], axis=0))      # (2*BB, HW)
    wtap = jnp.stack(planes)                                      # (49, 2*BB, HW)
    cb = conv_b.astype(jnp.float32).reshape(1, 1)

    # ---- VMEM budget + cost estimate ----
    blk_bytes = BB * C * HW * 4
    const_bytes = 4 * (hidden * C + hidden + C * hidden + C
                       + 2 * BB * BB * C + 49 * 2 * BB * HW + 1)
    need = 4 * blk_bytes + 2 * const_bytes + (4 << 20)
    vmem_limit = int(min(max(need, 32 << 20), 64 << 20))

    flops = G * (2 * BB * BB * C * HW                 # channel-average matmul
                 + 49 * 4 * BB * HW                   # 49 taps x (mul + add) over 2*BB rows
                 + (2 * BB * BB * C * HW if BB > 1 else 0)   # spatial-attention expansion
                 + 2 * BB * C * HW                    # final apply (two multiplies)
                 + 8 * BB * hidden * C)               # per-batch channel MLP
    transcendentals = G * (BB * C + BB * HW)
    bytes_accessed = 2 * Bp * C * HW * 4 + const_bytes

    kernel = make_cbam_kernel(C, H, W, BB, PADL)
    operands = (x2, w1, b1, w2, b2, amat, emat, wtap, cb)

    def build(single_buffer_consts):
        def const_spec(shape):
            ndim = len(shape)
            index_map = lambda g: (0,) * ndim
            if single_buffer_consts:
                # Grid-invariant inputs: single-buffer them (halves their VMEM footprint).
                return pl.BlockSpec(shape, index_map, pipeline_mode=pl.Buffered(1))
            return pl.BlockSpec(shape, index_map)

        in_specs = [
            pl.BlockSpec((BB * C, HW), lambda g: (g, 0)),         # x: streams over the batch grid
            const_spec((hidden, C)), const_spec((hidden, 1)),     # fc1 weight / bias
            const_spec((C, hidden)), const_spec((C, 1)),          # fc2 weight / bias
            const_spec((BB, BB * C)),                             # block channel-averaging matrix
            const_spec((BB * C, BB)),                             # spatial-attention expansion matrix
            const_spec((49, 2 * BB, HW)),                         # masked, pre-broadcast tap weights
            const_spec((1, 1)),                                   # conv bias
        ]
        out_specs = pl.BlockSpec((BB * C, HW), lambda g: (g, 0))
        return pl.pallas_call(
            kernel,
            grid=(G,),
            in_specs=in_specs,
            out_specs=out_specs,
            out_shape=jax.ShapeDtypeStruct((Bp * C, HW), jnp.float32),
            compiler_params=pltpu.CompilerParams(
                dimension_semantics=("parallel",),
                vmem_limit_bytes=vmem_limit),
            cost_estimate=pl.CostEstimate(
                flops=flops, transcendentals=transcendentals, bytes_accessed=bytes_accessed),
        )

    try:
        out2 = build(True)(*operands)
    except Exception:
        # pl.Buffered / pipeline_mode unavailable on this jax: fall back to default buffering.
        out2 = build(False)(*operands)

    return out2.reshape(Bp, C, H, W)[:B]


def cbam_reference(x, fc1_w, fc1_b, fc2_w, fc2_b, conv_w, conv_b):
    """Pure-JAX reference matching the PyTorch forward exactly (full-precision matmuls)."""
    hp = jax.lax.Precision.HIGHEST
    b, c, _, _ = x.shape
    avg = jnp.mean(x, axis=(2, 3))                                # (b, c)
    mx = jnp.max(x, axis=(2, 3))                                  # (b, c)

    def fc(v):
        h = jax.nn.relu(jnp.dot(v, fc1_w.T, precision=hp) + fc1_b)
        return jnp.dot(h, fc2_w.T, precision=hp) + fc2_b

    ch = jax.nn.sigmoid(fc(avg) + fc(mx)).reshape(b, c, 1, 1)
    avg_out = jnp.mean(x, axis=1, keepdims=True)
    max_out = jnp.max(x, axis=1, keepdims=True)
    sp_in = jnp.concatenate([avg_out, max_out], axis=1)           # (b, 2, H, W)
    conv = jax.lax.conv_general_dilated(
        sp_in, conv_w, window_strides=(1, 1), padding=((3, 3), (3, 3)),
        dimension_numbers=("NCHW", "OIHW", "NCHW"), precision=hp,
    ) + conv_b.reshape(1, 1, 1, 1)
    sp = jax.nn.sigmoid(conv)
    return x * ch * sp


if __name__ == "__main__":
    key = jax.random.PRNGKey(0)
    B, C, H, W = 2, 16, 16, 16
    reduction = 8
    hidden = C // reduction

    ks = jax.random.split(key, 7)
    x = jax.random.normal(ks[0], (B, C, H, W), jnp.float32)
    fc1_w = jax.random.normal(ks[1], (hidden, C), jnp.float32) * 0.25
    fc1_b = jax.random.normal(ks[2], (hidden,), jnp.float32) * 0.1
    fc2_w = jax.random.normal(ks[3], (C, hidden), jnp.float32) * 0.25
    fc2_b = jax.random.normal(ks[4], (C,), jnp.float32) * 0.1
    conv_w = jax.random.normal(ks[5], (1, 2, 7, 7), jnp.float32) * 0.1
    conv_b = jax.random.normal(ks[6], (1,), jnp.float32) * 0.1

    out = cbam_forward(x, fc1_w, fc1_b, fc2_w, fc2_b, conv_w, conv_b)
    out = jax.block_until_ready(out)
    assert out.shape == (B, C, H, W)

    ref = cbam_reference(x, fc1_w, fc1_b, fc2_w, fc2_b, conv_w, conv_b)
    max_err = float(jnp.max(jnp.abs(out - ref)))
    assert jnp.allclose(out, ref, atol=1e-4, rtol=1e-4), f"max abs err = {max_err}"
    print("KERNEL_OK")
</pallas_src>

<mosaic_0001>
module attributes {stable_mosaic.version = 11 : i64} {
  func.func @kernel(%arg0: i32, %arg1: memref<16x256xf32, #tpu.memory_space<vmem>>, %arg2: memref<2x16xf32, #tpu.memory_space<vmem>>, %arg3: memref<2x1xf32, #tpu.memory_space<vmem>>, %arg4: memref<16x2xf32, #tpu.memory_space<vmem>>, %arg5: memref<16x1xf32, #tpu.memory_space<vmem>>, %arg6: memref<1x16xf32, #tpu.memory_space<vmem>>, %arg7: memref<16x1xf32, #tpu.memory_space<vmem>>, %arg8: memref<49x2x256xf32, #tpu.memory_space<vmem>>, %arg9: memref<1x1xf32, #tpu.memory_space<vmem>>, %arg10: memref<16x256xf32, #tpu.memory_space<vmem>>) attributes {dimension_semantics = [#tpu.dimension_semantics<parallel>], iteration_bounds = array<i64: 2>, scalar_prefetch = 0 : i64, scratch_operands = 0 : i64, tpu.core_type = #tpu.core_type<tc>, window_params = [{transform_indices = @transform_0, window_bounds = array<i64: 16, 256>}, {pipeline_mode = #tpu.pipeline_mode<synchronous>, transform_indices = @transform_1, window_bounds = array<i64: 2, 16>}, {pipeline_mode = #tpu.pipeline_mode<synchronous>, transform_indices = @transform_2, window_bounds = array<i64: 2, 1>}, {pipeline_mode = #tpu.pipeline_mode<synchronous>, transform_indices = @transform_3, window_bounds = array<i64: 16, 2>}, {pipeline_mode = #tpu.pipeline_mode<synchronous>, transform_indices = @transform_4, window_bounds = array<i64: 16, 1>}, {pipeline_mode = #tpu.pipeline_mode<synchronous>, transform_indices = @transform_5, window_bounds = array<i64: 1, 16>}, {pipeline_mode = #tpu.pipeline_mode<synchronous>, transform_indices = @transform_6, window_bounds = array<i64: 16, 1>}, {pipeline_mode = #tpu.pipeline_mode<synchronous>, transform_indices = @transform_7, window_bounds = array<i64: 49, 2, 256>}, {pipeline_mode = #tpu.pipeline_mode<synchronous>, transform_indices = @transform_8, window_bounds = array<i64: 1, 1>}, {transform_indices = @transform_9, window_bounds = array<i64: 16, 256>}]} {
    %c0 = arith.constant 0 : index
    %c0_0 = arith.constant 0 : index
    %0 = vector.load %arg1[%c0, %c0_0] : memref<16x256xf32, #tpu.memory_space<vmem>>, vector<16x256xf32>
    %cst = arith.constant dense<0.000000e+00> : vector<16xf32>
    %1 = vector.multi_reduction <add>, %0, %cst [1] : vector<16x256xf32> to vector<16xf32>
    %2 = vector.shape_cast %1 : vector<16xf32> to vector<16x1xf32>
    %cst_1 = arith.constant 2.560000e+02 : f32
    %3 = vector.broadcast %cst_1 : f32 to vector<16x1xf32>
    %4 = arith.divf %2, %3 : vector<16x1xf32>
    %cst_2 = arith.constant dense<0xFF800000> : vector<16xf32>
    %5 = vector.multi_reduction <maximumf>, %0, %cst_2 [1] : vector<16x256xf32> to vector<16xf32>
    %6 = vector.shape_cast %5 : vector<16xf32> to vector<16x1xf32>
    %7 = tpu.concatenate %4, %6 in 1 : vector<16x1xf32>, vector<16x1xf32> -> vector<16x2xf32>
    %c0_3 = arith.constant 0 : index
    %c0_4 = arith.constant 0 : index
    %8 = vector.load %arg2[%c0_3, %c0_4] : memref<2x16xf32, #tpu.memory_space<vmem>>, vector<2x16xf32>
    %c0_5 = arith.constant 0 : index
    %c0_6 = arith.constant 0 : index
    %9 = vector.load %arg3[%c0_5, %c0_6] : memref<2x1xf32, #tpu.memory_space<vmem>>, vector<2x1xf32>
    %c0_7 = arith.constant 0 : index
    %c0_8 = arith.constant 0 : index
    %10 = vector.load %arg4[%c0_7, %c0_8] : memref<16x2xf32, #tpu.memory_space<vmem>>, vector<16x2xf32>
    %c0_9 = arith.constant 0 : index
    %c0_10 = arith.constant 0 : index
    %11 = vector.load %arg5[%c0_9, %c0_10] : memref<16x1xf32, #tpu.memory_space<vmem>>, vector<16x1xf32>
    %cst_11 = arith.constant dense<0.000000e+00> : vector<2x2xf32>
    %12 = tpu.matmul %8, %7, %cst_11 {dimension_numbers = #tpu.dot_dimension_numbers<[1], [0], [0], [1], [0, 0, 1, 1], [], []>} : vector<2x16xf32>, vector<16x2xf32>, vector<2x2xf32> -> vector<2x2xf32>
    %13 = vector.broadcast %9 : vector<2x1xf32> to vector<2x2xf32>
    %14 = arith.addf %12, %13 : vector<2x2xf32>
    %cst_12 = arith.constant 0.000000e+00 : f32
    %15 = vector.broadcast %cst_12 : f32 to vector<2x2xf32>
    %16 = arith.maximumf %14, %15 : vector<2x2xf32>
    %cst_13 = arith.constant dense<0.000000e+00> : vector<16x2xf32>
    %17 = tpu.matmul %10, %16, %cst_13 {dimension_numbers = #tpu.dot_dimension_numbers<[1], [0], [0], [1], [0, 0, 1, 1], [], []>} : vector<16x2xf32>, vector<2x2xf32>, vector<16x2xf32> -> vector<16x2xf32>
    %18 = vector.broadcast %11 : vector<16x1xf32> to vector<16x2xf32>
    %19 = arith.addf %17, %18 : vector<16x2xf32>
    %20 = vector.extract_strided_slice %19 {offsets = [0, 0], sizes = [16, 1], strides = [1, 1]} : vector<16x2xf32> to vector<16x1xf32>
    %21 = vector.extract_strided_slice %19 {offsets = [0, 1], sizes = [16, 1], strides = [1, 1]} : vector<16x2xf32> to vector<16x1xf32>
    %22 = arith.addf %20, %21 : vector<16x1xf32>
    %cst_14 = arith.constant 0.000000e+00 : f32
    %23 = vector.broadcast %cst_14 : f32 to vector<16x1xf32>
    %24 = arith.subf %23, %22 : vector<16x1xf32>
    %25 = math.exp %24 : vector<16x1xf32>
    %cst_15 = arith.constant 1.000000e+00 : f32
    %26 = vector.broadcast %cst_15 : f32 to vector<16x1xf32>
    %27 = arith.addf %26, %25 : vector<16x1xf32>
    %cst_16 = arith.constant 1.000000e+00 : f32
    %28 = vector.broadcast %cst_16 : f32 to vector<16x1xf32>
    %29 = arith.divf %28, %27 : vector<16x1xf32>
    %c0_17 = arith.constant 0 : index
    %c0_18 = arith.constant 0 : index
    %30 = vector.load %arg6[%c0_17, %c0_18] : memref<1x16xf32, #tpu.memory_space<vmem>>, vector<1x16xf32>
    %cst_19 = arith.constant dense<0.000000e+00> : vector<1x256xf32>
    %31 = tpu.matmul %30, %0, %cst_19 {dimension_numbers = #tpu.dot_dimension_numbers<[1], [0], [0], [1], [0, 0, 1, 1], [], []>} : vector<1x16xf32>, vector<16x256xf32>, vector<1x256xf32> -> vector<1x256xf32>
    %cst_20 = arith.constant dense<0xFF800000> : vector<256xf32>
    %32 = vector.multi_reduction <maximumf>, %0, %cst_20 [0] : vector<16x256xf32> to vector<256xf32>
    %33 = vector.shape_cast %32 : vector<256xf32> to vector<1x256xf32>
    %cst_21 = arith.constant 0.000000e+00 : f32
    %34 = vector.broadcast %cst_21 : f32 to vector<2x128xf32>
    %35 = tpu.concatenate %31, %33 in 0 : vector<1x256xf32>, vector<1x256xf32> -> vector<2x256xf32>
    %36 = tpu.concatenate %34, %35, %34 in 1 : vector<2x128xf32>, vector<2x256xf32>, vector<2x128xf32> -> vector<2x512xf32>
    %cst_22 = arith.constant 0.000000e+00 : f32
    %37 = vector.broadcast %cst_22 : f32 to vector<2x256xf32>
    %cst_23 = arith.constant 0.000000e+00 : f32
    %38 = vector.broadcast %cst_23 : f32 to vector<2x256xf32>
    %39 = vector.extract_strided_slice %36 {offsets = [0, 77], sizes = [2, 256], strides = [1, 1]} : vector<2x512xf32> to vector<2x256xf32>
    %c0_24 = arith.constant 0 : index
    %c0_25 = arith.constant 0 : index
    %c0_26 = arith.constant 0 : index
    %40 = vector.load %arg8[%c0_24, %c0_25, %c0_26] : memref<49x2x256xf32, #tpu.memory_space<vmem>>, vector<1x2x256xf32>
    %41 = vector.shape_cast %40 : vector<1x2x256xf32> to vector<2x256xf32>
    %42 = arith.mulf %41, %39 : vector<2x256xf32>
    %43 = arith.addf %37, %42 : vector<2x256xf32>
    %44 = vector.extract_strided_slice %36 {offsets = [0, 78], sizes = [2, 256], strides = [1, 1]} : vector<2x512xf32> to vector<2x256xf32>
    %c1 = arith.constant 1 : index
    %c0_27 = arith.constant 0 : index
    %c0_28 = arith.constant 0 : index
    %45 = vector.load %arg8[%c1, %c0_27, %c0_28] : memref<49x2x256xf32, #tpu.memory_space<vmem>>, vector<1x2x256xf32>
    %46 = vector.shape_cast %45 : vector<1x2x256xf32> to vector<2x256xf32>
    %47 = arith.mulf %46, %44 : vector<2x256xf32>
    %48 = arith.addf %38, %47 : vector<2x256xf32>
    %49 = vector.extract_strided_slice %36 {offsets = [0, 79], sizes = [2, 256], strides = [1, 1]} : vector<2x512xf32> to vector<2x256xf32>
    %c2 = arith.constant 2 : index
    %c0_29 = arith.constant 0 : index
    %c0_30 = arith.constant 0 : index
    %50 = vector.load %arg8[%c2, %c0_29, %c0_30] : memref<49x2x256xf32, #tpu.memory_space<vmem>>, vector<1x2x256xf32>
    %51 = vector.shape_cast %50 : vector<1x2x256xf32> to vector<2x256xf32>
    %52 = arith.mulf %51, %49 : vector<2x256xf32>
    %53 = arith.addf %43, %52 : vector<2x256xf32>
    %54 = vector.extract_strided_slice %36 {offsets = [0, 80], sizes = [2, 256], strides = [1, 1]} : vector<2x512xf32> to vector<2x256xf32>
    %c3 = arith.constant 3 : index
    %c0_31 = arith.constant 0 : index
    %c0_32 = arith.constant 0 : index
    %55 = vector.load %arg8[%c3, %c0_31, %c0_32] : memref<49x2x256xf32, #tpu.memory_space<vmem>>, vector<1x2x256xf32>
    %56 = vector.shape_cast %55 : vector<1x2x256xf32> to vector<2x256xf32>
    %57 = arith.mulf %56, %54 : vector<2x256xf32>
    %58 = arith.addf %48, %57 : vector<2x256xf32>
    %59 = vector.extract_strided_slice %36 {offsets = [0, 81], sizes = [2, 256], strides = [1, 1]} : vector<2x512xf32> to vector<2x256xf32>
    %c4 = arith.constant 4 : index
    %c0_33 = arith.constant 0 : index
    %c0_34 = arith.constant 0 : index
    %60 = vector.load %arg8[%c4, %c0_33, %c0_34] : memref<49x2x256xf32, #tpu.memory_space<vmem>>, vector<1x2x256xf32>
    %61 = vector.shape_cast %60 : vector<1x2x256xf32> to vector<2x256xf32>
    %62 = arith.mulf %61, %59 : vector<2x256xf32>
    %63 = arith.addf %53, %62 : vector<2x256xf32>
    %64 = vector.extract_strided_slice %36 {offsets = [0, 82], sizes = [2, 256], strides = [1, 1]} : vector<2x512xf32> to vector<2x256xf32>
    %c5 = arith.constant 5 : index
    %c0_35 = arith.constant 0 : index
    %c0_36 = arith.constant 0 : index
    %65 = vector.load %arg8[%c5, %c0_35, %c0_36] : memref<49x2x256xf32, #tpu.memory_space<vmem>>, vector<1x2x256xf32>
    %66 = vector.shape_cast %65 : vector<1x2x256xf32> to vector<2x256xf32>
    %67 = arith.mulf %66, %64 : vector<2x256xf32>
    %68 = arith.addf %58, %67 : vector<2x256xf32>
    %69 = vector.extract_strided_slice %36 {offsets = [0, 83], sizes = [2, 256], strides = [1, 1]} : vector<2x512xf32> to vector<2x256xf32>
    %c6 = arith.constant 6 : index
    %c0_37 = arith.constant 0 : index
    %c0_38 = arith.constant 0 : index
    %70 = vector.load %arg8[%c6, %c0_37, %c0_38] : memref<49x2x256xf32, #tpu.memory_space<vmem>>, vector<1x2x256xf32>
    %71 = vector.shape_cast %70 : vector<1x2x256xf32> to vector<2x256xf32>
    %72 = arith.mulf %71, %69 : vector<2x256xf32>
    %73 = arith.addf %63, %72 : vector<2x256xf32>
    %74 = vector.extract_strided_slice %36 {offsets = [0, 93], sizes = [2, 256], strides = [1, 1]} : vector<2x512xf32> to vector<2x256xf32>
    %c7 = arith.constant 7 : index
    %c0_39 = arith.constant 0 : index
    %c0_40 = arith.constant 0 : index
    %75 = vector.load %arg8[%c7, %c0_39, %c0_40] : memref<49x2x256xf32, #tpu.memory_space<vmem>>, vector<1x2x256xf32>
    %76 = vector.shape_cast %75 : vector<1x2x256xf32> to vector<2x256xf32>
    %77 = arith.mulf %76, %74 : vector<2x256xf32>
    %78 = arith.addf %68, %77 : vector<2x256xf32>
    %79 = vector.extract_strided_slice %36 {offsets = [0, 94], sizes = [2, 256], strides = [1, 1]} : vector<2x512xf32> to vector<2x256xf32>
    %c8 = arith.constant 8 : index
    %c0_41 = arith.constant 0 : index
    %c0_42 = arith.constant 0 : index
    %80 = vector.load %arg8[%c8, %c0_41, %c0_42] : memref<49x2x256xf32, #tpu.memory_space<vmem>>, vector<1x2x256xf32>
    %81 = vector.shape_cast %80 : vector<1x2x256xf32> to vector<2x256xf32>
    %82 = arith.mulf %81, %79 : vector<2x256xf32>
    %83 = arith.addf %73, %82 : vector<2x256xf32>
    %84 = vector.extract_strided_slice %36 {offsets = [0, 95], sizes = [2, 256], strides = [1, 1]} : vector<2x512xf32> to vector<2x256xf32>
    %c9 = arith.constant 9 : index
    %c0_43 = arith.constant 0 : index
    %c0_44 = arith.constant 0 : index
    %85 = vector.load %arg8[%c9, %c0_43, %c0_44] : memref<49x2x256xf32, #tpu.memory_space<vmem>>, vector<1x2x256xf32>
    %86 = vector.shape_cast %85 : vector<1x2x256xf32> to vector<2x256xf32>
    %87 = arith.mulf %86, %84 : vector<2x256xf32>
    %88 = arith.addf %78, %87 : vector<2x256xf32>
    %89 = vector.extract_strided_slice %36 {offsets = [0, 96], sizes = [2, 256], strides = [1, 1]} : vector<2x512xf32> to vector<2x256xf32>
    %c10 = arith.constant 10 : index
    %c0_45 = arith.constant 0 : index
    %c0_46 = arith.constant 0 : index
    %90 = vector.load %arg8[%c10, %c0_45, %c0_46] : memref<49x2x256xf32, #tpu.memory_space<vmem>>, vector<1x2x256xf32>
    %91 = vector.shape_cast %90 : vector<1x2x256xf32> to vector<2x256xf32>
    %92 = arith.mulf %91, %89 : vector<2x256xf32>
    %93 = arith.addf %83, %92 : vector<2x256xf32>
    %94 = vector.extract_strided_slice %36 {offsets = [0, 97], sizes = [2, 256], strides = [1, 1]} : vector<2x512xf32> to vector<2x256xf32>
    %c11 = arith.constant 11 : index
    %c0_47 = arith.constant 0 : index
    %c0_48 = arith.constant 0 : index
    %95 = vector.load %arg8[%c11, %c0_47, %c0_48] : memref<49x2x256xf32, #tpu.memory_space<vmem>>, vector<1x2x256xf32>
    %96 = vector.shape_cast %95 : vector<1x2x256xf32> to vector<2x256xf32>
    %97 = arith.mulf %96, %94 : vector<2x256xf32>
    %98 = arith.addf %88, %97 : vector<2x256xf32>
    %99 = vector.extract_strided_slice %36 {offsets = [0, 98], sizes = [2, 256], strides = [1, 1]} : vector<2x512xf32> to vector<2x256xf32>
    %c12 = arith.constant 12 : index
    %c0_49 = arith.constant 0 : index
    %c0_50 = arith.constant 0 : index
    %100 = vector.load %arg8[%c12, %c0_49, %c0_50] : memref<49x2x256xf32, #tpu.memory_space<vmem>>, vector<1x2x256xf32>
    %101 = vector.shape_cast %100 : vector<1x2x256xf32> to vector<2x256xf32>
    %102 = arith.mulf %101, %99 : vector<2x256xf32>
    %103 = arith.addf %93, %102 : vector<2x256xf32>
    %104 = vector.extract_strided_slice %36 {offsets = [0, 99], sizes = [2, 256], strides = [1, 1]} : vector<2x512xf32> to vector<2x256xf32>
    %c13 = arith.constant 13 : index
    %c0_51 = arith.constant 0 : index
    %c0_52 = arith.constant 0 : index
    %105 = vector.load %arg8[%c13, %c0_51, %c0_52] : memref<49x2x256xf32, #tpu.memory_space<vmem>>, vector<1x2x256xf32>
    %106 = vector.shape_cast %105 : vector<1x2x256xf32> to vector<2x256xf32>
    %107 = arith.mulf %106, %104 : vector<2x256xf32>
    %108 = arith.addf %98, %107 : vector<2x256xf32>
    %109 = vector.extract_strided_slice %36 {offsets = [0, 109], sizes = [2, 256], strides = [1, 1]} : vector<2x512xf32> to vector<2x256xf32>
    %c14 = arith.constant 14 : index
    %c0_53 = arith.constant 0 : index
    %c0_54 = arith.constant 0 : index
    %110 = vector.load %arg8[%c14, %c0_53, %c0_54] : memref<49x2x256xf32, #tpu.memory_space<vmem>>, vector<1x2x256xf32>
    %111 = vector.shape_cast %110 : vector<1x2x256xf32> to vector<2x256xf32>
    %112 = arith.mulf %111, %109 : vector<2x256xf32>
    %113 = arith.addf %103, %112 : vector<2x256xf32>
    %114 = vector.extract_strided_slice %36 {offsets = [0, 110], sizes = [2, 256], strides = [1, 1]} : vector<2x512xf32> to vector<2x256xf32>
    %c15 = arith.constant 15 : index
    %c0_55 = arith.constant 0 : index
    %c0_56 = arith.constant 0 : index
    %115 = vector.load %arg8[%c15, %c0_55, %c0_56] : memref<49x2x256xf32, #tpu.memory_space<vmem>>, vector<1x2x256xf32>
    %116 = vector.shape_cast %115 : vector<1x2x256xf32> to vector<2x256xf32>
    %117 = arith.mulf %116, %114 : vector<2x256xf32>
    %118 = arith.addf %108, %117 : vector<2x256xf32>
    %119 = vector.extract_strided_slice %36 {offsets = [0, 111], sizes = [2, 256], strides = [1, 1]} : vector<2x512xf32> to vector<2x256xf32>
    %c16 = arith.constant 16 : index
    %c0_57 = arith.constant 0 : index
    %c0_58 = arith.constant 0 : index
    %120 = vector.load %arg8[%c16, %c0_57, %c0_58] : memref<49x2x256xf32, #tpu.memory_space<vmem>>, vector<1x2x256xf32>
    %121 = vector.shape_cast %120 : vector<1x2x256xf32> to vector<2x256xf32>
    %122 = arith.mulf %121, %119 : vector<2x256xf32>
    %123 = arith.addf %113, %122 : vector<2x256xf32>
    %124 = vector.extract_strided_slice %36 {offsets = [0, 112], sizes = [2, 256], strides = [1, 1]} : vector<2x512xf32> to vector<2x256xf32>
    %c17 = arith.constant 17 : index
    %c0_59 = arith.constant 0 : index
    %c0_60 = arith.constant 0 : index
    %125 = vector.load %arg8[%c17, %c0_59, %c0_60] : memref<49x2x256xf32, #tpu.memory_space<vmem>>, vector<1x2x256xf32>
    %126 = vector.shape_cast %125 : vector<1x2x256xf32> to vector<2x256xf32>
    %127 = arith.mulf %126, %124 : vector<2x256xf32>
    %128 = arith.addf %118, %127 : vector<2x256xf32>
    %129 = vector.extract_strided_slice %36 {offsets = [0, 113], sizes = [2, 256], strides = [1, 1]} : vector<2x512xf32> to vector<2x256xf32>
    %c18 = arith.constant 18 : index
    %c0_61 = arith.constant 0 : index
    %c0_62 = arith.constant 0 : index
    %130 = vector.load %arg8[%c18, %c0_61, %c0_62] : memref<49x2x256xf32, #tpu.memory_space<vmem>>, vector<1x2x256xf32>
    %131 = vector.shape_cast %130 : vector<1x2x256xf32> to vector<2x256xf32>
    %132 = arith.mulf %131, %129 : vector<2x256xf32>
    %133 = arith.addf %123, %132 : vector<2x256xf32>
    %134 = vector.extract_strided_slice %36 {offsets = [0, 114], sizes = [2, 256], strides = [1, 1]} : vector<2x512xf32> to vector<2x256xf32>
    %c19 = arith.constant 19 : index
    %c0_63 = arith.constant 0 : index
    %c0_64 = arith.constant 0 : index
    %135 = vector.load %arg8[%c19, %c0_63, %c0_64] : memref<49x2x256xf32, #tpu.memory_space<vmem>>, vector<1x2x256xf32>
    %136 = vector.shape_cast %135 : vector<1x2x256xf32> to vector<2x256xf32>
    %137 = arith.mulf %136, %134 : vector<2x256xf32>
    %138 = arith.addf %128, %137 : vector<2x256xf32>
    %139 = vector.extract_strided_slice %36 {offsets = [0, 115], sizes = [2, 256], strides = [1, 1]} : vector<2x512xf32> to vector<2x256xf32>
    %c20 = arith.constant 20 : index
    %c0_65 = arith.constant 0 : index
    %c0_66 = arith.constant 0 : index
    %140 = vector.load %arg8[%c20, %c0_65, %c0_66] : memref<49x2x256xf32, #tpu.memory_space<vmem>>, vector<1x2x256xf32>
    %141 = vector.shape_cast %140 : vector<1x2x256xf32> to vector<2x256xf32>
    %142 = arith.mulf %141, %139 : vector<2x256xf32>
    %143 = arith.addf %133, %142 : vector<2x256xf32>
    %144 = vector.extract_strided_slice %36 {offsets = [0, 125], sizes = [2, 256], strides = [1, 1]} : vector<2x512xf32> to vector<2x256xf32>
    %c21 = arith.constant 21 : index
    %c0_67 = arith.constant 0 : index
    %c0_68 = arith.constant 0 : index
    %145 = vector.load %arg8[%c21, %c0_67, %c0_68] : memref<49x2x256xf32, #tpu.memory_space<vmem>>, vector<1x2x256xf32>
    %146 = vector.shape_cast %145 : vector<1x2x256xf32> to vector<2x256xf32>
    %147 = arith.mulf %146, %144 : vector<2x256xf32>
    %148 = arith.addf %138, %147 : vector<2x256xf32>
    %149 = vector.extract_strided_slice %36 {offsets = [0, 126], sizes = [2, 256], strides = [1, 1]} : vector<2x512xf32> to vector<2x256xf32>
    %c22 = arith.constant 22 : index
    %c0_69 = arith.constant 0 : index
    %c0_70 = arith.constant 0 : index
    %150 = vector.load %arg8[%c22, %c0_69, %c0_70] : memref<49x2x256xf32, #tpu.memory_space<vmem>>, vector<1x2x256xf32>
    %151 = vector.shape_cast %150 : vector<1x2x256xf32> to vector<2x256xf32>
    %152 = arith.mulf %151, %149 : vector<2x256xf32>
    %153 = arith.addf %143, %152 : vector<2x256xf32>
    %154 = vector.extract_strided_slice %36 {offsets = [0, 127], sizes = [2, 256], strides = [1, 1]} : vector<2x512xf32> to vector<2x256xf32>
    %c23 = arith.constant 23 : index
    %c0_71 = arith.constant 0 : index
    %c0_72 = arith.constant 0 : index
    %155 = vector.load %arg8[%c23, %c0_71, %c0_72] : memref<49x2x256xf32, #tpu.memory_space<vmem>>, vector<1x2x256xf32>
    %156 = vector.shape_cast %155 : vector<1x2x256xf32> to vector<2x256xf32>
    %157 = arith.mulf %156, %154 : vector<2x256xf32>
    %158 = arith.addf %148, %157 : vector<2x256xf32>
    %159 = vector.extract_strided_slice %36 {offsets = [0, 128], sizes = [2, 256], strides = [1, 1]} : vector<2x512xf32> to vector<2x256xf32>
    %c24 = arith.constant 24 : index
    %c0_73 = arith.constant 0 : index
    %c0_74 = arith.constant 0 : index
    %160 = vector.load %arg8[%c24, %c0_73, %c0_74] : memref<49x2x256xf32, #tpu.memory_space<vmem>>, vector<1x2x256xf32>
    %161 = vector.shape_cast %160 : vector<1x2x256xf32> to vector<2x256xf32>
    %162 = arith.mulf %161, %159 : vector<2x256xf32>
    %163 = arith.addf %153, %162 : vector<2x256xf32>
    %164 = vector.extract_strided_slice %36 {offsets = [0, 129], sizes = [2, 256], strides = [1, 1]} : vector<2x512xf32> to vector<2x256xf32>
    %c25 = arith.constant 25 : index
    %c0_75 = arith.constant 0 : index
    %c0_76 = arith.constant 0 : index
    %165 = vector.load %arg8[%c25, %c0_75, %c0_76] : memref<49x2x256xf32, #tpu.memory_space<vmem>>, vector<1x2x256xf32>
    %166 = vector.shape_cast %165 : vector<1x2x256xf32> to vector<2x256xf32>
    %167 = arith.mulf %166, %164 : vector<2x256xf32>
    %168 = arith.addf %158, %167 : vector<2x256xf32>
    %169 = vector.extract_strided_slice %36 {offsets = [0, 130], sizes = [2, 256], strides = [1, 1]} : vector<2x512xf32> to vector<2x256xf32>
    %c26 = arith.constant 26 : index
    %c0_77 = arith.constant 0 : index
    %c0_78 = arith.constant 0 : index
    %170 = vector.load %arg8[%c26, %c0_77, %c0_78] : memref<49x2x256xf32, #tpu.memory_space<vmem>>, vector<1x2x256xf32>
    %171 = vector.shape_cast %170 : vector<1x2x256xf32> to vector<2x256xf32>
    %172 = arith.mulf %171, %169 : vector<2x256xf32>
    %173 = arith.addf %163, %172 : vector<2x256xf32>
    %174 = vector.extract_strided_slice %36 {offsets = [0, 131], sizes = [2, 256], strides = [1, 1]} : vector<2x512xf32> to vector<2x256xf32>
    %c27 = arith.constant 27 : index
    %c0_79 = arith.constant 0 : index
    %c0_80 = arith.constant 0 : index
    %175 = vector.load %arg8[%c27, %c0_79, %c0_80] : memref<49x2x256xf32, #tpu.memory_space<vmem>>, vector<1x2x256xf32>
    %176 = vector.shape_cast %175 : vector<1x2x256xf32> to vector<2x256xf32>
    %177 = arith.mulf %176, %174 : vector<2x256xf32>
    %178 = arith.addf %168, %177 : vector<2x256xf32>
    %179 = vector.extract_strided_slice %36 {offsets = [0, 141], sizes = [2, 256], strides = [1, 1]} : vector<2x512xf32> to vector<2x256xf32>
    %c28 = arith.constant 28 : index
    %c0_81 = arith.constant 0 : index
    %c0_82 = arith.constant 0 : index
    %180 = vector.load %arg8[%c28, %c0_81, %c0_82] : memref<49x2x256xf32, #tpu.memory_space<vmem>>, vector<1x2x256xf32>
    %181 = vector.shape_cast %180 : vector<1x2x256xf32> to vector<2x256xf32>
    %182 = arith.mulf %181, %179 : vector<2x256xf32>
    %183 = arith.addf %173, %182 : vector<2x256xf32>
    %184 = vector.extract_strided_slice %36 {offsets = [0, 142], sizes = [2, 256], strides = [1, 1]} : vector<2x512xf32> to vector<2x256xf32>
    %c29 = arith.constant 29 : index
    %c0_83 = arith.constant 0 : index
    %c0_84 = arith.constant 0 : index
    %185 = vector.load %arg8[%c29, %c0_83, %c0_84] : memref<49x2x256xf32, #tpu.memory_space<vmem>>, vector<1x2x256xf32>
    %186 = vector.shape_cast %185 : vector<1x2x256xf32> to vector<2x256xf32>
    %187 = arith.mulf %186, %184 : vector<2x256xf32>
    %188 = arith.addf %178, %187 : vector<2x256xf32>
    %189 = vector.extract_strided_slice %36 {offsets = [0, 143], sizes = [2, 256], strides = [1, 1]} : vector<2x512xf32> to vector<2x256xf32>
    %c30 = arith.constant 30 : index
    %c0_85 = arith.constant 0 : index
    %c0_86 = arith.constant 0 : index
    %190 = vector.load %arg8[%c30, %c0_85, %c0_86] : memref<49x2x256xf32, #tpu.memory_space<vmem>>, vector<1x2x256xf32>
    %191 = vector.shape_cast %190 : vector<1x2x256xf32> to vector<2x256xf32>
    %192 = arith.mulf %191, %189 : vector<2x256xf32>
    %193 = arith.addf %183, %192 : vector<2x256xf32>
    %194 = vector.extract_strided_slice %36 {offsets = [0, 144], sizes = [2, 256], strides = [1, 1]} : vector<2x512xf32> to vector<2x256xf32>
    %c31 = arith.constant 31 : index
    %c0_87 = arith.constant 0 : index
    %c0_88 = arith.constant 0 : index
    %195 = vector.load %arg8[%c31, %c0_87, %c0_88] : memref<49x2x256xf32, #tpu.memory_space<vmem>>, vector<1x2x256xf32>
    %196 = vector.shape_cast %195 : vector<1x2x256xf32> to vector<2x256xf32>
    %197 = arith.mulf %196, %194 : vector<2x256xf32>
    %198 = arith.addf %188, %197 : vector<2x256xf32>
    %199 = vector.extract_strided_slice %36 {offsets = [0, 145], sizes = [2, 256], strides = [1, 1]} : vector<2x512xf32> to vector<2x256xf32>
    %c32 = arith.constant 32 : index
    %c0_89 = arith.constant 0 : index
    %c0_90 = arith.constant 0 : index
    %200 = vector.load %arg8[%c32, %c0_89, %c0_90] : memref<49x2x256xf32, #tpu.memory_space<vmem>>, vector<1x2x256xf32>
    %201 = vector.shape_cast %200 : vector<1x2x256xf32> to vector<2x256xf32>
    %202 = arith.mulf %201, %199 : vector<2x256xf32>
    %203 = arith.addf %193, %202 : vector<2x256xf32>
    %204 = vector.extract_strided_slice %36 {offsets = [0, 146], sizes = [2, 256], strides = [1, 1]} : vector<2x512xf32> to vector<2x256xf32>
    %c33 = arith.constant 33 : index
    %c0_91 = arith.constant 0 : index
    %c0_92 = arith.constant 0 : index
    %205 = vector.load %arg8[%c33, %c0_91, %c0_92] : memref<49x2x256xf32, #tpu.memory_space<vmem>>, vector<1x2x256xf32>
    %206 = vector.shape_cast %205 : vector<1x2x256xf32> to vector<2x256xf32>
    %207 = arith.mulf %206, %204 : vector<2x256xf32>
    %208 = arith.addf %198, %207 : vector<2x256xf32>
    %209 = vector.extract_strided_slice %36 {offsets = [0, 147], sizes = [2, 256], strides = [1, 1]} : vector<2x512xf32> to vector<2x256xf32>
    %c34 = arith.constant 34 : index
    %c0_93 = arith.constant 0 : index
    %c0_94 = arith.constant 0 : index
    %210 = vector.load %arg8[%c34, %c0_93, %c0_94] : memref<49x2x256xf32, #tpu.memory_space<vmem>>, vector<1x2x256xf32>
    %211 = vector.shape_cast %210 : vector<1x2x256xf32> to vector<2x256xf32>
    %212 = arith.mulf %211, %209 : vector<2x256xf32>
    %213 = arith.addf %203, %212 : vector<2x256xf32>
    %214 = vector.extract_strided_slice %36 {offsets = [0, 157], sizes = [2, 256], strides = [1, 1]} : vector<2x512xf32> to vector<2x256xf32>
    %c35 = arith.constant 35 : index
    %c0_95 = arith.constant 0 : index
    %c0_96 = arith.constant 0 : index
    %215 = vector.load %arg8[%c35, %c0_95, %c0_96] : memref<49x2x256xf32, #tpu.memory_space<vmem>>, vector<1x2x256xf32>
    %216 = vector.shape_cast %215 : vector<1x2x256xf32> to vector<2x256xf32>
    %217 = arith.mulf %216, %214 : vector<2x256xf32>
    %218 = arith.addf %208, %217 : vector<2x256xf32>
    %219 = vector.extract_strided_slice %36 {offsets = [0, 158], sizes = [2, 256], strides = [1, 1]} : vector<2x512xf32> to vector<2x256xf32>
    %c36 = arith.constant 36 : index
    %c0_97 = arith.constant 0 : index
    %c0_98 = arith.constant 0 : index
    %220 = vector.load %arg8[%c36, %c0_97, %c0_98] : memref<49x2x256xf32, #tpu.memory_space<vmem>>, vector<1x2x256xf32>
    %221 = vector.shape_cast %220 : vector<1x2x256xf32> to vector<2x256xf32>
    %222 = arith.mulf %221, %219 : vector<2x256xf32>
    %223 = arith.addf %213, %222 : vector<2x256xf32>
    %224 = vector.extract_strided_slice %36 {offsets = [0, 159], sizes = [2, 256], strides = [1, 1]} : vector<2x512xf32> to vector<2x256xf32>
    %c37 = arith.constant 37 : index
    %c0_99 = arith.constant 0 : index
    %c0_100 = arith.constant 0 : index
    %225 = vector.load %arg8[%c37, %c0_99, %c0_100] : memref<49x2x256xf32, #tpu.memory_space<vmem>>, vector<1x2x256xf32>
    %226 = vector.shape_cast %225 : vector<1x2x256xf32> to vector<2x256xf32>
    %227 = arith.mulf %226, %224 : vector<2x256xf32>
    %228 = arith.addf %218, %227 : vector<2x256xf32>
    %229 = vector.extract_strided_slice %36 {offsets = [0, 160], sizes = [2, 256], strides = [1, 1]} : vector<2x512xf32> to vector<2x256xf32>
    %c38 = arith.constant 38 : index
    %c0_101 = arith.constant 0 : index
    %c0_102 = arith.constant 0 : index
    %230 = vector.load %arg8[%c38, %c0_101, %c0_102] : memref<49x2x256xf32, #tpu.memory_space<vmem>>, vector<1x2x256xf32>
    %231 = vector.shape_cast %230 : vector<1x2x256xf32> to vector<2x256xf32>
    %232 = arith.mulf %231, %229 : vector<2x256xf32>
    %233 = arith.addf %223, %232 : vector<2x256xf32>
    %234 = vector.extract_strided_slice %36 {offsets = [0, 161], sizes = [2, 256], strides = [1, 1]} : vector<2x512xf32> to vector<2x256xf32>
    %c39 = arith.constant 39 : index
    %c0_103 = arith.constant 0 : index
    %c0_104 = arith.constant 0 : index
    %235 = vector.load %arg8[%c39, %c0_103, %c0_104] : memref<49x2x256xf32, #tpu.memory_space<vmem>>, vector<1x2x256xf32>
    %236 = vector.shape_cast %235 : vector<1x2x256xf32> to vector<2x256xf32>
    %237 = arith.mulf %236, %234 : vector<2x256xf32>
    %238 = arith.addf %228, %237 : vector<2x256xf32>
    %239 = vector.extract_strided_slice %36 {offsets = [0, 162], sizes = [2, 256], strides = [1, 1]} : vector<2x512xf32> to vector<2x256xf32>
    %c40 = arith.constant 40 : index
    %c0_105 = arith.constant 0 : index
    %c0_106 = arith.constant 0 : index
    %240 = vector.load %arg8[%c40, %c0_105, %c0_106] : memref<49x2x256xf32, #tpu.memory_space<vmem>>, vector<1x2x256xf32>
    %241 = vector.shape_cast %240 : vector<1x2x256xf32> to vector<2x256xf32>
    %242 = arith.mulf %241, %239 : vector<2x256xf32>
    %243 = arith.addf %233, %242 : vector<2x256xf32>
    %244 = vector.extract_strided_slice %36 {offsets = [0, 163], sizes = [2, 256], strides = [1, 1]} : vector<2x512xf32> to vector<2x256xf32>
    %c41 = arith.constant 41 : index
    %c0_107 = arith.constant 0 : index
    %c0_108 = arith.constant 0 : index
    %245 = vector.load %arg8[%c41, %c0_107, %c0_108] : memref<49x2x256xf32, #tpu.memory_space<vmem>>, vector<1x2x256xf32>
    %246 = vector.shape_cast %245 : vector<1x2x256xf32> to vector<2x256xf32>
    %247 = arith.mulf %246, %244 : vector<2x256xf32>
    %248 = arith.addf %238, %247 : vector<2x256xf32>
    %249 = vector.extract_strided_slice %36 {offsets = [0, 173], sizes = [2, 256], strides = [1, 1]} : vector<2x512xf32> to vector<2x256xf32>
    %c42 = arith.constant 42 : index
    %c0_109 = arith.constant 0 : index
    %c0_110 = arith.constant 0 : index
    %250 = vector.load %arg8[%c42, %c0_109, %c0_110] : memref<49x2x256xf32, #tpu.memory_space<vmem>>, vector<1x2x256xf32>
    %251 = vector.shape_cast %250 : vector<1x2x256xf32> to vector<2x256xf32>
    %252 = arith.mulf %251, %249 : vector<2x256xf32>
    %253 = arith.addf %243, %252 : vector<2x256xf32>
    %254 = vector.extract_strided_slice %36 {offsets = [0, 174], sizes = [2, 256], strides = [1, 1]} : vector<2x512xf32> to vector<2x256xf32>
    %c43 = arith.constant 43 : index
    %c0_111 = arith.constant 0 : index
    %c0_112 = arith.constant 0 : index
    %255 = vector.load %arg8[%c43, %c0_111, %c0_112] : memref<49x2x256xf32, #tpu.memory_space<vmem>>, vector<1x2x256xf32>
    %256 = vector.shape_cast %255 : vector<1x2x256xf32> to vector<2x256xf32>
    %257 = arith.mulf %256, %254 : vector<2x256xf32>
    %258 = arith.addf %248, %257 : vector<2x256xf32>
    %259 = vector.extract_strided_slice %36 {offsets = [0, 175], sizes = [2, 256], strides = [1, 1]} : vector<2x512xf32> to vector<2x256xf32>
    %c44 = arith.constant 44 : index
    %c0_113 = arith.constant 0 : index
    %c0_114 = arith.constant 0 : index
    %260 = vector.load %arg8[%c44, %c0_113, %c0_114] : memref<49x2x256xf32, #tpu.memory_space<vmem>>, vector<1x2x256xf32>
    %261 = vector.shape_cast %260 : vector<1x2x256xf32> to vector<2x256xf32>
    %262 = arith.mulf %261, %259 : vector<2x256xf32>
    %263 = arith.addf %253, %262 : vector<2x256xf32>
    %264 = vector.extract_strided_slice %36 {offsets = [0, 176], sizes = [2, 256], strides = [1, 1]} : vector<2x512xf32> to vector<2x256xf32>
    %c45 = arith.constant 45 : index
    %c0_115 = arith.constant 0 : index
    %c0_116 = arith.constant 0 : index
    %265 = vector.load %arg8[%c45, %c0_115, %c0_116] : memref<49x2x256xf32, #tpu.memory_space<vmem>>, vector<1x2x256xf32>
    %266 = vector.shape_cast %265 : vector<1x2x256xf32> to vector<2x256xf32>
    %267 = arith.mulf %266, %264 : vector<2x256xf32>
    %268 = arith.addf %258, %267 : vector<2x256xf32>
    %269 = vector.extract_strided_slice %36 {offsets = [0, 177], sizes = [2, 256], strides = [1, 1]} : vector<2x512xf32> to vector<2x256xf32>
    %c46 = arith.constant 46 : index
    %c0_117 = arith.constant 0 : index
    %c0_118 = arith.constant 0 : index
    %270 = vector.load %arg8[%c46, %c0_117, %c0_118] : memref<49x2x256xf32, #tpu.memory_space<vmem>>, vector<1x2x256xf32>
    %271 = vector.shape_cast %270 : vector<1x2x256xf32> to vector<2x256xf32>
    %272 = arith.mulf %271, %269 : vector<2x256xf32>
    %273 = arith.addf %263, %272 : vector<2x256xf32>
    %274 = vector.extract_strided_slice %36 {offsets = [0, 178], sizes = [2, 256], strides = [1, 1]} : vector<2x512xf32> to vector<2x256xf32>
    %c47 = arith.constant 47 : index
    %c0_119 = arith.constant 0 : index
    %c0_120 = arith.constant 0 : index
    %275 = vector.load %arg8[%c47, %c0_119, %c0_120] : memref<49x2x256xf32, #tpu.memory_space<vmem>>, vector<1x2x256xf32>
    %276 = vector.shape_cast %275 : vector<1x2x256xf32> to vector<2x256xf32>
    %277 = arith.mulf %276, %274 : vector<2x256xf32>
    %278 = arith.addf %268, %277 : vector<2x256xf32>
    %279 = vector.extract_strided_slice %36 {offsets = [0, 179], sizes = [2, 256], strides = [1, 1]} : vector<2x512xf32> to vector<2x256xf32>
    %c48 = arith.constant 48 : index
    %c0_121 = arith.constant 0 : index
    %c0_122 = arith.constant 0 : index
    %280 = vector.load %arg8[%c48, %c0_121, %c0_122] : memref<49x2x256xf32, #tpu.memory_space<vmem>>, vector<1x2x256xf32>
    %281 = vector.shape_cast %280 : vector<1x2x256xf32> to vector<2x256xf32>
    %282 = arith.mulf %281, %279 : vector<2x256xf32>
    %283 = arith.addf %273, %282 : vector<2x256xf32>
    %284 = arith.addf %283, %278 : vector<2x256xf32>
    %285 = vector.extract_strided_slice %284 {offsets = [0, 0], sizes = [1, 256], strides = [1, 1]} : vector<2x256xf32> to vector<1x256xf32>
    %286 = vector.extract_strided_slice %284 {offsets = [1, 0], sizes = [1, 256], strides = [1, 1]} : vector<2x256xf32> to vector<1x256xf32>
    %287 = arith.addf %285, %286 : vector<1x256xf32>
    %c0_123 = arith.constant 0 : index
    %c0_124 = arith.constant 0 : index
    %288 = vector.load %arg9[%c0_123, %c0_124] : memref<1x1xf32, #tpu.memory_space<vmem>>, vector<1x1xf32>
    %289 = vector.broadcast %288 : vector<1x1xf32> to vector<1x256xf32>
    %290 = arith.addf %287, %289 : vector<1x256xf32>
    %cst_125 = arith.constant 0.000000e+00 : f32
    %291 = vector.broadcast %cst_125 : f32 to vector<1x256xf32>
    %292 = arith.subf %291, %290 : vector<1x256xf32>
    %293 = math.exp %292 : vector<1x256xf32>
    %cst_126 = arith.constant 1.000000e+00 : f32
    %294 = vector.broadcast %cst_126 : f32 to vector<1x256xf32>
    %295 = arith.addf %294, %293 : vector<1x256xf32>
    %cst_127 = arith.constant 1.000000e+00 : f32
    %296 = vector.broadcast %cst_127 : f32 to vector<1x256xf32>
    %297 = arith.divf %296, %295 : vector<1x256xf32>
    %298 = vector.broadcast %29 : vector<16x1xf32> to vector<16x256xf32>
    %299 = arith.mulf %0, %298 : vector<16x256xf32>
    %300 = vector.broadcast %297 : vector<1x256xf32> to vector<16x256xf32>
    %301 = arith.mulf %299, %300 : vector<16x256xf32>
    %c0_128 = arith.constant 0 : index
    %c0_129 = arith.constant 0 : index
    %302 = vector.load %arg10[%c0_128, %c0_129] : memref<16x256xf32, #tpu.memory_space<vmem>>, vector<16x256xf32>
    tpu.vector_store %arg10[%c0_128, %c0_129], %301 {strides = array<i32>} : memref<16x256xf32, #tpu.memory_space<vmem>>, vector<16x256xf32>,
    return
  }
  func.func @transform_0(%arg0: i32) -> (i32, i32) {
    %c0_i32 = arith.constant 0 : i32
    %c0_i32_0 = arith.constant 0 : i32
    return %arg0, %c0_i32 : i32, i32
  }
  func.func @transform_1(%arg0: i32) -> (i32, i32) {
    %c0_i32 = arith.constant 0 : i32
    %c0_i32_0 = arith.constant 0 : i32
    %c0_i32_1 = arith.constant 0 : i32
    return %c0_i32, %c0_i32_0 : i32, i32
  }
  func.func @transform_2(%arg0: i32) -> (i32, i32) {
    %c0_i32 = arith.constant 0 : i32
    %c0_i32_0 = arith.constant 0 : i32
    %c0_i32_1 = arith.constant 0 : i32
    return %c0_i32, %c0_i32_0 : i32, i32
  }
  func.func @transform_3(%arg0: i32) -> (i32, i32) {
    %c0_i32 = arith.constant 0 : i32
    %c0_i32_0 = arith.constant 0 : i32
    %c0_i32_1 = arith.constant 0 : i32
    return %c0_i32, %c0_i32_0 : i32, i32
  }
  func.func @transform_4(%arg0: i32) -> (i32, i32) {
    %c0_i32 = arith.constant 0 : i32
    %c0_i32_0 = arith.constant 0 : i32
    %c0_i32_1 = arith.constant 0 : i32
    return %c0_i32, %c0_i32_0 : i32, i32
  }
  func.func @transform_5(%arg0: i32) -> (i32, i32) {
    %c0_i32 = arith.constant 0 : i32
    %c0_i32_0 = arith.constant 0 : i32
    %c0_i32_1 = arith.constant 0 : i32
    return %c0_i32, %c0_i32_0 : i32, i32
  }
  func.func @transform_6(%arg0: i32) -> (i32, i32) {
    %c0_i32 = arith.constant 0 : i32
    %c0_i32_0 = arith.constant 0 : i32
    %c0_i32_1 = arith.constant 0 : i32
    return %c0_i32, %c0_i32_0 : i32, i32
  }
  func.func @transform_7(%arg0: i32) -> (i32, i32, i32) {
    %c0_i32 = arith.constant 0 : i32
    %c0_i32_0 = arith.constant 0 : i32
    %c0_i32_1 = arith.constant 0 : i32
    %c0_i32_2 = arith.constant 0 : i32
    return %c0_i32, %c0_i32_0, %c0_i32_1 : i32, i32, i32
  }
  func.func @transform_8(%arg0: i32) -> (i32, i32) {
    %c0_i32 = arith.constant 0 : i32
    %c0_i32_0 = arith.constant 0 : i32
    %c0_i32_1 = arith.constant 0 : i32
    return %c0_i32, %c0_i32_0 : i32, i32
  }
  func.func @transform_9(%arg0: i32) -> (i32, i32) {
    %c0_i32 = arith.constant 0 : i32
    %c0_i32_0 = arith.constant 0 : i32
    return %arg0, %c0_i32 : i32, i32
  }
}

module attributes {stable_mosaic.version = 11 : i64} {
  func.func @kernel(%arg0: i32, %arg1: memref<16x256xf32, #tpu.memory_space<vmem>>, %arg2: memref<2x16xf32, #tpu.memory_space<vmem>>, %arg3: memref<2x1xf32, #tpu.memory_space<vmem>>, %arg4: memref<16x2xf32, #tpu.memory_space<vmem>>, %arg5: memref<16x1xf32, #tpu.memory_space<vmem>>, %arg6: memref<1x16xf32, #tpu.memory_space<vmem>>, %arg7: memref<16x1xf32, #tpu.memory_space<vmem>>, %arg8: memref<49x2x256xf32, #tpu.memory_space<vmem>>, %arg9: memref<1x1xf32, #tpu.memory_space<vmem>>, %arg10: memref<16x256xf32, #tpu.memory_space<vmem>>) attributes {dimension_semantics = [#tpu.dimension_semantics<parallel>], iteration_bounds = array<i64: 2>, scalar_prefetch = 0 : i64, scratch_operands = 0 : i64, tpu.core_type = #tpu.core_type<tc>, window_params = [{transform_indices = @transform_0, window_bounds = array<i64: 16, 256>}, {pipeline_mode = #tpu.pipeline_mode<synchronous>, transform_indices = @transform_1, window_bounds = array<i64: 2, 16>}, {pipeline_mode = #tpu.pipeline_mode<synchronous>, transform_indices = @transform_2, window_bounds = array<i64: 2, 1>}, {pipeline_mode = #tpu.pipeline_mode<synchronous>, transform_indices = @transform_3, window_bounds = array<i64: 16, 2>}, {pipeline_mode = #tpu.pipeline_mode<synchronous>, transform_indices = @transform_4, window_bounds = array<i64: 16, 1>}, {pipeline_mode = #tpu.pipeline_mode<synchronous>, transform_indices = @transform_5, window_bounds = array<i64: 1, 16>}, {pipeline_mode = #tpu.pipeline_mode<synchronous>, transform_indices = @transform_6, window_bounds = array<i64: 16, 1>}, {pipeline_mode = #tpu.pipeline_mode<synchronous>, transform_indices = @transform_7, window_bounds = array<i64: 49, 2, 256>}, {pipeline_mode = #tpu.pipeline_mode<synchronous>, transform_indices = @transform_8, window_bounds = array<i64: 1, 1>}, {transform_indices = @transform_9, window_bounds = array<i64: 16, 256>}]} {
    %c0 = arith.constant 0 : index
    %c0_0 = arith.constant 0 : index
    %0 = vector.load %arg1[%c0, %c0_0] : memref<16x256xf32, #tpu.memory_space<vmem>>, vector<16x256xf32>
    %cst = arith.constant dense<0.000000e+00> : vector<16xf32>
    %1 = vector.multi_reduction <add>, %0, %cst [1] : vector<16x256xf32> to vector<16xf32>
    %2 = vector.shape_cast %1 : vector<16xf32> to vector<16x1xf32>
    %cst_1 = arith.constant 2.560000e+02 : f32
    %3 = vector.broadcast %cst_1 : f32 to vector<16x1xf32>
    %4 = arith.divf %2, %3 : vector<16x1xf32>
    %cst_2 = arith.constant dense<0xFF800000> : vector<16xf32>
    %5 = vector.multi_reduction <maximumf>, %0, %cst_2 [1] : vector<16x256xf32> to vector<16xf32>
    %6 = vector.shape_cast %5 : vector<16xf32> to vector<16x1xf32>
    %7 = tpu.concatenate %4, %6 in 1 : vector<16x1xf32>, vector<16x1xf32> -> vector<16x2xf32>
    %c0_3 = arith.constant 0 : index
    %c0_4 = arith.constant 0 : index
    %8 = vector.load %arg2[%c0_3, %c0_4] : memref<2x16xf32, #tpu.memory_space<vmem>>, vector<2x16xf32>
    %c0_5 = arith.constant 0 : index
    %c0_6 = arith.constant 0 : index
    %9 = vector.load %arg3[%c0_5, %c0_6] : memref<2x1xf32, #tpu.memory_space<vmem>>, vector<2x1xf32>
    %c0_7 = arith.constant 0 : index
    %c0_8 = arith.constant 0 : index
    %10 = vector.load %arg4[%c0_7, %c0_8] : memref<16x2xf32, #tpu.memory_space<vmem>>, vector<16x2xf32>
    %c0_9 = arith.constant 0 : index
    %c0_10 = arith.constant 0 : index
    %11 = vector.load %arg5[%c0_9, %c0_10] : memref<16x1xf32, #tpu.memory_space<vmem>>, vector<16x1xf32>
    %cst_11 = arith.constant dense<0.000000e+00> : vector<2x2xf32>
    %12 = tpu.matmul %8, %7, %cst_11 {dimension_numbers = #tpu.dot_dimension_numbers<[1], [0], [0], [1], [0, 0, 1, 1], [], []>} : vector<2x16xf32>, vector<16x2xf32>, vector<2x2xf32> -> vector<2x2xf32>
    %13 = vector.broadcast %9 : vector<2x1xf32> to vector<2x2xf32>
    %14 = arith.addf %12, %13 : vector<2x2xf32>
    %cst_12 = arith.constant 0.000000e+00 : f32
    %15 = vector.broadcast %cst_12 : f32 to vector<2x2xf32>
    %16 = arith.maximumf %14, %15 : vector<2x2xf32>
    %cst_13 = arith.constant dense<0.000000e+00> : vector<16x2xf32>
    %17 = tpu.matmul %10, %16, %cst_13 {dimension_numbers = #tpu.dot_dimension_numbers<[1], [0], [0], [1], [0, 0, 1, 1], [], []>} : vector<16x2xf32>, vector<2x2xf32>, vector<16x2xf32> -> vector<16x2xf32>
    %18 = vector.broadcast %11 : vector<16x1xf32> to vector<16x2xf32>
    %19 = arith.addf %17, %18 : vector<16x2xf32>
    %20 = vector.extract_strided_slice %19 {offsets = [0, 0], sizes = [16, 1], strides = [1, 1]} : vector<16x2xf32> to vector<16x1xf32>
    %21 = vector.extract_strided_slice %19 {offsets = [0, 1], sizes = [16, 1], strides = [1, 1]} : vector<16x2xf32> to vector<16x1xf32>
    %22 = arith.addf %20, %21 : vector<16x1xf32>
    %cst_14 = arith.constant 0.000000e+00 : f32
    %23 = vector.broadcast %cst_14 : f32 to vector<16x1xf32>
    %24 = arith.subf %23, %22 : vector<16x1xf32>
    %25 = math.exp %24 : vector<16x1xf32>
    %cst_15 = arith.constant 1.000000e+00 : f32
    %26 = vector.broadcast %cst_15 : f32 to vector<16x1xf32>
    %27 = arith.addf %26, %25 : vector<16x1xf32>
    %cst_16 = arith.constant 1.000000e+00 : f32
    %28 = vector.broadcast %cst_16 : f32 to vector<16x1xf32>
    %29 = arith.divf %28, %27 : vector<16x1xf32>
    %c0_17 = arith.constant 0 : index
    %c0_18 = arith.constant 0 : index
    %30 = vector.load %arg6[%c0_17, %c0_18] : memref<1x16xf32, #tpu.memory_space<vmem>>, vector<1x16xf32>
    %cst_19 = arith.constant dense<0.000000e+00> : vector<1x256xf32>
    %31 = tpu.matmul %30, %0, %cst_19 {dimension_numbers = #tpu.dot_dimension_numbers<[1], [0], [0], [1], [0, 0, 1, 1], [], []>} : vector<1x16xf32>, vector<16x256xf32>, vector<1x256xf32> -> vector<1x256xf32>
    %cst_20 = arith.constant dense<0xFF800000> : vector<256xf32>
    %32 = vector.multi_reduction <maximumf>, %0, %cst_20 [0] : vector<16x256xf32> to vector<256xf32>
    %33 = vector.shape_cast %32 : vector<256xf32> to vector<1x256xf32>
    %cst_21 = arith.constant 0.000000e+00 : f32
    %34 = vector.broadcast %cst_21 : f32 to vector<2x128xf32>
    %35 = tpu.concatenate %31, %33 in 0 : vector<1x256xf32>, vector<1x256xf32> -> vector<2x256xf32>
    %36 = tpu.concatenate %34, %35, %34 in 1 : vector<2x128xf32>, vector<2x256xf32>, vector<2x128xf32> -> vector<2x512xf32>
    %cst_22 = arith.constant 0.000000e+00 : f32
    %37 = vector.broadcast %cst_22 : f32 to vector<2x256xf32>
    %cst_23 = arith.constant 0.000000e+00 : f32
    %38 = vector.broadcast %cst_23 : f32 to vector<2x256xf32>
    %39 = vector.extract_strided_slice %36 {offsets = [0, 77], sizes = [2, 256], strides = [1, 1]} : vector<2x512xf32> to vector<2x256xf32>
    %c0_24 = arith.constant 0 : index
    %c0_25 = arith.constant 0 : index
    %c0_26 = arith.constant 0 : index
    %40 = vector.load %arg8[%c0_24, %c0_25, %c0_26] : memref<49x2x256xf32, #tpu.memory_space<vmem>>, vector<1x2x256xf32>
    %41 = vector.shape_cast %40 : vector<1x2x256xf32> to vector<2x256xf32>
    %42 = arith.mulf %41, %39 : vector<2x256xf32>
    %43 = arith.addf %37, %42 : vector<2x256xf32>
    %44 = vector.extract_strided_slice %36 {offsets = [0, 78], sizes = [2, 256], strides = [1, 1]} : vector<2x512xf32> to vector<2x256xf32>
    %c1 = arith.constant 1 : index
    %c0_27 = arith.constant 0 : index
    %c0_28 = arith.constant 0 : index
    %45 = vector.load %arg8[%c1, %c0_27, %c0_28] : memref<49x2x256xf32, #tpu.memory_space<vmem>>, vector<1x2x256xf32>
    %46 = vector.shape_cast %45 : vector<1x2x256xf32> to vector<2x256xf32>
    %47 = arith.mulf %46, %44 : vector<2x256xf32>
    %48 = arith.addf %38, %47 : vector<2x256xf32>
    %49 = vector.extract_strided_slice %36 {offsets = [0, 79], sizes = [2, 256], strides = [1, 1]} : vector<2x512xf32> to vector<2x256xf32>
    %c2 = arith.constant 2 : index
    %c0_29 = arith.constant 0 : index
    %c0_30 = arith.constant 0 : index
    %50 = vector.load %arg8[%c2, %c0_29, %c0_30] : memref<49x2x256xf32, #tpu.memory_space<vmem>>, vector<1x2x256xf32>
    %51 = vector.shape_cast %50 : vector<1x2x256xf32> to vector<2x256xf32>
    %52 = arith.mulf %51, %49 : vector<2x256xf32>
    %53 = arith.addf %43, %52 : vector<2x256xf32>
    %54 = vector.extract_strided_slice %36 {offsets = [0, 80], sizes = [2, 256], strides = [1, 1]} : vector<2x512xf32> to vector<2x256xf32>
    %c3 = arith.constant 3 : index
    %c0_31 = arith.constant 0 : index
    %c0_32 = arith.constant 0 : index
    %55 = vector.load %arg8[%c3, %c0_31, %c0_32] : memref<49x2x256xf32, #tpu.memory_space<vmem>>, vector<1x2x256xf32>
    %56 = vector.shape_cast %55 : vector<1x2x256xf32> to vector<2x256xf32>
    %57 = arith.mulf %56, %54 : vector<2x256xf32>
    %58 = arith.addf %48, %57 : vector<2x256xf32>
    %59 = vector.extract_strided_slice %36 {offsets = [0, 81], sizes = [2, 256], strides = [1, 1]} : vector<2x512xf32> to vector<2x256xf32>
    %c4 = arith.constant 4 : index
    %c0_33 = arith.constant 0 : index
    %c0_34 = arith.constant 0 : index
    %60 = vector.load %arg8[%c4, %c0_33, %c0_34] : memref<49x2x256xf32, #tpu.memory_space<vmem>>, vector<1x2x256xf32>
    %61 = vector.shape_cast %60 : vector<1x2x256xf32> to vector<2x256xf32>
    %62 = arith.mulf %61, %59 : vector<2x256xf32>
    %63 = arith.addf %53, %62 : vector<2x256xf32>
    %64 = vector.extract_strided_slice %36 {offsets = [0, 82], sizes = [2, 256], strides = [1, 1]} : vector<2x512xf32> to vector<2x256xf32>
    %c5 = arith.constant 5 : index
    %c0_35 = arith.constant 0 : index
    %c0_36 = arith.constant 0 : index
    %65 = vector.load %arg8[%c5, %c0_35, %c0_36] : memref<49x2x256xf32, #tpu.memory_space<vmem>>, vector<1x2x256xf32>
    %66 = vector.shape_cast %65 : vector<1x2x256xf32> to vector<2x256xf32>
    %67 = arith.mulf %66, %64 : vector<2x256xf32>
    %68 = arith.addf %58, %67 : vector<2x256xf32>
    %69 = vector.extract_strided_slice %36 {offsets = [0, 83], sizes = [2, 256], strides = [1, 1]} : vector<2x512xf32> to vector<2x256xf32>
    %c6 = arith.constant 6 : index
    %c0_37 = arith.constant 0 : index
    %c0_38 = arith.constant 0 : index
    %70 = vector.load %arg8[%c6, %c0_37, %c0_38] : memref<49x2x256xf32, #tpu.memory_space<vmem>>, vector<1x2x256xf32>
    %71 = vector.shape_cast %70 : vector<1x2x256xf32> to vector<2x256xf32>
    %72 = arith.mulf %71, %69 : vector<2x256xf32>
    %73 = arith.addf %63, %72 : vector<2x256xf32>
    %74 = vector.extract_strided_slice %36 {offsets = [0, 93], sizes = [2, 256], strides = [1, 1]} : vector<2x512xf32> to vector<2x256xf32>
    %c7 = arith.constant 7 : index
    %c0_39 = arith.constant 0 : index
    %c0_40 = arith.constant 0 : index
    %75 = vector.load %arg8[%c7, %c0_39, %c0_40] : memref<49x2x256xf32, #tpu.memory_space<vmem>>, vector<1x2x256xf32>
    %76 = vector.shape_cast %75 : vector<1x2x256xf32> to vector<2x256xf32>
    %77 = arith.mulf %76, %74 : vector<2x256xf32>
    %78 = arith.addf %68, %77 : vector<2x256xf32>
    %79 = vector.extract_strided_slice %36 {offsets = [0, 94], sizes = [2, 256], strides = [1, 1]} : vector<2x512xf32> to vector<2x256xf32>
    %c8 = arith.constant 8 : index
    %c0_41 = arith.constant 0 : index
    %c0_42 = arith.constant 0 : index
    %80 = vector.load %arg8[%c8, %c0_41, %c0_42] : memref<49x2x256xf32, #tpu.memory_space<vmem>>, vector<1x2x256xf32>
    %81 = vector.shape_cast %80 : vector<1x2x256xf32> to vector<2x256xf32>
    %82 = arith.mulf %81, %79 : vector<2x256xf32>
    %83 = arith.addf %73, %82 : vector<2x256xf32>
    %84 = vector.extract_strided_slice %36 {offsets = [0, 95], sizes = [2, 256], strides = [1, 1]} : vector<2x512xf32> to vector<2x256xf32>
    %c9 = arith.constant 9 : index
    %c0_43 = arith.constant 0 : index
    %c0_44 = arith.constant 0 : index
    %85 = vector.load %arg8[%c9, %c0_43, %c0_44] : memref<49x2x256xf32, #tpu.memory_space<vmem>>, vector<1x2x256xf32>
    %86 = vector.shape_cast %85 : vector<1x2x256xf32> to vector<2x256xf32>
    %87 = arith.mulf %86, %84 : vector<2x256xf32>
    %88 = arith.addf %78, %87 : vector<2x256xf32>
    %89 = vector.extract_strided_slice %36 {offsets = [0, 96], sizes = [2, 256], strides = [1, 1]} : vector<2x512xf32> to vector<2x256xf32>
    %c10 = arith.constant 10 : index
    %c0_45 = arith.constant 0 : index
    %c0_46 = arith.constant 0 : index
    %90 = vector.load %arg8[%c10, %c0_45, %c0_46] : memref<49x2x256xf32, #tpu.memory_space<vmem>>, vector<1x2x256xf32>
    %91 = vector.shape_cast %90 : vector<1x2x256xf32> to vector<2x256xf32>
    %92 = arith.mulf %91, %89 : vector<2x256xf32>
    %93 = arith.addf %83, %92 : vector<2x256xf32>
    %94 = vector.extract_strided_slice %36 {offsets = [0, 97], sizes = [2, 256], strides = [1, 1]} : vector<2x512xf32> to vector<2x256xf32>
    %c11 = arith.constant 11 : index
    %c0_47 = arith.constant 0 : index
    %c0_48 = arith.constant 0 : index
    %95 = vector.load %arg8[%c11, %c0_47, %c0_48] : memref<49x2x256xf32, #tpu.memory_space<vmem>>, vector<1x2x256xf32>
    %96 = vector.shape_cast %95 : vector<1x2x256xf32> to vector<2x256xf32>
    %97 = arith.mulf %96, %94 : vector<2x256xf32>
    %98 = arith.addf %88, %97 : vector<2x256xf32>
    %99 = vector.extract_strided_slice %36 {offsets = [0, 98], sizes = [2, 256], strides = [1, 1]} : vector<2x512xf32> to vector<2x256xf32>
    %c12 = arith.constant 12 : index
    %c0_49 = arith.constant 0 : index
    %c0_50 = arith.constant 0 : index
    %100 = vector.load %arg8[%c12, %c0_49, %c0_50] : memref<49x2x256xf32, #tpu.memory_space<vmem>>, vector<1x2x256xf32>
    %101 = vector.shape_cast %100 : vector<1x2x256xf32> to vector<2x256xf32>
    %102 = arith.mulf %101, %99 : vector<2x256xf32>
    %103 = arith.addf %93, %102 : vector<2x256xf32>
    %104 = vector.extract_strided_slice %36 {offsets = [0, 99], sizes = [2, 256], strides = [1, 1]} : vector<2x512xf32> to vector<2x256xf32>
    %c13 = arith.constant 13 : index
    %c0_51 = arith.constant 0 : index
    %c0_52 = arith.constant 0 : index
    %105 = vector.load %arg8[%c13, %c0_51, %c0_52] : memref<49x2x256xf32, #tpu.memory_space<vmem>>, vector<1x2x256xf32>
    %106 = vector.shape_cast %105 : vector<1x2x256xf32> to vector<2x256xf32>
    %107 = arith.mulf %106, %104 : vector<2x256xf32>
    %108 = arith.addf %98, %107 : vector<2x256xf32>
    %109 = vector.extract_strided_slice %36 {offsets = [0, 109], sizes = [2, 256], strides = [1, 1]} : vector<2x512xf32> to vector<2x256xf32>
    %c14 = arith.constant 14 : index
    %c0_53 = arith.constant 0 : index
    %c0_54 = arith.constant 0 : index
    %110 = vector.load %arg8[%c14, %c0_53, %c0_54] : memref<49x2x256xf32, #tpu.memory_space<vmem>>, vector<1x2x256xf32>
    %111 = vector.shape_cast %110 : vector<1x2x256xf32> to vector<2x256xf32>
    %112 = arith.mulf %111, %109 : vector<2x256xf32>
    %113 = arith.addf %103, %112 : vector<2x256xf32>
    %114 = vector.extract_strided_slice %36 {offsets = [0, 110], sizes = [2, 256], strides = [1, 1]} : vector<2x512xf32> to vector<2x256xf32>
    %c15 = arith.constant 15 : index
    %c0_55 = arith.constant 0 : index
    %c0_56 = arith.constant 0 : index
    %115 = vector.load %arg8[%c15, %c0_55, %c0_56] : memref<49x2x256xf32, #tpu.memory_space<vmem>>, vector<1x2x256xf32>
    %116 = vector.shape_cast %115 : vector<1x2x256xf32> to vector<2x256xf32>
    %117 = arith.mulf %116, %114 : vector<2x256xf32>
    %118 = arith.addf %108, %117 : vector<2x256xf32>
    %119 = vector.extract_strided_slice %36 {offsets = [0, 111], sizes = [2, 256], strides = [1, 1]} : vector<2x512xf32> to vector<2x256xf32>
    %c16 = arith.constant 16 : index
    %c0_57 = arith.constant 0 : index
    %c0_58 = arith.constant 0 : index
    %120 = vector.load %arg8[%c16, %c0_57, %c0_58] : memref<49x2x256xf32, #tpu.memory_space<vmem>>, vector<1x2x256xf32>
    %121 = vector.shape_cast %120 : vector<1x2x256xf32> to vector<2x256xf32>
    %122 = arith.mulf %121, %119 : vector<2x256xf32>
    %123 = arith.addf %113, %122 : vector<2x256xf32>
    %124 = vector.extract_strided_slice %36 {offsets = [0, 112], sizes = [2, 256], strides = [1, 1]} : vector<2x512xf32> to vector<2x256xf32>
    %c17 = arith.constant 17 : index
    %c0_59 = arith.constant 0 : index
    %c0_60 = arith.constant 0 : index
    %125 = vector.load %arg8[%c17, %c0_59, %c0_60] : memref<49x2x256xf32, #tpu.memory_space<vmem>>, vector<1x2x256xf32>
    %126 = vector.shape_cast %125 : vector<1x2x256xf32> to vector<2x256xf32>
    %127 = arith.mulf %126, %124 : vector<2x256xf32>
    %128 = arith.addf %118, %127 : vector<2x256xf32>
    %129 = vector.extract_strided_slice %36 {offsets = [0, 113], sizes = [2, 256], strides = [1, 1]} : vector<2x512xf32> to vector<2x256xf32>
    %c18 = arith.constant 18 : index
    %c0_61 = arith.constant 0 : index
    %c0_62 = arith.constant 0 : index
    %130 = vector.load %arg8[%c18, %c0_61, %c0_62] : memref<49x2x256xf32, #tpu.memory_space<vmem>>, vector<1x2x256xf32>
    %131 = vector.shape_cast %130 : vector<1x2x256xf32> to vector<2x256xf32>
    %132 = arith.mulf %131, %129 : vector<2x256xf32>
    %133 = arith.addf %123, %132 : vector<2x256xf32>
    %134 = vector.extract_strided_slice %36 {offsets = [0, 114], sizes = [2, 256], strides = [1, 1]} : vector<2x512xf32> to vector<2x256xf32>
    %c19 = arith.constant 19 : index
    %c0_63 = arith.constant 0 : index
    %c0_64 = arith.constant 0 : index
    %135 = vector.load %arg8[%c19, %c0_63, %c0_64] : memref<49x2x256xf32, #tpu.memory_space<vmem>>, vector<1x2x256xf32>
    %136 = vector.shape_cast %135 : vector<1x2x256xf32> to vector<2x256xf32>
    %137 = arith.mulf %136, %134 : vector<2x256xf32>
    %138 = arith.addf %128, %137 : vector<2x256xf32>
    %139 = vector.extract_strided_slice %36 {offsets = [0, 115], sizes = [2, 256], strides = [1, 1]} : vector<2x512xf32> to vector<2x256xf32>
    %c20 = arith.constant 20 : index
    %c0_65 = arith.constant 0 : index
    %c0_66 = arith.constant 0 : index
    %140 = vector.load %arg8[%c20, %c0_65, %c0_66] : memref<49x2x256xf32, #tpu.memory_space<vmem>>, vector<1x2x256xf32>
    %141 = vector.shape_cast %140 : vector<1x2x256xf32> to vector<2x256xf32>
    %142 = arith.mulf %141, %139 : vector<2x256xf32>
    %143 = arith.addf %133, %142 : vector<2x256xf32>
    %144 = vector.extract_strided_slice %36 {offsets = [0, 125], sizes = [2, 256], strides = [1, 1]} : vector<2x512xf32> to vector<2x256xf32>
    %c21 = arith.constant 21 : index
    %c0_67 = arith.constant 0 : index
    %c0_68 = arith.constant 0 : index
    %145 = vector.load %arg8[%c21, %c0_67, %c0_68] : memref<49x2x256xf32, #tpu.memory_space<vmem>>, vector<1x2x256xf32>
    %146 = vector.shape_cast %145 : vector<1x2x256xf32> to vector<2x256xf32>
    %147 = arith.mulf %146, %144 : vector<2x256xf32>
    %148 = arith.addf %138, %147 : vector<2x256xf32>
    %149 = vector.extract_strided_slice %36 {offsets = [0, 126], sizes = [2, 256], strides = [1, 1]} : vector<2x512xf32> to vector<2x256xf32>
    %c22 = arith.constant 22 : index
    %c0_69 = arith.constant 0 : index
    %c0_70 = arith.constant 0 : index
    %150 = vector.load %arg8[%c22, %c0_69, %c0_70] : memref<49x2x256xf32, #tpu.memory_space<vmem>>, vector<1x2x256xf32>
    %151 = vector.shape_cast %150 : vector<1x2x256xf32> to vector<2x256xf32>
    %152 = arith.mulf %151, %149 : vector<2x256xf32>
    %153 = arith.addf %143, %152 : vector<2x256xf32>
    %154 = vector.extract_strided_slice %36 {offsets = [0, 127], sizes = [2, 256], strides = [1, 1]} : vector<2x512xf32> to vector<2x256xf32>
    %c23 = arith.constant 23 : index
    %c0_71 = arith.constant 0 : index
    %c0_72 = arith.constant 0 : index
    %155 = vector.load %arg8[%c23, %c0_71, %c0_72] : memref<49x2x256xf32, #tpu.memory_space<vmem>>, vector<1x2x256xf32>
    %156 = vector.shape_cast %155 : vector<1x2x256xf32> to vector<2x256xf32>
    %157 = arith.mulf %156, %154 : vector<2x256xf32>
    %158 = arith.addf %148, %157 : vector<2x256xf32>
    %159 = vector.extract_strided_slice %36 {offsets = [0, 128], sizes = [2, 256], strides = [1, 1]} : vector<2x512xf32> to vector<2x256xf32>
    %c24 = arith.constant 24 : index
    %c0_73 = arith.constant 0 : index
    %c0_74 = arith.constant 0 : index
    %160 = vector.load %arg8[%c24, %c0_73, %c0_74] : memref<49x2x256xf32, #tpu.memory_space<vmem>>, vector<1x2x256xf32>
    %161 = vector.shape_cast %160 : vector<1x2x256xf32> to vector<2x256xf32>
    %162 = arith.mulf %161, %159 : vector<2x256xf32>
    %163 = arith.addf %153, %162 : vector<2x256xf32>
    %164 = vector.extract_strided_slice %36 {offsets = [0, 129], sizes = [2, 256], strides = [1, 1]} : vector<2x512xf32> to vector<2x256xf32>
    %c25 = arith.constant 25 : index
    %c0_75 = arith.constant 0 : index
    %c0_76 = arith.constant 0 : index
    %165 = vector.load %arg8[%c25, %c0_75, %c0_76] : memref<49x2x256xf32, #tpu.memory_space<vmem>>, vector<1x2x256xf32>
    %166 = vector.shape_cast %165 : vector<1x2x256xf32> to vector<2x256xf32>
    %167 = arith.mulf %166, %164 : vector<2x256xf32>
    %168 = arith.addf %158, %167 : vector<2x256xf32>
    %169 = vector.extract_strided_slice %36 {offsets = [0, 130], sizes = [2, 256], strides = [1, 1]} : vector<2x512xf32> to vector<2x256xf32>
    %c26 = arith.constant 26 : index
    %c0_77 = arith.constant 0 : index
    %c0_78 = arith.constant 0 : index
    %170 = vector.load %arg8[%c26, %c0_77, %c0_78] : memref<49x2x256xf32, #tpu.memory_space<vmem>>, vector<1x2x256xf32>
    %171 = vector.shape_cast %170 : vector<1x2x256xf32> to vector<2x256xf32>
    %172 = arith.mulf %171, %169 : vector<2x256xf32>
    %173 = arith.addf %163, %172 : vector<2x256xf32>
    %174 = vector.extract_strided_slice %36 {offsets = [0, 131], sizes = [2, 256], strides = [1, 1]} : vector<2x512xf32> to vector<2x256xf32>
    %c27 = arith.constant 27 : index
    %c0_79 = arith.constant 0 : index
    %c0_80 = arith.constant 0 : index
    %175 = vector.load %arg8[%c27, %c0_79, %c0_80] : memref<49x2x256xf32, #tpu.memory_space<vmem>>, vector<1x2x256xf32>
    %176 = vector.shape_cast %175 : vector<1x2x256xf32> to vector<2x256xf32>
    %177 = arith.mulf %176, %174 : vector<2x256xf32>
    %178 = arith.addf %168, %177 : vector<2x256xf32>
    %179 = vector.extract_strided_slice %36 {offsets = [0, 141], sizes = [2, 256], strides = [1, 1]} : vector<2x512xf32> to vector<2x256xf32>
    %c28 = arith.constant 28 : index
    %c0_81 = arith.constant 0 : index
    %c0_82 = arith.constant 0 : index
    %180 = vector.load %arg8[%c28, %c0_81, %c0_82] : memref<49x2x256xf32, #tpu.memory_space<vmem>>, vector<1x2x256xf32>
    %181 = vector.shape_cast %180 : vector<1x2x256xf32> to vector<2x256xf32>
    %182 = arith.mulf %181, %179 : vector<2x256xf32>
    %183 = arith.addf %173, %182 : vector<2x256xf32>
    %184 = vector.extract_strided_slice %36 {offsets = [0, 142], sizes = [2, 256], strides = [1, 1]} : vector<2x512xf32> to vector<2x256xf32>
    %c29 = arith.constant 29 : index
    %c0_83 = arith.constant 0 : index
    %c0_84 = arith.constant 0 : index
    %185 = vector.load %arg8[%c29, %c0_83, %c0_84] : memref<49x2x256xf32, #tpu.memory_space<vmem>>, vector<1x2x256xf32>
    %186 = vector.shape_cast %185 : vector<1x2x256xf32> to vector<2x256xf32>
    %187 = arith.mulf %186, %184 : vector<2x256xf32>
    %188 = arith.addf %178, %187 : vector<2x256xf32>
    %189 = vector.extract_strided_slice %36 {offsets = [0, 143], sizes = [2, 256], strides = [1, 1]} : vector<2x512xf32> to vector<2x256xf32>
    %c30 = arith.constant 30 : index
    %c0_85 = arith.constant 0 : index
    %c0_86 = arith.constant 0 : index
    %190 = vector.load %arg8[%c30, %c0_85, %c0_86] : memref<49x2x256xf32, #tpu.memory_space<vmem>>, vector<1x2x256xf32>
    %191 = vector.shape_cast %190 : vector<1x2x256xf32> to vector<2x256xf32>
    %192 = arith.mulf %191, %189 : vector<2x256xf32>
    %193 = arith.addf %183, %192 : vector<2x256xf32>
    %194 = vector.extract_strided_slice %36 {offsets = [0, 144], sizes = [2, 256], strides = [1, 1]} : vector<2x512xf32> to vector<2x256xf32>
    %c31 = arith.constant 31 : index
    %c0_87 = arith.constant 0 : index
    %c0_88 = arith.constant 0 : index
    %195 = vector.load %arg8[%c31, %c0_87, %c0_88] : memref<49x2x256xf32, #tpu.memory_space<vmem>>, vector<1x2x256xf32>
    %196 = vector.shape_cast %195 : vector<1x2x256xf32> to vector<2x256xf32>
    %197 = arith.mulf %196, %194 : vector<2x256xf32>
    %198 = arith.addf %188, %197 : vector<2x256xf32>
    %199 = vector.extract_strided_slice %36 {offsets = [0, 145], sizes = [2, 256], strides = [1, 1]} : vector<2x512xf32> to vector<2x256xf32>
    %c32 = arith.constant 32 : index
    %c0_89 = arith.constant 0 : index
    %c0_90 = arith.constant 0 : index
    %200 = vector.load %arg8[%c32, %c0_89, %c0_90] : memref<49x2x256xf32, #tpu.memory_space<vmem>>, vector<1x2x256xf32>
    %201 = vector.shape_cast %200 : vector<1x2x256xf32> to vector<2x256xf32>
    %202 = arith.mulf %201, %199 : vector<2x256xf32>
    %203 = arith.addf %193, %202 : vector<2x256xf32>
    %204 = vector.extract_strided_slice %36 {offsets = [0, 146], sizes = [2, 256], strides = [1, 1]} : vector<2x512xf32> to vector<2x256xf32>
    %c33 = arith.constant 33 : index
    %c0_91 = arith.constant 0 : index
    %c0_92 = arith.constant 0 : index
    %205 = vector.load %arg8[%c33, %c0_91, %c0_92] : memref<49x2x256xf32, #tpu.memory_space<vmem>>, vector<1x2x256xf32>
    %206 = vector.shape_cast %205 : vector<1x2x256xf32> to vector<2x256xf32>
    %207 = arith.mulf %206, %204 : vector<2x256xf32>
    %208 = arith.addf %198, %207 : vector<2x256xf32>
    %209 = vector.extract_strided_slice %36 {offsets = [0, 147], sizes = [2, 256], strides = [1, 1]} : vector<2x512xf32> to vector<2x256xf32>
    %c34 = arith.constant 34 : index
    %c0_93 = arith.constant 0 : index
    %c0_94 = arith.constant 0 : index
    %210 = vector.load %arg8[%c34, %c0_93, %c0_94] : memref<49x2x256xf32, #tpu.memory_space<vmem>>, vector<1x2x256xf32>
    %211 = vector.shape_cast %210 : vector<1x2x256xf32> to vector<2x256xf32>
    %212 = arith.mulf %211, %209 : vector<2x256xf32>
    %213 = arith.addf %203, %212 : vector<2x256xf32>
    %214 = vector.extract_strided_slice %36 {offsets = [0, 157], sizes = [2, 256], strides = [1, 1]} : vector<2x512xf32> to vector<2x256xf32>
    %c35 = arith.constant 35 : index
    %c0_95 = arith.constant 0 : index
    %c0_96 = arith.constant 0 : index
    %215 = vector.load %arg8[%c35, %c0_95, %c0_96] : memref<49x2x256xf32, #tpu.memory_space<vmem>>, vector<1x2x256xf32>
    %216 = vector.shape_cast %215 : vector<1x2x256xf32> to vector<2x256xf32>
    %217 = arith.mulf %216, %214 : vector<2x256xf32>
    %218 = arith.addf %208, %217 : vector<2x256xf32>
    %219 = vector.extract_strided_slice %36 {offsets = [0, 158], sizes = [2, 256], strides = [1, 1]} : vector<2x512xf32> to vector<2x256xf32>
    %c36 = arith.constant 36 : index
    %c0_97 = arith.constant 0 : index
    %c0_98 = arith.constant 0 : index
    %220 = vector.load %arg8[%c36, %c0_97, %c0_98] : memref<49x2x256xf32, #tpu.memory_space<vmem>>, vector<1x2x256xf32>
    %221 = vector.shape_cast %220 : vector<1x2x256xf32> to vector<2x256xf32>
    %222 = arith.mulf %221, %219 : vector<2x256xf32>
    %223 = arith.addf %213, %222 : vector<2x256xf32>
    %224 = vector.extract_strided_slice %36 {offsets = [0, 159], sizes = [2, 256], strides = [1, 1]} : vector<2x512xf32> to vector<2x256xf32>
    %c37 = arith.constant 37 : index
    %c0_99 = arith.constant 0 : index
    %c0_100 = arith.constant 0 : index
    %225 = vector.load %arg8[%c37, %c0_99, %c0_100] : memref<49x2x256xf32, #tpu.memory_space<vmem>>, vector<1x2x256xf32>
    %226 = vector.shape_cast %225 : vector<1x2x256xf32> to vector<2x256xf32>
    %227 = arith.mulf %226, %224 : vector<2x256xf32>
    %228 = arith.addf %218, %227 : vector<2x256xf32>
    %229 = vector.extract_strided_slice %36 {offsets = [0, 160], sizes = [2, 256], strides = [1, 1]} : vector<2x512xf32> to vector<2x256xf32>
    %c38 = arith.constant 38 : index
    %c0_101 = arith.constant 0 : index
    %c0_102 = arith.constant 0 : index
    %230 = vector.load %arg8[%c38, %c0_101, %c0_102] : memref<49x2x256xf32, #tpu.memory_space<vmem>>, vector<1x2x256xf32>
    %231 = vector.shape_cast %230 : vector<1x2x256xf32> to vector<2x256xf32>
    %232 = arith.mulf %231, %229 : vector<2x256xf32>
    %233 = arith.addf %223, %232 : vector<2x256xf32>
    %234 = vector.extract_strided_slice %36 {offsets = [0, 161], sizes = [2, 256], strides = [1, 1]} : vector<2x512xf32> to vector<2x256xf32>
    %c39 = arith.constant 39 : index
    %c0_103 = arith.constant 0 : index
    %c0_104 = arith.constant 0 : index
    %235 = vector.load %arg8[%c39, %c0_103, %c0_104] : memref<49x2x256xf32, #tpu.memory_space<vmem>>, vector<1x2x256xf32>
    %236 = vector.shape_cast %235 : vector<1x2x256xf32> to vector<2x256xf32>
    %237 = arith.mulf %236, %234 : vector<2x256xf32>
    %238 = arith.addf %228, %237 : vector<2x256xf32>
    %239 = vector.extract_strided_slice %36 {offsets = [0, 162], sizes = [2, 256], strides = [1, 1]} : vector<2x512xf32> to vector<2x256xf32>
    %c40 = arith.constant 40 : index
    %c0_105 = arith.constant 0 : index
    %c0_106 = arith.constant 0 : index
    %240 = vector.load %arg8[%c40, %c0_105, %c0_106] : memref<49x2x256xf32, #tpu.memory_space<vmem>>, vector<1x2x256xf32>
    %241 = vector.shape_cast %240 : vector<1x2x256xf32> to vector<2x256xf32>
    %242 = arith.mulf %241, %239 : vector<2x256xf32>
    %243 = arith.addf %233, %242 : vector<2x256xf32>
    %244 = vector.extract_strided_slice %36 {offsets = [0, 163], sizes = [2, 256], strides = [1, 1]} : vector<2x512xf32> to vector<2x256xf32>
    %c41 = arith.constant 41 : index
    %c0_107 = arith.constant 0 : index
    %c0_108 = arith.constant 0 : index
    %245 = vector.load %arg8[%c41, %c0_107, %c0_108] : memref<49x2x256xf32, #tpu.memory_space<vmem>>, vector<1x2x256xf32>
    %246 = vector.shape_cast %245 : vector<1x2x256xf32> to vector<2x256xf32>
    %247 = arith.mulf %246, %244 : vector<2x256xf32>
    %248 = arith.addf %238, %247 : vector<2x256xf32>
    %249 = vector.extract_strided_slice %36 {offsets = [0, 173], sizes = [2, 256], strides = [1, 1]} : vector<2x512xf32> to vector<2x256xf32>
    %c42 = arith.constant 42 : index
    %c0_109 = arith.constant 0 : index
    %c0_110 = arith.constant 0 : index
    %250 = vector.load %arg8[%c42, %c0_109, %c0_110] : memref<49x2x256xf32, #tpu.memory_space<vmem>>, vector<1x2x256xf32>
    %251 = vector.shape_cast %250 : vector<1x2x256xf32> to vector<2x256xf32>
    %252 = arith.mulf %251, %249 : vector<2x256xf32>
    %253 = arith.addf %243, %252 : vector<2x256xf32>
    %254 = vector.extract_strided_slice %36 {offsets = [0, 174], sizes = [2, 256], strides = [1, 1]} : vector<2x512xf32> to vector<2x256xf32>
    %c43 = arith.constant 43 : index
    %c0_111 = arith.constant 0 : index
    %c0_112 = arith.constant 0 : index
    %255 = vector.load %arg8[%c43, %c0_111, %c0_112] : memref<49x2x256xf32, #tpu.memory_space<vmem>>, vector<1x2x256xf32>
    %256 = vector.shape_cast %255 : vector<1x2x256xf32> to vector<2x256xf32>
    %257 = arith.mulf %256, %254 : vector<2x256xf32>
    %258 = arith.addf %248, %257 : vector<2x256xf32>
    %259 = vector.extract_strided_slice %36 {offsets = [0, 175], sizes = [2, 256], strides = [1, 1]} : vector<2x512xf32> to vector<2x256xf32>
    %c44 = arith.constant 44 : index
    %c0_113 = arith.constant 0 : index
    %c0_114 = arith.constant 0 : index
    %260 = vector.load %arg8[%c44, %c0_113, %c0_114] : memref<49x2x256xf32, #tpu.memory_space<vmem>>, vector<1x2x256xf32>
    %261 = vector.shape_cast %260 : vector<1x2x256xf32> to vector<2x256xf32>
    %262 = arith.mulf %261, %259 : vector<2x256xf32>
    %263 = arith.addf %253, %262 : vector<2x256xf32>
    %264 = vector.extract_strided_slice %36 {offsets = [0, 176], sizes = [2, 256], strides = [1, 1]} : vector<2x512xf32> to vector<2x256xf32>
    %c45 = arith.constant 45 : index
    %c0_115 = arith.constant 0 : index
    %c0_116 = arith.constant 0 : index
    %265 = vector.load %arg8[%c45, %c0_115, %c0_116] : memref<49x2x256xf32, #tpu.memory_space<vmem>>, vector<1x2x256xf32>
    %266 = vector.shape_cast %265 : vector<1x2x256xf32> to vector<2x256xf32>
    %267 = arith.mulf %266, %264 : vector<2x256xf32>
    %268 = arith.addf %258, %267 : vector<2x256xf32>
    %269 = vector.extract_strided_slice %36 {offsets = [0, 177], sizes = [2, 256], strides = [1, 1]} : vector<2x512xf32> to vector<2x256xf32>
    %c46 = arith.constant 46 : index
    %c0_117 = arith.constant 0 : index
    %c0_118 = arith.constant 0 : index
    %270 = vector.load %arg8[%c46, %c0_117, %c0_118] : memref<49x2x256xf32, #tpu.memory_space<vmem>>, vector<1x2x256xf32>
    %271 = vector.shape_cast %270 : vector<1x2x256xf32> to vector<2x256xf32>
    %272 = arith.mulf %271, %269 : vector<2x256xf32>
    %273 = arith.addf %263, %272 : vector<2x256xf32>
    %274 = vector.extract_strided_slice %36 {offsets = [0, 178], sizes = [2, 256], strides = [1, 1]} : vector<2x512xf32> to vector<2x256xf32>
    %c47 = arith.constant 47 : index
    %c0_119 = arith.constant 0 : index
    %c0_120 = arith.constant 0 : index
    %275 = vector.load %arg8[%c47, %c0_119, %c0_120] : memref<49x2x256xf32, #tpu.memory_space<vmem>>, vector<1x2x256xf32>
    %276 = vector.shape_cast %275 : vector<1x2x256xf32> to vector<2x256xf32>
    %277 = arith.mulf %276, %274 : vector<2x256xf32>
    %278 = arith.addf %268, %277 : vector<2x256xf32>
    %279 = vector.extract_strided_slice %36 {offsets = [0, 179], sizes = [2, 256], strides = [1, 1]} : vector<2x512xf32> to vector<2x256xf32>
    %c48 = arith.constant 48 : index
    %c0_121 = arith.constant 0 : index
    %c0_122 = arith.constant 0 : index
    %280 = vector.load %arg8[%c48, %c0_121, %c0_122] : memref<49x2x256xf32, #tpu.memory_space<vmem>>, vector<1x2x256xf32>
    %281 = vector.shape_cast %280 : vector<1x2x256xf32> to vector<2x256xf32>
    %282 = arith.mulf %281, %279 : vector<2x256xf32>
    %283 = arith.addf %273, %282 : vector<2x256xf32>
    %284 = arith.addf %283, %278 : vector<2x256xf32>
    %285 = vector.extract_strided_slice %284 {offsets = [0, 0], sizes = [1, 256], strides = [1, 1]} : vector<2x256xf32> to vector<1x256xf32>
    %286 = vector.extract_strided_slice %284 {offsets = [1, 0], sizes = [1, 256], strides = [1, 1]} : vector<2x256xf32> to vector<1x256xf32>
    %287 = arith.addf %285, %286 : vector<1x256xf32>
    %c0_123 = arith.constant 0 : index
    %c0_124 = arith.constant 0 : index
    %288 = vector.load %arg9[%c0_123, %c0_124] : memref<1x1xf32, #tpu.memory_space<vmem>>, vector<1x1xf32>
    %289 = vector.broadcast %288 : vector<1x1xf32> to vector<1x256xf32>
    %290 = arith.addf %287, %289 : vector<1x256xf32>
    %cst_125 = arith.constant 0.000000e+00 : f32
    %291 = vector.broadcast %cst_125 : f32 to vector<1x256xf32>
    %292 = arith.subf %291, %290 : vector<1x256xf32>
    %293 = math.exp %292 : vector<1x256xf32>
    %cst_126 = arith.constant 1.000000e+00 : f32
    %294 = vector.broadcast %cst_126 : f32 to vector<1x256xf32>
    %295 = arith.addf %294, %293 : vector<1x256xf32>
    %cst_127 = arith.constant 1.000000e+00 : f32
    %296 = vector.broadcast %cst_127 : f32 to vector<1x256xf32>
    %297 = arith.divf %296, %295 : vector<1x256xf32>
    %298 = vector.broadcast %29 : vector<16x1xf32> to vector<16x256xf32>
    %299 = arith.mulf %0, %298 : vector<16x256xf32>
    %300 = vector.broadcast %297 : vector<1x256xf32> to vector<16x256xf32>
    %301 = arith.mulf %299, %300 : vector<16x256xf32>
    %c0_128 = arith.constant 0 : index
    %c0_129 = arith.constant 0 : index
    %302 = vector.load %arg10[%c0_128, %c0_129] : memref<16x256xf32, #tpu.memory_space<vmem>>, vector<16x256xf32>
    tpu.vector_store %arg10[%c0_128, %c0_129], %301 {strides = array<i32>} : memref<16x256xf32, #tpu.memory_space<vmem>>, vector<16x256xf32>,
    return
  }
  func.func @transform_0(%arg0: i32) -> (i32, i32) {
    %c0_i32 = arith.constant 0 : i32
    %c0_i32_0 = arith.constant 0 : i32
    return %arg0, %c0_i32 : i32, i32
  }
  func.func @transform_1(%arg0: i32) -> (i32, i32) {
    %c0_i32 = arith.constant 0 : i32
    %c0_i32_0 = arith.constant 0 : i32
    %c0_i32_1 = arith.constant 0 : i32
    return %c0_i32, %c0_i32_0 : i32, i32
  }
  func.func @transform_2(%arg0: i32) -> (i32, i32) {
    %c0_i32 = arith.constant 0 : i32
    %c0_i32_0 = arith.constant 0 : i32
    %c0_i32_1 = arith.constant 0 : i32
    return %c0_i32, %c0_i32_0 : i32, i32
  }
  func.func @transform_3(%arg0: i32) -> (i32, i32) {
    %c0_i32 = arith.constant 0 : i32
    %c0_i32_0 = arith.constant 0 : i32
    %c0_i32_1 = arith.constant 0 : i32
    return %c0_i32, %c0_i32_0 : i32, i32
  }
  func.func @transform_4(%arg0: i32) -> (i32, i32) {
    %c0_i32 = arith.constant 0 : i32
    %c0_i32_0 = arith.constant 0 : i32
    %c0_i32_1 = arith.constant 0 : i32
    return %c0_i32, %c0_i32_0 : i32, i32
  }
  func.func @transform_5(%arg0: i32) -> (i32, i32) {
    %c0_i32 = arith.constant 0 : i32
    %c0_i32_0 = arith.constant 0 : i32
    %c0_i32_1 = arith.constant 0 : i32
    return %c0_i32, %c0_i32_0 : i32, i32
  }
  func.func @transform_6(%arg0: i32) -> (i32, i32) {
    %c0_i32 = arith.constant 0 : i32
    %c0_i32_0 = arith.constant 0 : i32
    %c0_i32_1 = arith.constant 0 : i32
    return %c0_i32, %c0_i32_0 : i32, i32
  }
  func.func @transform_7(%arg0: i32) -> (i32, i32, i32) {
    %c0_i32 = arith.constant 0 : i32
    %c0_i32_0 = arith.constant 0 : i32
    %c0_i32_1 = arith.constant 0 : i32
    %c0_i32_2 = arith.constant 0 : i32
    return %c0_i32, %c0_i32_0, %c0_i32_1 : i32, i32, i32
  }
  func.func @transform_8(%arg0: i32) -> (i32, i32) {
    %c0_i32 = arith.constant 0 : i32
    %c0_i32_0 = arith.constant 0 : i32
    %c0_i32_1 = arith.constant 0 : i32
    return %c0_i32, %c0_i32_0 : i32, i32
  }
  func.func @transform_9(%arg0: i32) -> (i32, i32) {
    %c0_i32 = arith.constant 0 : i32
    %c0_i32_0 = arith.constant 0 : i32
    return %arg0, %c0_i32 : i32, i32
  }
}

</mosaic_0001>

<bundles_post_ra>
// kernel: tpu_custom_call.1
= control target key start
LH: loop header
LB: loop body
LE: loop exit
PB: predicated region body
PF: predicated region fallthrough
CT: control target
= control target key end

     0   :  { %s2165_s0 = inlined_call_operand.hbm [shape: f32[32,256], index: 0, kind: input, shape index: {}]   ;;  %s2166_s1 = inlined_call_operand.vmem [shape: f32[2,16], index: 1, kind: input, shape index: {}]   ;;  %s2167_s2 = inlined_call_operand.vmem [shape: f32[2,1], index: 2, kind: input, shape index: {}]   ;;  %s2168_s3 = inlined_call_operand.vmem [shape: f32[16,2], index: 3, kind: input, shape index: {}]   ;;  %s2169_s4 = inlined_call_operand.vmem [shape: f32[16,1], index: 4, kind: input, shape index: {}]   ;;  %s2170_s5 = inlined_call_operand.vmem [shape: f32[1,16], index: 5, kind: input, shape index: {}]   ;;  %s2171_s6 = inlined_call_operand.vmem [shape: f32[16,1], index: 6, kind: input, shape index: {}]   ;;  %s2172_s7 = inlined_call_operand.hbm [shape: f32[49,2,256], index: 7, kind: input, shape index: {}]   ;;  %s2173_s8 = inlined_call_operand.<no memory space> [shape: f32[1,1], index: 8, kind: input, shape index: {}]   ;;  %s2174_s9 = inlined_call_operand.hbm [shape: f32[32,256], index: 9, kind: output, shape index: {}]  }
   0x1   :  { %2179 = sst [smem:[#allocation12_spill]] %s2172_s7  ;;  %v14_v0 = vstv %s2173_s8 }
   0x2   :  { %15 = vst [vmem:[#allocation2] sm:$0x1] %v14_v0 }
   0x3   :  { %16 = vsyncpa [#allocation4], 0 }
   0x4   :  { %18 = vsyncpa [#allocation4 + $0x1], 0 }
   0x5   :  { %19 = vsyncpa [#allocation7], 0 }
   0x6   :  { %20 = vsyncpa [#allocation5], 0 }
   0x7   :  { %22 = vsyncpa [#allocation5 + $0x1], 0  ;;  %s1782_s6 = smov 0   ;;  %s1784_s11 = smov 0  }
   0x8   :  { %s1786_s12 = smov 0   ;;  %s1788_s13 = smov 0  }
   0x9 LB: > { %s1803_s8 = sadd.s32 4294967295, %s1667_s13   ;;  %s1367_s14 = sadd.s32 4294967294, %s1667_s13   ;;  %s1667_s13 = sphi %s1788_s13, %s2198_s13   ;;  %s1663_s12 = sphi %s1786_s12, %s2197_s12   ;;  %s1659_s11 = sphi %s1784_s11, %s2196_s11   ;;  %s1655_s6 = sphi %s1782_s6, %s2195_s6  }
   0xa   : > { %p48_p0 = scmp.ne.s32.totalorder %s1659_s11, %s1655_s6  ;;  %p2175_p1 = scmp.eq.s32.totalorder %s1803_s8, 0 }
   0xb   : > { %p246_p3 = scmp.eq.s32.totalorder %s1367_s14, 1  ;;  %p1368_p5 = scmp.ge.s32.totalorder %s1667_s13, 1 }
   0xc   : > { %p1812_p4 = por %p2175_p1, %p48_p0  ;;  %p253_p7 = scmp.lt.s32.totalorder %s1667_s13, 3 }
   0xd   : > { %p1817_p6 = por %p246_p3, %p48_p0  ;;  %s1669_s18 = smov [#allocation6]  }
   0xe   : > { %s2180_s15 = scalar_select %p1812_p4, 1, 0 }
   0xf   : > { %s2181_s16 = scalar_select %p1817_p6, 1, 0 }
  0x10   : > { %p1822_p8 = pnand %p1368_p5, %p253_p7  ;;  %s283_s19 = sshll.u32 %s1669_s18, 4  ;;  %s284_s19 = int_to_ptr.vmem [resolvable:$true] %s283_s19 }
  0x11   : > { %s1836_s21 = sadd.s32 1, %s1667_s13   ;;  %s35_s22 = sadd.s32 1, %s1663_s12 }
  0x12   : > { %s2182_s17 = scalar_select %p1822_p8, 1, 0 }
  0x13   : > { %p1421_p9 = pneg %p1822_p8  ;;  %s32_s23 = ssub.s32 %s1667_s13, %s1836_s21 }
  0x14   : > { %s1556_s24 = scalar_lea.vmem %s284_s19, 3136  ;;  %p1564_p5 = scmp.lt.s32.totalorder %s284_s19, %s284_s19 }
  0x15   : > { %p1831_p11 = pnand %p1421_p9, %p2175_p1  ;;  %p1557_p13 = scmp.ne.s32.totalorder %s284_s19, %s1556_s24 }
  0x16   : > { %p1565_p7 = scmp.lt.s32.totalorder %s1556_s24, %s1556_s24 }
  0x17   : > { %p1547_p12 = pneg %p1831_p11 }
  0x18   : > { %p1566_p10 = por %p1565_p7, %p1564_p5 }
  0x19   : > { %p1559_p0 = pnand %p1557_p13, %p1547_p12 }
  0x1b   : > { %p1560_p3 = pneg %p1559_p0 }
  0x1d   : > { %p1567_p2 = pnand %p1566_p10, %p1560_p3 }
  0x1f   : > { %1570 = shalt.err (!%p1567_p2)
}
  0x20   : > { %s1670_s25 = smov 64   ;;  %s1671_s26 = smov 4  }
  0x21   : > { %s2184_s7 = sld [smem:[#allocation12_spill]]  ;;  %p33_p9 = scmp.eq.s32.totalorder %s32_s23, 0 }
  0x22   : > { %p42_p12 = scmp.ne.s32.totalorder %s1663_s12, %s1659_s11  ;;  %p43_p10 = scmp.eq.s32.totalorder %s1667_s13, 0 }
  0x23   : > { %p1434_p2 = scmp.lt.s32.totalorder %s1667_s13, 2  ;;  %p2185_p0 = scmp.eq.s32.totalorder %s1803_s8, 1 }
  0x24   : > { %s1853_s29 = scalar_select %p33_p9, %s1663_s12, %s35_s22  }
  0x25   : > { %p44_p13 = por %p43_p10, %p42_p12  ;;  %p1857_p3 = por %p2185_p0, %p42_p12 }
  0x26   : > { %s300_s10 = sand.u32 1, %s1663_s12   ;;  %s1392_s14 = sshll.u32 %s1667_s13, 9 }
  0x27   : > { %1424 = dma.hbm_to_vmem [thread:$0]  (!%p1831_p11), %s2184_s7, 3136, %s284_s19, [#allocation7], %s1670_s25, %s1670_s25, %s1671_s26  }
  0x28   : > { %s2186_s30 = scalar_select %p1857_p3, 1, 0 }
  0x29   : > { %s1371_s18 = sshll.u32 %s300_s10, 5  ;;  %s1866_s27 = scalar_lea.hbm %s2165_s0, %s1392_s14 }
  0x2a   : > { %s304_s19 = scalar_lea.vmem [#allocation3], %s1371_s18  ;;  %p1868_p11 = pnand %p1434_p2, %p44_p13 }
  0x2b   : > { %s312_s22 = sshll.u32 %s304_s19, 4  ;;  %s1874_s25 = scalar_lea.sflag [#allocation4], %s300_s10  ;;  %s1872_s22 = int_to_ptr.vmem [resolvable:$true] %s312_s22 }
  0x2c   : > { %s1571_s26 = scalar_lea.hbm %s1866_s27, 512  ;;  %p1573_p7 = pneg %p1868_p11 }
  0x2d   : > { %p1572_p5 = scmp.ne.s32.totalorder %s1866_s27, %s1571_s26  ;;  %s1576_s18 = scalar_lea.hbm %s2165_s0, 1024 }
  0x2e   : > { %p1577_p10 = scmp.lt.s32.totalorder %s1866_s27, %s2165_s0  ;;  %p1578_p2 = scmp.lt.s32.totalorder %s1576_s18, %s1571_s26 }
  0x2f   : > { %p1574_p9 = pnand %p1573_p7, %p1572_p5 }
  0x30   : > { %p1579_p13 = por %p1578_p2, %p1577_p10 }
  0x31   : > { %p1575_p12 = pneg %p1574_p9 }
  0x33   : > { %p1580_p0 = pnand %p1579_p13, %p1575_p12 }
  0x35   : > { %1583 = shalt.err (!%p1580_p0)
}
  0x36   : > { %s1584_s10 = scalar_lea.vmem %s1872_s22, 512  ;;  %s1672_s19 = smov [#allocation3]  }
  0x37   : > { %p1585_p1 = scmp.ne.s32.totalorder %s1872_s22, %s1584_s10  ;;  %s1589_s7 = sshll.u32 %s1672_s19, 4  ;;  %s1590_s7 = int_to_ptr.vmem [resolvable:$false] %s1589_s7 }
  0x38   : > { %s1591_s28 = scalar_lea.vmem %s1590_s7, 1024  ;;  %p1592_p9 = scmp.lt.s32.totalorder %s1872_s22, %s1590_s7 }
  0x39   : > { %p1587_p6 = pnand %p1585_p1, %p1573_p7  ;;  %p1593_p3 = scmp.lt.s32.totalorder %s1591_s28, %s1584_s10 }
  0x3b   : > { %p1588_p5 = pneg %p1587_p6  ;;  %p1594_p4 = por %p1593_p3, %p1592_p9 }
  0x3d   : > { %p1595_p8 = pnand %p1594_p4, %p1588_p5 }
  0x3f   : > { %1598 = shalt.err (!%p1595_p8)
}
  0x40   : > { %s1673_s26 = smov 256   ;;  %s1674_s14 = smov 16  }
  0x41   : > { %1428 = dma.hbm_to_vmem [thread:$0]  (!%p1868_p11), %s1866_s27, 512, %s1872_s22, %s1874_s25, %s1673_s26, %s1673_s26, %s1674_s14  }
  0x42   : > { %p2188_p1 = scmp.ne.s32.totalorder %s2182_s17, 0 }
  0x43   : > { %s1898_s18 = sand.u32 (!%p2188_p1), 1, %s1659_s11   ;;  %p2189_p4 = scmp.ne.s32.totalorder (!%p2188_p1), %s2180_s15, 0 }
  0x44   : > { %324 = sbr.rel (%p2188_p1) target bundleno = 917 (0x395), region = 56  ;;  %s1376_s7 = sshll.u32 (!%p2188_p1), %s1898_s18, 5 }
  0x45   : > { %s327_s20 = scalar_lea.sflag (!%p2188_p1), [#allocation4], %s1898_s18  ;;  %s1904_s24 = scalar_lea.vmem (!%p2188_p1), [#allocation3], %s1376_s7 }
  0x49   : > { %1642 = dma.done.wait (%p2189_p4), %s327_s20, 512  }
  0x4a   : > { %1644 = vsyncadd (%p2189_p4), %s327_s20, 4294966784  ;;  %p2190_p6 = scmp.eq.s32.totalorder %s1803_s8, 0 }
  0x4c   : > { %1646 = dma.done.wait (%p2190_p6), [#allocation7], 3136   ;;  %p2191_p8 = pmov %p2190_p6 }
  0x4d   : > { %v373_v1 = vld [vmem:[%s1904_s24 + $0x10] sm:$0xff]  ;;  %v374_v2 = vld [vmem:[%s1904_s24 + $0x18] sm:$0xff]  ;;  %v371_v3 = vld [vmem:[%s1904_s24] sm:$0xff]  ;;  %v1675_v9 = vmov 0.0   ;;  %vm1676_vm0 = vmmov 0   ;;  %v1677_v10 = vmov 0   ;;  %v697_v44 = vlaneseq }
  0x4e   : > { %1648 = vsyncadd (%p2191_p8), [#allocation7], 4294964160  ;;  %v378_v4 = vadd.f32 %v374_v2, %v373_v1  ;;  %v387_v5 = vmax.f32 %v373_v1, %v374_v2  ;;  %v372_v6 = vld [vmem:[%s1904_s24 + $0x8] sm:$0xff]  ;;  %1401 = vmatprep.subr.mxu0 %v1675_v9  ;;  %1405 = vmatprep.mubr.msk.f32.mxu0 %vm1676_vm0, %v1675_v9  ;;  %v394_v11 = vld [vmem:[%s2167_s2] sm:$0x3]  ;;  %vm390_vm1 = vcmask 7168   ;;  %v672_v31 = vmax.f32 %v371_v3, %v373_v1 }
  0x4f   : > { %v375_v7 = vadd.f32 %v372_v6, %v371_v3  ;;  %v384_v8 = vmax.f32 %v371_v3, %v372_v6  ;;  %1527 = vset.pattern.permute.xlu0 %v1677_v10  ;;  %1528 = vset.pattern.permute.xlu1 %v1677_v10  ;;  %v393_v19 = vld [vmem:[%s2166_s1] sm:$0x3]  ;;  %vm404_vm2 = vcmask 130048   ;;  %vm489_vm3 = vcmask 15360   ;;  %v398_v23 = vld [vmem:[%s2169_s4 + $0x8] sm:$0xff]  ;;  %s1679_s27 = smov 127  }
  0x50   : > { %379 = vadd.xlane.f32.xlu0 %v378_v4  ;;  %388 = vmax.xlane.f32.xlu1 %v387_v5  ;;  %v395_v21 = vld [vmem:[%s2168_s3] sm:$0xff]  ;;  %vm496_vm4 = vcmask 1041408   ;;  %v396_v29 = vld [vmem:[%s2168_s3 + $0x8] sm:$0xff]  ;;  %v679_v32 = vmax.f32 %v372_v6, %v374_v2  ;;  %v673_v33 = vrot.slane %v672_v31, 4  ;;  %v1678_v42 = vmov 1983009808  }
  0x51   : > { %1410 = vmatprep.mubr.msk.f32.mxu1 %vm489_vm3, %v395_v21  ;;  %v397_v22 = vld [vmem:[%s2169_s4] sm:$0xff]  ;;  %v695_v43 = vunpack.c.l.s4 %v1678_v42  ;;  %v1949_v50 = vshrl.u32 %v697_v44, 7  ;;  %vm686_vm5 = vcmask 1040384   ;;  %s1680_s22 = smov 47   ;;  %s1681_s23 = smov 51   ;;  %vm742_vm6 = vcmask 392192  }
  0x52   : > { %v597_v30 = vld [vmem:[%s2170_s5] sm:$0x1]  ;;  %v680_v34 = vrot.slane %v679_v32, 4  ;;  %v674_v35 = vmax.f32 %v672_v31, %v673_v33  ;;  %s1682_s25 = smov 45   ;;  %s1683_s10 = smov 49   ;;  %vm722_vm7 = vcmask 408576  }
  0x53   : > { %v696_v49 = vunpack.c.0.s8 %v695_v43  ;;  %s1684_s19 = smov 34   ;;  %s1685_s28 = smov 50   ;;  %v1211_v5 = vld [vmem:[#allocation2] sm:$0x1]  ;;  %vm762_vm8 = vcmask 375808   ;;  %vm732_vm9 = vcmask 400384  }
  0x54   : > { %376 = vadd.xlane.f32.xlu0 %v375_v7  ;;  %385 = vmax.xlane.f32.xlu1 %v384_v8  ;;  %v681_v36 = vmax.f32 %v679_v32, %v680_v34  ;;  %v675_v37 = vrot.slane %v674_v35, 2  ;;  %s1686_s26 = smov 32   ;;  %s1687_s14 = smov 48   ;;  %v738_v44 = vld [vmem:[#allocation6 + $0xc] sm:$0xf]  ;;  %vm782_vm10 = vcmask 285696  }
  0x55   : > { %v699_v56 = vsub.s32 %v696_v49, %v1949_v50  ;;  %s1688_s20 = smov 30   ;;  %s1689_s15 = smov 46   ;;  %vm712_vm11 = vcmask 416768   ;;  %vm802_vm12 = vcmask 269312   ;;  %vm752_vm13 = vcmask 384000  }
  0x56   : > { %v682_v38 = vrot.slane %v681_v36, 2  ;;  %v676_v39 = vmax.f32 %v674_v35, %v675_v37  ;;  %s1690_s17 = smov 19   ;;  %vm822_vm14 = vcmask 252928   ;;  %vm842_vm15 = vcmask 236544   ;;  %p2192_p11 = scmp.ne.s32.totalorder %s2186_s30, 0 }
  0x57   : > { %vm862_vm0 = vcmask 146432  }
  0x58   : > { %v683_v41 = vmax.f32 %v681_v36, %v682_v38  ;;  %v677_v45 = vrot.slane %v676_v39, 1 }
  0x5a   : > { %v684_v46 = vrot.slane %v683_v41, 1  ;;  %v678_v52 = vmax.f32 %v676_v39, %v677_v45 }
  0x5c   : > { %v685_v54 = vmax.f32 %v683_v41, %v684_v46 }
  0x65   : > { %481 = vperm.xlu1 %1528, %v397_v22  }
  0x69   : > { %486 = vperm.xlu1 %1528, %v398_v23  }
  0x6a   : > { %401 = vperm.xlu0 %1527, %v394_v11  }
  0xd9   : > { %v380_v12 = vpop.xlane.xlu0 %379  ;;  %v389_v13 = vpop.xlane.xlu1 %388 }
  0xda   : > { %v383_v14 = vmul.f32 0.00390625, %v380_v12 }
  0xdc   : > { %v392_v15 = vsel %vm390_vm1, %v383_v14, %v389_v13 }
  0xdd   : > { %1402 = vmatpush3.msra.mxu0 %v392_v15  ;;  %v377_v16 = vpop.xlane.xlu0 %376  ;;  %v386_v17 = vpop.xlane.xlu1 %385 }
  0xde   : > { %v382_v18 = vmul.f32 0.00390625, %v377_v16  ;;  %1403 = vmatprep.subr.mxu0 %v1675_v9 }
  0xe0   : > { %v391_v20 = vsel %vm390_vm1, %v382_v18, %v386_v17 }
  0xe1   : > { %1404 = vmatpush3.msra.mxu0 %v391_v20  ;;  %v482_v40 = vpop.permute.xlu1 %481 }
  0xe2   : > { %1406 = vmatmul.mubr.msk.f32.vlgmr.msra.gmra.mxu0 %vm404_vm2, %v393_v19 }
  0xe5   : > { %v402_v24 = vpop.permute.xlu0 %401  ;;  %v487_v47 = vpop.permute.xlu1 %486 }
 0x1a2   : > { %v474_v25 = vpop.f32.mrf.mxu0 }
 0x1a3   : > { %v475_v26 = vadd.f32 %v474_v25, %v402_v24 }
 0x1a4   : > { %v1407_v27 = vpop.f32.mrf.mxu0 }
 0x1a5   : > { %v478_v28 = vmax.f32 %v475_v26, 0.0 }
 0x1a7   : > { %1408 = vmatprep.subr.msk.mxu1 %vm496_vm4, %v478_v28 }
 0x1a8   : > { %1409 = vmatpush3.msk.msra.mxu1 %vm496_vm4, %v478_v28  ;;  %vm772_vm4 = vcmask 367616  }
 0x1a9   : > { %1411 = vmatmul.mubr.msk.f32.vlgmr.msra.gmra.mxu1 %vm489_vm3, %v396_v29  ;;  %629 = vmatprep.subr.mxu1 %v374_v2 }
 0x1aa   : > { %630 = vmatpush1.msra.mxu1 %v373_v1  ;;  %665 = vmatprep.mubr.f32.mxu1 %v1675_v9 }
 0x1ab   : > { %631 = vmatprep.subr.mxu1 %v372_v6 }
 0x1ac   : > { %632 = vmatpush1.msra.mxu1 %v371_v3  ;;  %v965_v3 = vrot.slane %v1675_v9, %v699_v56 }
 0x1ad   : > { %1383 = vmatmul.mubr.msk.f32.vlgmr.msra.gmra.mxu1 %vm404_vm2, %v597_v30 }
 0x269   : > { %v1412_v48 = vpop.f32.mrf.mxu1 }
 0x26a   : > { %v1951_v51 = vadd.f32 %v1412_v48, %v487_v47 }
 0x26b   : > { %v566_v53 = vpop.f32.mrf.mxu1 }
 0x26c   : > { %579 = vrot.lane.b32.xlu1 %v1951_v51, %s1679_s27  ;;  %v1956_v57 = vadd.f32 %v566_v53, %v482_v40  ;;  %v758_v53 = vld [vmem:[#allocation6 + $0x14] sm:$0xf] }
 0x26d   : > { %v667_v55 = vpop.f32.mrf.mxu1 }
 0x26e   : > { %v687_v58 = vsel %vm686_vm5, %v667_v55, %v678_v52 }
 0x26f   : > { %v693_v59 = vcombine.low %v1675_v9, %v687_v58  ;;  %v669_v60 = vpop.f32.mrf.mxu1 }
 0x270   : > { %v688_v61 = vsel %vm686_vm5, %v669_v60, %v685_v54  ;;  %577 = vrot.lane.b32.xlu1 %v1956_v57, %s1679_s27  ;;  %vm792_vm5 = vcmask 277504  }
 0x271   : > { %v700_v62 = vrot.slane %v693_v59, %v699_v56  ;;  %v707_v63 = vrot.slane %v688_v61, %v699_v56  ;;  %v946_v1 = vcombine.low %v687_v58, %v688_v61  ;;  %v778_v59 = vld [vmem:[#allocation6 + $0x1c] sm:$0xf] }
 0x273   : > { %v708_v0 = vcombine.low %v700_v62, %v707_v63  ;;  %v1961_v2 = vrot.slane %v946_v1, %v699_v56 }
 0x275   : > { %749 = vrot.lane.b32.xlu0 %v708_v0, %s1680_s22  ;;  %709 = vrot.lane.b32.xlu1 %v708_v0, %s1681_s23  ;;  %s1691_s22 = smov 35   ;;  %s1692_s23 = smov 17   ;;  %v966_v4 = vcombine.low %v1961_v2, %v965_v3 }
 0x279   : > { %769 = vrot.lane.b32.xlu0 %v708_v0, %s1682_s25  ;;  %729 = vrot.lane.b32.xlu1 %v708_v0, %s1683_s10  ;;  %s1693_s25 = smov 33   ;;  %s1694_s10 = smov 15  }
 0x27d   : > { %789 = vrot.lane.b32.xlu0 %v708_v0, %s1684_s19  ;;  %719 = vrot.lane.b32.xlu1 %v708_v0, %s1685_s28  ;;  %s1695_s19 = smov 31   ;;  %s1696_s28 = smov 13  }
 0x281   : > { %809 = vrot.lane.b32.xlu0 %v708_v0, %s1686_s26  ;;  %739 = vrot.lane.b32.xlu1 %v708_v0, %s1687_s14  ;;  %s1697_s26 = smov 29   ;;  %s1698_s14 = smov 2  }
 0x285   : > { %829 = vrot.lane.b32.xlu0 %v708_v0, %s1688_s20  ;;  %759 = vrot.lane.b32.xlu1 %v708_v0, %s1689_s15  ;;  %s1699_s20 = smov 18   ;;  %s1700_s15 = smov 16  }
 0x289   : > { %849 = vrot.lane.b32.xlu0 %v708_v0, %s1690_s17  ;;  %779 = vrot.lane.b32.xlu1 %v708_v0, %s1691_s22  ;;  %s1701_s17 = smov 125   ;;  %s1702_s22 = smov 14  }
 0x28d   : > { %869 = vrot.lane.b32.xlu0 %v708_v0, %s1692_s23  ;;  %799 = vrot.lane.b32.xlu1 %v708_v0, %s1693_s25  ;;  %s1703_s23 = smov 114   ;;  %s1704_s25 = smov 3  }
 0x291   : > { %888 = vrot.lane.b32.xlu0 %v708_v0, %s1694_s10  ;;  %819 = vrot.lane.b32.xlu1 %v708_v0, %s1695_s19  ;;  %s1705_s10 = smov 112   ;;  %s1706_s19 = smov 1  }
 0x295   : > { %908 = vrot.lane.b32.xlu0 %v708_v0, %s1696_s28  ;;  %839 = vrot.lane.b32.xlu1 %v708_v0, %s1697_s26  ;;  %s1707_s28 = smov 110   ;;  %s1708_s26 = smov 126  }
 0x299   : > { %928 = vrot.lane.b32.xlu0 %v708_v0, %s1698_s14  ;;  %859 = vrot.lane.b32.xlu1 %v708_v0, %s1699_s20  ;;  %s1710_s14 = smov 115   ;;  %s1711_s20 = smov 97  }
 0x29d   : > { %967 = vrot.lane.b32.xlu0 %v966_v4, %s1679_s27  ;;  %879 = vrot.lane.b32.xlu1 %v708_v0, %s1700_s15  ;;  %s1709_s27 = smov 99  }
 0x2a1   : > { %987 = vrot.lane.b32.xlu0 %v966_v4, %s1701_s17  ;;  %898 = vrot.lane.b32.xlu1 %v708_v0, %s1702_s22  ;;  %s1712_s17 = smov 113   ;;  %s1713_s22 = smov 95  }
 0x2a5   : > { %1007 = vrot.lane.b32.xlu0 %v966_v4, %s1703_s23  ;;  %918 = vrot.lane.b32.xlu1 %v708_v0, %s1704_s25  ;;  %s1714_s23 = smov 111   ;;  %s1715_s25 = smov 93  }
 0x2a9   : > { %1027 = vrot.lane.b32.xlu0 %v966_v4, %s1705_s10  ;;  %937 = vrot.lane.b32.xlu1 %v708_v0, %s1706_s19  ;;  %s1716_s10 = smov 109   ;;  %s1717_s19 = smov 82  }
 0x2ad   : > { %1047 = vrot.lane.b32.xlu0 %v966_v4, %s1707_s28  ;;  %977 = vrot.lane.b32.xlu1 %v966_v4, %s1708_s26  ;;  %s1718_s28 = smov 98   ;;  %s1719_s26 = smov 80  }
 0x2b1   : > { %1067 = vrot.lane.b32.xlu0 %v966_v4, %s1709_s27  ;;  %997 = vrot.lane.b32.xlu1 %v966_v4, %s1710_s14  ;;  %s1720_s27 = smov 96   ;;  %s1721_s14 = smov 78  }
 0x2b5   : > { %1087 = vrot.lane.b32.xlu0 %v966_v4, %s1711_s20  ;;  %1017 = vrot.lane.b32.xlu1 %v966_v4, %s1712_s17  ;;  %s1722_s20 = smov 94   ;;  %s1723_s17 = smov 83  }
 0x2b9   : > { %1107 = vrot.lane.b32.xlu0 %v966_v4, %s1713_s22  ;;  %1037 = vrot.lane.b32.xlu1 %v966_v4, %s1714_s23  ;;  %s1724_s22 = smov 81   ;;  %s1725_s23 = smov 79  }
 0x2bd   : > { %1127 = vrot.lane.b32.xlu0 %v966_v4, %s1715_s25  ;;  %1057 = vrot.lane.b32.xlu1 %v966_v4, %s1716_s10  ;;  %s1726_s25 = smov 77   ;;  %s368_s10 = scalar_lea.vmem [#allocation8], %s1376_s7 }
 0x2c1   : > { %1147 = vrot.lane.b32.xlu0 %v966_v4, %s1717_s19  ;;  %1077 = vrot.lane.b32.xlu1 %v966_v4, %s1718_s28  ;;  %s1284_s19 = sshll.u32 %s368_s10, 4  ;;  %s1394_s28 = sshll.u32 %s1803_s8, 9  ;;  %s2116_s19 = int_to_ptr.vmem [resolvable:$true] %s1284_s19 }
 0x2c2   : > { %s1270_s8 = scalar_lea.sflag [#allocation5], %s1898_s18 }
 0x2c5   : > { %1167 = vrot.lane.b32.xlu0 %v966_v4, %s1719_s26  ;;  %1097 = vrot.lane.b32.xlu1 %v966_v4, %s1720_s27  ;;  %s2121_s27 = scalar_lea.hbm %s2174_s9, %s1394_s28 }
 0x2c9   : > { %1187 = vrot.lane.b32.xlu0 %v966_v4, %s1721_s14  ;;  %1117 = vrot.lane.b32.xlu1 %v966_v4, %s1722_s20  ;;  %s1599_s14 = scalar_lea.vmem %s2116_s19, 512 }
 0x2ca   : > { %p1600_p3 = scmp.ne.s32.totalorder %s2116_s19, %s1599_s14 }
 0x2cc   : > { %p1601_p7 = pnand %p1600_p3, %p2192_p11 }
 0x2cd   : > { %1214 = vperm.xlu0 %1527, %v1211_v5   ;;  %1137 = vrot.lane.b32.xlu1 %v966_v4, %s1723_s17 }
 0x2ce   : > { %p1602_p12 = pneg %p1601_p7 }
 0x2d1   : > { %1157 = vrot.lane.b32.xlu1 %v966_v4, %s1724_s22 }
 0x2d5   : > { %1177 = vrot.lane.b32.xlu1 %v966_v4, %s1725_s23 }
 0x2d9   : > { %1197 = vrot.lane.b32.xlu1 %v966_v4, %s1726_s25  ;;  %v689_v4 = vld [vmem:[#allocation6] sm:$0xf] }
 0x2de   : > { %v580_v6 = vpop.permute.xlu1 %579 }
 0x2df   : > { %v584_v7 = vadd.f32 %v580_v6, %v1951_v51  ;;  %v718_v51 = vld [vmem:[#allocation6 + $0x4] sm:$0xf] }
 0x2e0   : > { %v798_v6 = vld [vmem:[#allocation6 + $0x24] sm:$0xf] }
 0x2e1   : > { %v586_v8 = vsub.f32 0.0, %v584_v7 }
 0x2e2   : > { %v578_v9 = vpop.permute.xlu1 %577 }
 0x2e3   : > { %v589_v10 = vmul.f32 1.442695, %v586_v8  ;;  %v583_v11 = vadd.f32 %v578_v9, %v1956_v57  ;;  %v728_v57 = vld [vmem:[#allocation6 + $0x8] sm:$0xf] }
 0x2e5   : > { %1529 = vpow2.f32 %v589_v10  ;;  %v585_v12 = vsub.f32 0.0, %v583_v11 }
 0x2e7   : > { %v587_v13 = vmul.f32 1.442695, %v585_v12  ;;  %v1969_v14 = vpop.permute.xlu0 %749  ;;  %v1971_v15 = vpop.permute.xlu1 %709  ;;  %v818_v12 = vld [vmem:[#allocation6 + $0x2c] sm:$0xf] }
 0x2e8   : > { %v711_v49 = vrot.slane %v1971_v15, 2  ;;  %v751_v3 = vrot.slane %v1969_v14, 2 }
 0x2e9   : > { %1531 = vpow2.f32 %v587_v13 }
 0x2ea   : > { %v713_v5 = vsel %vm712_vm11, %v1971_v15, %v711_v49  ;;  %v748_v15 = vld [vmem:[#allocation6 + $0x10] sm:$0xf]  ;;  %vm970_vm11 = vcmask 1039360  }
 0x2eb   : > { %v1973_v16 = vpop.permute.xlu0 %769  ;;  %v730_v17 = vpop.permute.xlu1 %729 }
 0x2ec   : > { %v731_v43 = vrot.slane %v730_v17, 2 }
 0x2ee   : > { %v733_v58 = vsel %vm732_vm9, %v730_v17, %v731_v43  ;;  %vm852_vm9 = vcmask 154624  }
 0x2ef   : > { %v1975_v18 = vpop.permute.xlu0 %789  ;;  %v720_v19 = vpop.permute.xlu1 %719  ;;  %v735_v9 = vmul.f32 %v733_v58, %v728_v57 }
 0x2f0   : > { %v721_v41 = vrot.slane %v720_v19, 2 }
 0x2f2   : > { %v1530_v20 = vpop.eup %1529  ;;  %v723_v52 = vsel %vm722_vm7, %v720_v19, %v721_v41  ;;  %v715_v19 = vmul.f32 %v713_v5, %v689_v4  ;;  %v858_v41 = vld [vmem:[#allocation6 + $0x3c] sm:$0xf]  ;;  %vm921_vm7 = vcmask 23552   ;;  %v788_v5 = vld [vmem:[#allocation6 + $0x20] sm:$0xf] }
 0x2f3   : > { %v592_v21 = vadd.f32 1.0, %v1530_v20  ;;  %v1977_v22 = vpop.permute.xlu0 %809  ;;  %v740_v23 = vpop.permute.xlu1 %739  ;;  %v725_v62 = vmul.f32 %v723_v52, %v718_v51  ;;  %v768_v51 = vld [vmem:[#allocation6 + $0x18] sm:$0xf]  ;;  %v791_v52 = vrot.slane %v1975_v18, 2 }
 0x2f4   : > { %v741_v38 = vrot.slane %v740_v23, 2  ;;  %v811_v58 = vrot.slane %v1977_v22, 2 }
 0x2f5   : > { %1533 = vrcp.f32 %v592_v21 }
 0x2f6   : > { %v1532_v24 = vpop.eup %1531  ;;  %v743_v45 = vsel %vm742_vm6, %v740_v23, %v741_v38  ;;  %vm901_vm6 = vcmask 113664  }
 0x2f7   : > { %v591_v25 = vadd.f32 1.0, %v1532_v24  ;;  %v1979_v26 = vpop.permute.xlu0 %829  ;;  %v760_v27 = vpop.permute.xlu1 %759  ;;  %v745_v56 = vmul.f32 %v743_v45, %v738_v44 }
 0x2f8   : > { %v761_v42 = vrot.slane %v760_v27, 2 }
 0x2f9   : > { %1535 = vrcp.f32 %v591_v25  ;;  %v746_v10 = vadd.f32 %v745_v56, %v725_v62  ;;  %v753_v25 = vsel %vm752_vm13, %v1969_v14, %v751_v3  ;;  %vm990_vm13 = vcmask 1022976  }
 0x2fa   : > { %v763_v54 = vsel %vm762_vm8, %v760_v27, %v761_v42  ;;  %v771_v27 = vrot.slane %v1973_v16, 2  ;;  %v755_v44 = vmul.f32 %v753_v25, %v748_v15  ;;  %vm812_vm8 = vcmask 261120   ;;  %v828_v25 = vld [vmem:[#allocation6 + $0x30] sm:$0xf] }
 0x2fb   : > { %v1981_v28 = vpop.permute.xlu0 %849  ;;  %v780_v29 = vpop.permute.xlu1 %779  ;;  %v765_v63 = vmul.f32 %v763_v54, %v758_v53  ;;  %v878_v53 = vld [vmem:[#allocation6 + $0x44] sm:$0xf] }
 0x2fc   : > { %v781_v46 = vrot.slane %v780_v29, 2 }
 0x2fd   : > { %v766_v20 = vadd.f32 %v765_v63, %v746_v10 }
 0x2fe   : > { %v783_v60 = vsel %vm782_vm10, %v780_v29, %v781_v46  ;;  %v838_v29 = vld [vmem:[#allocation6 + $0x34] sm:$0xf]  ;;  %vm872_vm10 = vcmask 138240  }
 0x2ff   : > { %v1983_v30 = vpop.permute.xlu0 %869  ;;  %v800_v31 = vpop.permute.xlu1 %799  ;;  %v785_v11 = vmul.f32 %v783_v60, %v778_v59  ;;  %v897_v59 = vld [vmem:[#allocation6 + $0x4c] sm:$0xf] }
 0x300   : > { %v801_v55 = vrot.slane %v800_v31, 2 }
 0x302   : > { %v1534_v32 = vpop.eup %1533  ;;  %v803_v7 = vsel %vm802_vm12, %v800_v31, %v801_v55  ;;  %vm911_vm12 = vcmask 105472  }
 0x303   : > { %1235 = vperm.xlu0 %1527, %v1534_v32   ;;  %v1985_v33 = vpop.permute.xlu0 %888  ;;  %v820_v34 = vpop.permute.xlu1 %819  ;;  %v805_v21 = vmul.f32 %v803_v7, %v798_v6  ;;  %v831_v6 = vrot.slane %v1979_v26, 2  ;;  %v917_v7 = vld [vmem:[#allocation6 + $0x54] sm:$0xf] }
 0x304   : > { %v821_v61 = vrot.slane %v820_v34, 2 }
 0x306   : > { %v1536_v35 = vpop.eup %1535  ;;  %v823_v13 = vsel %vm822_vm14, %v820_v34, %v821_v61  ;;  %v736_v34 = vadd.f32 %v735_v9, %v715_v19  ;;  %vm1010_vm14 = vcmask 932864  }
 0x307   : > { %v1987_v36 = vpop.permute.xlu0 %908  ;;  %1230 = vperm.xlu1 %1528, %v1536_v35   ;;  %v840_v37 = vpop.permute.xlu1 %839  ;;  %v786_v35 = vadd.f32 %v785_v11, %v766_v20  ;;  %v825_v38 = vmul.f32 %v823_v13, %v818_v12  ;;  %v808_v11 = vld [vmem:[#allocation6 + $0x28] sm:$0xf]  ;;  %v813_v12 = vsel %vm812_vm8, %v1977_v22, %v811_v58  ;;  %v851_v13 = vrot.slane %v1981_v28, 2 }
 0x308   : > { %v841_v8 = vrot.slane %v840_v37, 2  ;;  %v756_v56 = vadd.f32 %v755_v44, %v736_v34  ;;  %v871_v22 = vrot.slane %v1983_v30, 2  ;;  %vm1040_vm8 = vcmask 908288  }
 0x309   : > { %v806_v45 = vadd.f32 %v805_v21, %v786_v35 }
 0x30a   : > { %v843_v31 = vsel %vm842_vm15, %v840_v37, %v841_v8  ;;  %v773_v37 = vsel %vm772_vm4, %v1973_v16, %v771_v27  ;;  %vm1030_vm15 = vcmask 916480   ;;  %vm1050_vm4 = vcmask 900096  }
 0x30b   : > { %v1989_v39 = vpop.permute.xlu0 %928  ;;  %v1991_v40 = vpop.permute.xlu1 %859  ;;  %v845_v46 = vmul.f32 %v843_v31, %v838_v29  ;;  %v775_v62 = vmul.f32 %v773_v37, %v768_v51  ;;  %v910_v51 = vrot.slane %v1987_v36, 2  ;;  %v958_v37 = vld [vmem:[#allocation6 + $0x64] sm:$0xf] }
 0x30c   : > { %v861_v17 = vrot.slane %v1991_v40, 2 }
 0x30d   : > { %v776_v9 = vadd.f32 %v775_v62, %v756_v56  ;;  %v887_v56 = vld [vmem:[#allocation6 + $0x48] sm:$0xf]  ;;  %v912_v62 = vsel %vm911_vm12, %v1987_v36, %v910_v51  ;;  %vm1150_vm12 = vcmask 670720  }
 0x30e   : > { %v863_v42 = vsel %vm862_vm0, %v1991_v40, %v861_v17  ;;  %v826_v40 = vadd.f32 %v825_v38, %v806_v45  ;;  %v936_v17 = vld [vmem:[#allocation6 + $0x5c] sm:$0xf]  ;;  %v848_v38 = vld [vmem:[#allocation6 + $0x38] sm:$0xf]  ;;  %vm980_vm0 = vcmask 1031168  }
 0x30f   : > { %v1993_v47 = vpop.permute.xlu0 %967  ;;  %v1995_v48 = vpop.permute.xlu1 %879  ;;  %v865_v57 = vmul.f32 %v863_v42, %v858_v41  ;;  %v853_v41 = vsel %vm852_vm9, %v1981_v28, %v851_v13  ;;  %v890_v42 = vrot.slane %v1985_v33, 2  ;;  %vm1110_vm9 = vcmask 777216  }
 0x310   : > { %v881_v32 = vrot.slane %v1995_v48, 2  ;;  %v846_v63 = vadd.f32 %v845_v46, %v826_v40  ;;  %v969_v29 = vrot.slane %v1993_v47, 2  ;;  %v868_v46 = vld [vmem:[#allocation6 + $0x40] sm:$0xf] }
 0x312   : > { %v882_v54 = vsel %vm404_vm2, %v1995_v48, %v881_v32  ;;  %v793_v48 = vsel %vm792_vm5, %v1975_v18, %v791_v52  ;;  %vm832_vm2 = vcmask 244736   ;;  %v815_v32 = vmul.f32 %v813_v12, %v808_v11  ;;  %v1006_v12 = vld [vmem:[#allocation6 + $0x74] sm:$0xf] }
 0x313   : > { %v1998_v0 = vpop.permute.xlu0 %987  ;;  %v899_v1 = vpop.permute.xlu1 %898  ;;  %v884_v16 = vmul.f32 %v882_v54, %v878_v53  ;;  %v795_v20 = vmul.f32 %v793_v48, %v788_v5  ;;  %v833_v27 = vsel %vm832_vm2, %v1979_v26, %v831_v6  ;;  %v971_v28 = vsel %vm970_vm11, %v1993_v47, %v969_v29  ;;  %v907_v47 = vld [vmem:[#allocation6 + $0x50] sm:$0xf]  ;;  %v1026_v29 = vld [vmem:[#allocation6 + $0x7c] sm:$0xf] }
 0x314   : > { %v900_v43 = vrot.slane %v899_v1, 2  ;;  %v989_v52 = vrot.slane %v1998_v0, 2  ;;  %v855_v54 = vmul.f32 %v853_v41, %v848_v38  ;;  %vm1020_vm5 = vcmask 924672  }
 0x315   : > { %v796_v31 = vadd.f32 %v795_v20, %v776_v9  ;;  %vm1060_vm2 = vcmask 891904   ;;  %vm1080_vm11 = vcmask 801792  }
 0x316   : > { %v902_v60 = vsel %vm901_vm6, %v899_v1, %v900_v43  ;;  %v866_v1 = vadd.f32 %v865_v57, %v846_v63  ;;  %v835_v43 = vmul.f32 %v833_v27, %v828_v25  ;;  %v930_v57 = vrot.slane %v1989_v39, 2  ;;  %v986_v63 = vld [vmem:[#allocation6 + $0x6c] sm:$0xf] }
 0x317   : > { %v2005_v23 = vpop.permute.xlu0 %1007  ;;  %v919_v24 = vpop.permute.xlu1 %918  ;;  %v904_v10 = vmul.f32 %v902_v60, %v897_v59  ;;  %v816_v53 = vadd.f32 %v815_v32, %v796_v31  ;;  %v973_v59 = vmul.f32 %v971_v28, %v958_v37  ;;  %v976_v32 = vld [vmem:[#allocation6 + $0x68] sm:$0xf]  ;;  %vm1070_vm6 = vcmask 809984   ;;  %v1046_v37 = vld [vmem:[#allocation6 + $0x84] sm:$0xf] }
 0x318   : > { %v920_v55 = vrot.slane %v919_v24, 2  ;;  %v885_v18 = vadd.f32 %v884_v16, %v866_v1  ;;  %v991_v16 = vsel %vm990_vm13, %v1998_v0, %v989_v52  ;;  %v1009_v5 = vrot.slane %v2005_v23, 2 }
 0x319   : > { %v836_v58 = vadd.f32 %v835_v43, %v816_v53  ;;  %v914_v1 = vmul.f32 %v912_v62, %v907_v47  ;;  %v996_v43 = vld [vmem:[#allocation6 + $0x70] sm:$0xf]  ;;  %v1016_v53 = vld [vmem:[#allocation6 + $0x78] sm:$0xf]  ;;  %v1066_v62 = vld [vmem:[#allocation6 + $0x8c] sm:$0xf] }
 0x31a   : > { %v922_v8 = vsel %vm921_vm7, %v919_v24, %v920_v55  ;;  %v905_v34 = vadd.f32 %v904_v10, %v885_v18  ;;  %v993_v10 = vmul.f32 %v991_v16, %v986_v63  ;;  %v1011_v36 = vsel %vm1010_vm14, %v2005_v23, %v1009_v5  ;;  %v1056_v16 = vld [vmem:[#allocation6 + $0x88] sm:$0xf] }
 0x31b   : > { %v2012_v14 = vpop.permute.xlu0 %1027  ;;  %v938_v49 = vpop.permute.xlu1 %937  ;;  %v924_v21 = vmul.f32 %v922_v8, %v917_v7  ;;  %v856_v48 = vadd.f32 %v855_v54, %v836_v58  ;;  %v927_v7 = vld [vmem:[#allocation6 + $0x58] sm:$0xf]  ;;  %v931_v8 = vsel %vm489_vm3, %v1989_v39, %v930_v57  ;;  %v1013_v27 = vmul.f32 %v1011_v36, %v1006_v12 }
 0x31c   : > { %v939_v61 = vrot.slane %v938_v49, 2  ;;  %v1029_v0 = vrot.slane %v2012_v14, 2  ;;  %vm1000_vm3 = vcmask 941056   ;;  %vm1090_vm7 = vcmask 793600  }
 0x31d   : > { %v925_v44 = vadd.f32 %v924_v21, %v905_v34  ;;  %v945_v21 = vld [vmem:[#allocation6 + $0x60] sm:$0xf]  ;;  %vm1120_vm13 = vcmask 769024   ;;  %vm1140_vm14 = vcmask 678912  }
 0x31e   : > { %v940_v19 = vsel %vm390_vm1, %v938_v49, %v939_v61  ;;  %vm891_vm1 = vcmask 121856   ;;  %v873_v49 = vsel %vm872_vm10, %v1983_v30, %v871_v22  ;;  %v1031_v23 = vsel %vm1030_vm15, %v2012_v14, %v1029_v0 }
 0x31f   : > { %v2019_v3 = vpop.permute.xlu0 %1047  ;;  %v2021_v4 = vpop.permute.xlu1 %977  ;;  %v942_v35 = vmul.f32 %v940_v19, %v936_v17  ;;  %v892_v40 = vsel %vm891_vm1, %v1985_v33, %v890_v42  ;;  %v875_v30 = vmul.f32 %v873_v49, %v868_v46  ;;  %v933_v19 = vmul.f32 %v931_v8, %v927_v7 }
 0x320   : > { %v894_v33 = vmul.f32 %v892_v40, %v887_v56  ;;  %v979_v13 = vrot.slane %v2021_v4, 2  ;;  %v1049_v31 = vrot.slane %v2019_v3, 2  ;;  %v955_v42 = vmul.f32 %v1961_v2, %v945_v21  ;;  %v1036_v40 = vld [vmem:[#allocation6 + $0x80] sm:$0xf] }
 0x321   : > { %v943_v55 = vadd.f32 %v942_v35, %v925_v44  ;;  %v876_v9 = vadd.f32 %v875_v30, %v856_v48  ;;  %v1033_v14 = vmul.f32 %v1031_v23, %v1026_v29  ;;  %vm1130_vm10 = vcmask 760832  }
 0x322   : > { %v981_v34 = vsel %vm980_vm0, %v2021_v4, %v979_v13  ;;  %v1051_v28 = vsel %vm1050_vm4, %v2019_v3, %v1049_v31  ;;  %vm1100_vm1 = vcmask 785408   ;;  %v1086_v13 = vld [vmem:[#allocation6 + $0x94] sm:$0xf]  ;;  %vm1170_vm15 = vcmask 654336   ;;  %v1116_v31 = vld [vmem:[#allocation6 + $0xa0] sm:$0xf] }
 0x323   : > { %v2029_v15 = vpop.permute.xlu0 %1067  ;;  %v2031_v24 = vpop.permute.xlu1 %997  ;;  %v974_v6 = vadd.f32 %v973_v59, %v943_v55  ;;  %v895_v17 = vadd.f32 %v894_v33, %v876_v9  ;;  %v983_v49 = vmul.f32 %v981_v34, %v976_v32  ;;  %v1053_v30 = vmul.f32 %v1051_v28, %v1046_v37  ;;  %v1076_v9 = vld [vmem:[#allocation6 + $0x90] sm:$0xf] }
 0x324   : > { %v999_v39 = vrot.slane %v2031_v24, 2  ;;  %v1069_v52 = vrot.slane %v2029_v15, 2  ;;  %vm1160_vm0 = vcmask 662528   ;;  %vm1180_vm4 = vcmask 646144  }
 0x325   : > { %v994_v20 = vadd.f32 %v993_v10, %v974_v6  ;;  %v915_v25 = vadd.f32 %v914_v1, %v895_v17 }
 0x326   : > { %v1001_v44 = vsel %vm1000_vm3, %v2031_v24, %v999_v39  ;;  %vm1190_vm3 = vcmask 637952  }
 0x327   : > { %v2040_v26 = vpop.permute.xlu0 %1087  ;;  %v2042_v45 = vpop.permute.xlu1 %1017  ;;  %v934_v38 = vadd.f32 %v933_v19, %v915_v25  ;;  %v1014_v41 = vadd.f32 %v1013_v27, %v994_v20  ;;  %v1003_v56 = vmul.f32 %v1001_v44, %v996_v43  ;;  %v1096_v19 = vld [vmem:[#allocation6 + $0x98] sm:$0xf] }
 0x328   : > { %v1019_v35 = vrot.slane %v2042_v45, 2  ;;  %v1089_v63 = vrot.slane %v2040_v26, 2 }
 0x329   : > { %v1034_v54 = vadd.f32 %v1033_v14, %v1014_v41  ;;  %v956_v55 = vadd.f32 %v955_v42, %v934_v38  ;;  %v1126_v42 = vld [vmem:[#allocation6 + $0xa4] sm:$0xf] }
 0x32a   : > { %v1021_v2 = vsel %vm1020_vm5, %v2042_v45, %v1019_v35  ;;  %v1071_v45 = vsel %vm1070_vm6, %v2029_v15, %v1069_v52  ;;  %v1146_v52 = vld [vmem:[#allocation6 + $0xac] sm:$0xf]  ;;  %vm1200_vm5 = vcmask 629760  }
 0x32b   : > { %v2053_v60 = vpop.permute.xlu0 %1107  ;;  %v2055_v61 = vpop.permute.xlu1 %1037  ;;  %v984_v3 = vadd.f32 %v983_v49, %v956_v55  ;;  %v1023_v59 = vmul.f32 %v1021_v2, %v1016_v53  ;;  %v1054_v33 = vadd.f32 %v1053_v30, %v1034_v54  ;;  %v1073_v12 = vmul.f32 %v1071_v45, %v1066_v62  ;;  %v1176_v30 = vld [vmem:[#allocation6 + $0xb8] sm:$0xf] }
 0x32c   : > { %v1039_v46 = vrot.slane %v2055_v61, 2  ;;  %v1109_v8 = vrot.slane %v2053_v60, 2 }
 0x32d   : > { %v1004_v6 = vadd.f32 %v1003_v56, %v984_v3  ;;  %v1074_v21 = vadd.f32 %v1073_v12, %v1054_v33 }
 0x32e   : > { %v1041_v57 = vsel %vm1040_vm8, %v2055_v61, %v1039_v46  ;;  %v1111_v29 = vsel %vm1110_vm9, %v2053_v60, %v1109_v8  ;;  %v1136_v46 = vld [vmem:[#allocation6 + $0xa8] sm:$0xf]  ;;  %v1196_v8 = vld [vmem:[#allocation6 + $0xc0] sm:$0xf] }
 0x32f   : > { %v2063_v11 = vpop.permute.xlu1 %1057  ;;  %v2068_v18 = vpop.permute.xlu0 %1127  ;;  %v1043_v61 = vmul.f32 %v1041_v57, %v1036_v40  ;;  %v1024_v15 = vadd.f32 %v1023_v59, %v1004_v6  ;;  %v1166_v57 = vld [vmem:[#allocation6 + $0xb4] sm:$0xf] }
 0x330   : > { %v1059_v24 = vrot.slane %v2063_v11, 2  ;;  %v1129_v17 = vrot.slane %v2068_v18, 2 }
 0x331   : > { %v1044_v25 = vadd.f32 %v1043_v61, %v1024_v15 }
 0x332   : > { %v1061_v5 = vsel %vm1060_vm2, %v2063_v11, %v1059_v24  ;;  %v1091_v11 = vsel %vm1090_vm7, %v2040_v26, %v1089_v63  ;;  %v1131_v43 = vsel %vm1130_vm10, %v2068_v18, %v1129_v17  ;;  %v1156_v24 = vld [vmem:[#allocation6 + $0xb0] sm:$0xf]  ;;  %v1219_v17 = vsub.s32 0, %v1949_v50 }
 0x333   : > { %v1078_v22 = vpop.permute.xlu1 %1077  ;;  %v2078_v51 = vpop.permute.xlu0 %1147  ;;  %v1063_v36 = vmul.f32 %v1061_v5, %v1056_v16  ;;  %v1093_v26 = vmul.f32 %v1091_v11, %v1086_v13  ;;  %v1133_v55 = vmul.f32 %v1131_v43, %v1126_v42  ;;  %v1542_v43 = vld [vmem:[%s1904_s24 + $0x18] sm:$0xff] }
 0x334   : > { %v1079_v58 = vrot.slane %v1078_v22, 2  ;;  %v1149_v23 = vrot.slane %v2078_v51, 2 }
 0x335   : > { %v1064_v34 = vadd.f32 %v1063_v36, %v1044_v25  ;;  %v1094_v49 = vadd.f32 %v1093_v26, %v1074_v21 }
 0x336   : > { %v1081_v1 = vsel %vm1080_vm11, %v1078_v22, %v1079_v58  ;;  %v1106_v22 = vld [vmem:[#allocation6 + $0x9c] sm:$0xf]  ;;  %v1151_v53 = vsel %vm1150_vm12, %v2078_v51, %v1149_v23 }
 0x337   : > { %v1098_v4 = vpop.permute.xlu1 %1097  ;;  %v1168_v7 = vpop.permute.xlu0 %1167  ;;  %v1083_v27 = vmul.f32 %v1081_v1, %v1076_v9  ;;  %v1186_v51 = vld [vmem:[#allocation6 + $0xbc] sm:$0xf] }
 0x338   : > { %v1099_v48 = vrot.slane %v1098_v4, 2  ;;  %v1169_v44 = vrot.slane %v1168_v7, 2 }
 0x339   : > { %v1084_v37 = vadd.f32 %v1083_v27, %v1064_v34 }
 0x33a   : > { %v1101_v20 = vsel %vm1100_vm1, %v1098_v4, %v1099_v48  ;;  %v1113_v4 = vmul.f32 %v1111_v29, %v1106_v22  ;;  %v1171_v58 = vsel %vm1170_vm15, %v1168_v7, %v1169_v44 }
 0x33b   : > { %v1118_v47 = vpop.permute.xlu1 %1117  ;;  %v1103_v35 = vmul.f32 %v1101_v20, %v1096_v19  ;;  %v1188_v38 = vpop.permute.xlu0 %1187  ;;  %v1173_v48 = vmul.f32 %v1171_v58, %v1166_v57 }
 0x33c   : > { %v1119_v10 = vrot.slane %v1118_v47, 2  ;;  %v1189_v2 = vrot.slane %v1188_v38, 2  ;;  %v1114_v59 = vadd.f32 %v1113_v4, %v1094_v49  ;;  %v1543_v4 = vld [vmem:[%s1904_s24] sm:$0xff] }
 0x33d   : > { %v1104_v18 = vadd.f32 %v1103_v35, %v1084_v37 }
 0x33e   : > { %v1121_v32 = vsel %vm1120_vm13, %v1118_v47, %v1119_v10  ;;  %v1153_v47 = vmul.f32 %v1151_v53, %v1146_v52  ;;  %v1191_v63 = vsel %vm1190_vm3, %v1188_v38, %v1189_v2  ;;  %v1134_v5 = vadd.f32 %v1133_v55, %v1114_v59 }
 0x33f   : > { %v1138_v0 = vpop.permute.xlu1 %1137  ;;  %v1123_v28 = vmul.f32 %v1121_v32, %v1116_v31  ;;  %v1193_v7 = vmul.f32 %v1191_v63, %v1186_v51  ;;  %v1249_v32 = vsub.s32 2, %v1949_v50 }
 0x340   : > { %v1139_v39 = vrot.slane %v1138_v0, 2  ;;  %v1154_v1 = vadd.f32 %v1153_v47, %v1134_v5 }
 0x341   : > { %v1124_v62 = vadd.f32 %v1123_v28, %v1104_v18  ;;  %v1544_v28 = vld [vmem:[%s1904_s24 + $0x8] sm:$0xff] }
 0x342   : > { %v1141_v60 = vsel %vm1140_vm14, %v1138_v0, %v1139_v39  ;;  %v1174_v15 = vadd.f32 %v1173_v48, %v1154_v1 }
 0x343   : > { %v1158_v41 = vpop.permute.xlu1 %1157  ;;  %v1143_v56 = vmul.f32 %v1141_v60, %v1136_v46 }
 0x344   : > { %v1159_v14 = vrot.slane %v1158_v41, 2  ;;  %v1194_v13 = vadd.f32 %v1193_v7, %v1174_v15 }
 0x345   : > { %v1144_v33 = vadd.f32 %v1143_v56, %v1124_v62 }
 0x346   : > { %v1161_v54 = vsel %vm1160_vm0, %v1158_v41, %v1159_v14  ;;  %v1541_v41 = vld [vmem:[%s1904_s24 + $0x10] sm:$0xff]  ;;  %s1727_s24 = smov [#allocation8]  }
 0x347   : > { %v1178_v40 = vpop.permute.xlu1 %1177  ;;  %v1163_v45 = vmul.f32 %v1161_v54, %v1156_v24  ;;  %s1603_s20 = sshll.u32 %s1727_s24, 4  ;;  %s1604_s20 = int_to_ptr.vmem [resolvable:$false] %s1603_s20 }
 0x348   : > { %v1179_v3 = vrot.slane %v1178_v40, 2  ;;  %v1215_v20 = vpop.permute.xlu0 %1214  ;;  %s1605_s17 = scalar_lea.vmem %s1604_s20, 1024  ;;  %p1606_p10 = scmp.lt.s32.totalorder %s2116_s19, %s1604_s20 }
 0x349   : > { %v1164_v10 = vadd.f32 %v1163_v45, %v1144_v33  ;;  %v1220_v21 = vrot.slane %v1215_v20, %v1219_v17  ;;  %p1607_p2 = scmp.lt.s32.totalorder %s1605_s17, %s1599_s14 }
 0x34a   : > { %v1181_v16 = vsel %vm1180_vm4, %v1178_v40, %v1179_v3 }
 0x34b   : > { %v1183_v6 = vmul.f32 %v1181_v16, %v1176_v30  ;;  %v1198_v61 = vpop.permute.xlu1 %1197  ;;  %p1608_p13 = por %p1607_p2, %p1606_p10 }
 0x34c   : > { %v1199_v9 = vrot.slane %v1198_v61, 2 }
 0x34d   : > { %v1184_v36 = vadd.f32 %v1183_v6, %v1164_v10  ;;  %p1609_p0 = pnand %p1608_p13, %p1602_p12 }
 0x34e   : > { %v1201_v12 = vsel %vm1200_vm5, %v1198_v61, %v1199_v9 }
 0x34f   : > { %v1203_v0 = vmul.f32 %v1201_v12, %v1196_v8 }
 0x351   : > { %v1204_v11 = vadd.f32 %v1203_v0, %v1184_v36 }
 0x353   : > { %v1205_v19 = vadd.f32 %v1204_v11, %v1194_v13 }
 0x355   : > { %v1384_v39 = vrot.slane %v1205_v19, 9 }
 0x357   : > { %v1210_v25 = vadd.f32 %v1384_v39, %v1205_v19 }
 0x359   : > { %v1221_v27 = vadd.f32 %v1220_v21, %v1210_v25 }
 0x35b   : > { %v1222_v22 = vsub.f32 0.0, %v1221_v27 }
 0x35d   : > { %v1223_v29 = vmul.f32 1.442695, %v1222_v22 }
 0x35f   : > { %1537 = vpow2.f32 %v1223_v29 }
 0x36c   : > { %v1538_v23 = vpop.eup %1537 }
 0x36d   : > { %v1225_v31 = vadd.f32 1.0, %v1538_v23 }
 0x36f   : > { %1539 = vrcp.f32 %v1225_v31 }
 0x37c   : > { %v1540_v26 = vpop.eup %1539 }
 0x37d   : > { %v1246_v34 = vrot.slane %v1540_v26, %v1219_v17  ;;  %v1250_v35 = vrot.slane %v1540_v26, %v1249_v32 }
 0x37e   : > { %v1236_v38 = vpop.permute.xlu0 %1235 }
 0x37f   : > { %v1240_v42 = vmul.f32 %v1541_v41, %v1236_v38  ;;  %v1241_v44 = vmul.f32 %v1542_v43, %v1236_v38  ;;  %v1256_v46 = vrot.slane %v1246_v34, %v1219_v17  ;;  %v1260_v60 = vrot.slane %v1250_v35, %v1219_v17 }
 0x381   : > { %v1263_v14 = vmul.f32 %v1256_v46, %v1240_v42  ;;  %v1264_v49 = vmul.f32 %v1260_v60, %v1241_v44 }
 0x382   : > { %v1231_v50 = vpop.permute.xlu1 %1230 }
 0x383   : > { %1267 = vst [vmem:[%s368_s10 + $0x10] sm:$0xff] %v1263_v14  ;;  %1268 = vst [vmem:[%s368_s10 + $0x18] sm:$0xff] %v1264_v49  ;;  %v1238_v37 = vmul.f32 %v1543_v4, %v1231_v50  ;;  %v1239_v52 = vmul.f32 %v1544_v28, %v1231_v50 }
 0x385   : > { %v1261_v53 = vmul.f32 %v1256_v46, %v1238_v37  ;;  %v1262_v2 = vmul.f32 %v1260_v60, %v1239_v52 }
 0x387   : > { %1265 = vst [vmem:[%s368_s10] sm:$0xff] %v1261_v53  ;;  %1266 = vst [vmem:[%s368_s10 + $0x8] sm:$0xff] %v1262_v2 }
 0x388   : > { %1612 = shalt.err (!%p1609_p0)
}
 0x389   : > { %s1613_s22 = scalar_lea.hbm %s2121_s27, 512  ;;  %s1617_s10 = scalar_lea.hbm %s2174_s9, 1024 }
 0x38a   : > { %p1614_p5 = scmp.ne.s32.totalorder %s2121_s27, %s1613_s22  ;;  %p1618_p4 = scmp.lt.s32.totalorder %s2121_s27, %s2174_s9 }
 0x38b   : > { %p1619_p6 = scmp.lt.s32.totalorder %s1617_s10, %s1613_s22 }
 0x38c   : > { %p1615_p9 = pnand %p1614_p5, %p2192_p11 }
 0x38d   : > { %p1620_p8 = por %p1619_p6, %p1618_p4 }
 0x38e   : > { %p1616_p1 = pneg %p1615_p9 }
 0x390   : > { %p1621_p3 = pnand %p1620_p8, %p1616_p1 }
 0x392   : > { %1624 = shalt.err (!%p1621_p3)
}
 0x393   : > { %s1728_s26 = smov 256  }
 0x394   : > { %1419 = dma.vmem_to_hbm [thread:$0]  (%p2192_p11), %s2116_s19, 512, %s2121_s27, %s1270_s8, %s1728_s26, %s1728_s26, %s1700_s15  }
 0x395 PF: > { %s1299_s14 = sand.u32 1, %s1655_s6   ;;  %p2193_p7 = scmp.ne.s32.totalorder %s2181_s16, 0 }
 0x396   : > { %p2194_p12 = scmp.ge.s32.totalorder %s1667_s13, 2  ;;  %s1300_s24 = scalar_lea.sflag [#allocation5], %s1299_s14 }
 0x398   : > { %p1430_p10 = pnand %p2194_p12, %p2193_p7 }
 0x39a   : > { %p1431_p2 = pneg %p1430_p10 }
 0x39c   : > { %1650 = dma.done.wait (%p1431_p2), %s1300_s24, 512  }
 0x39d   : > { %1652 = vsyncadd (%p1431_p2), %s1300_s24, 4294966784  ;;  %p25_p13 = scmp.ge.s32.totalorder %s1836_s21, 4   ;;  %s2195_s6 = smov %s1659_s11 }
 0x39e   : > { %s2196_s11 = smov %s1663_s12  ;;  %s2197_s12 = smov %s1853_s29 }
 0x39f   : > { %s2198_s13 = smov %s1836_s21  ;;  %27 = sbr.rel (!%p25_p13) target bundleno = 9 (0x9), region = 153 }
 0x3a4   :  { %1305 = vsyncpa [#allocation4], 1 }
 0x3a5   :  { %1307 = vsyncpa [#allocation4 + $0x1], 1 }
 0x3a6   :  { %1308 = vsyncpa [#allocation7], 1 }
 0x3a7   :  { %1309 = vsyncpa [#allocation5], 1 }
 0x3a8   :  { %1311 = vsyncpa [#allocation5 + $0x1], 1 }

// kernel: tpu_custom_call.1
= control target key start
LH: loop header
LB: loop body
LE: loop exit
PB: predicated region body
PF: predicated region fallthrough
CT: control target
= control target key end

     0   :  { %s2165_s0 = inlined_call_operand.hbm [shape: f32[32,256], index: 0, kind: input, shape index: {}]   ;;  %s2166_s1 = inlined_call_operand.vmem [shape: f32[2,16], index: 1, kind: input, shape index: {}]   ;;  %s2167_s2 = inlined_call_operand.vmem [shape: f32[2,1], index: 2, kind: input, shape index: {}]   ;;  %s2168_s3 = inlined_call_operand.vmem [shape: f32[16,2], index: 3, kind: input, shape index: {}]   ;;  %s2169_s4 = inlined_call_operand.vmem [shape: f32[16,1], index: 4, kind: input, shape index: {}]   ;;  %s2170_s5 = inlined_call_operand.vmem [shape: f32[1,16], index: 5, kind: input, shape index: {}]   ;;  %s2171_s6 = inlined_call_operand.vmem [shape: f32[16,1], index: 6, kind: input, shape index: {}]   ;;  %s2172_s7 = inlined_call_operand.hbm [shape: f32[49,2,256], index: 7, kind: input, shape index: {}]   ;;  %s2173_s8 = inlined_call_operand.<no memory space> [shape: f32[1,1], index: 8, kind: input, shape index: {}]   ;;  %s2174_s9 = inlined_call_operand.hbm [shape: f32[32,256], index: 9, kind: output, shape index: {}]  }
   0x1   :  { %2179 = sst [smem:[#allocation12_spill]] %s2172_s7  ;;  %v14_v0 = vstv %s2173_s8 }
   0x2   :  { %15 = vst [vmem:[#allocation2] sm:$0x1] %v14_v0 }
   0x3   :  { %16 = vsyncpa [#allocation4], 0 }
   0x4   :  { %18 = vsyncpa [#allocation4 + $0x1], 0 }
   0x5   :  { %19 = vsyncpa [#allocation7], 0 }
   0x6   :  { %20 = vsyncpa [#allocation5], 0 }
   0x7   :  { %22 = vsyncpa [#allocation5 + $0x1], 0  ;;  %s1782_s6 = smov 0   ;;  %s1784_s11 = smov 0  }
   0x8   :  { %s1786_s12 = smov 0   ;;  %s1788_s13 = smov 0  }
   0x9 LB: > { %s1803_s8 = sadd.s32 4294967295, %s1667_s13   ;;  %s1367_s14 = sadd.s32 4294967294, %s1667_s13   ;;  %s1667_s13 = sphi %s1788_s13, %s2198_s13   ;;  %s1663_s12 = sphi %s1786_s12, %s2197_s12   ;;  %s1659_s11 = sphi %s1784_s11, %s2196_s11   ;;  %s1655_s6 = sphi %s1782_s6, %s2195_s6  }
   0xa   : > { %p48_p0 = scmp.ne.s32.totalorder %s1659_s11, %s1655_s6  ;;  %p2175_p1 = scmp.eq.s32.totalorder %s1803_s8, 0 }
   0xb   : > { %p246_p3 = scmp.eq.s32.totalorder %s1367_s14, 1  ;;  %p1368_p5 = scmp.ge.s32.totalorder %s1667_s13, 1 }
   0xc   : > { %p1812_p4 = por %p2175_p1, %p48_p0  ;;  %p253_p7 = scmp.lt.s32.totalorder %s1667_s13, 3 }
   0xd   : > { %p1817_p6 = por %p246_p3, %p48_p0  ;;  %s1669_s18 = smov [#allocation6]  }
   0xe   : > { %s2180_s15 = scalar_select %p1812_p4, 1, 0 }
   0xf   : > { %s2181_s16 = scalar_select %p1817_p6, 1, 0 }
  0x10   : > { %p1822_p8 = pnand %p1368_p5, %p253_p7  ;;  %s283_s19 = sshll.u32 %s1669_s18, 4  ;;  %s284_s19 = int_to_ptr.vmem [resolvable:$true] %s283_s19 }
  0x11   : > { %s1836_s21 = sadd.s32 1, %s1667_s13   ;;  %s35_s22 = sadd.s32 1, %s1663_s12 }
  0x12   : > { %s2182_s17 = scalar_select %p1822_p8, 1, 0 }
  0x13   : > { %p1421_p9 = pneg %p1822_p8  ;;  %s32_s23 = ssub.s32 %s1667_s13, %s1836_s21 }
  0x14   : > { %s1556_s24 = scalar_lea.vmem %s284_s19, 3136  ;;  %p1564_p5 = scmp.lt.s32.totalorder %s284_s19, %s284_s19 }
  0x15   : > { %p1831_p11 = pnand %p1421_p9, %p2175_p1  ;;  %p1557_p13 = scmp.ne.s32.totalorder %s284_s19, %s1556_s24 }
  0x16   : > { %p1565_p7 = scmp.lt.s32.totalorder %s1556_s24, %s1556_s24 }
  0x17   : > { %p1547_p12 = pneg %p1831_p11 }
  0x18   : > { %p1566_p10 = por %p1565_p7, %p1564_p5 }
  0x19   : > { %p1559_p0 = pnand %p1557_p13, %p1547_p12 }
  0x1b   : > { %p1560_p3 = pneg %p1559_p0 }
  0x1d   : > { %p1567_p2 = pnand %p1566_p10, %p1560_p3 }
  0x1f   : > { %1570 = shalt.err (!%p1567_p2)
}
  0x20   : > { %s1670_s25 = smov 64   ;;  %s1671_s26 = smov 4  }
  0x21   : > { %s2184_s7 = sld [smem:[#allocation12_spill]]  ;;  %p33_p9 = scmp.eq.s32.totalorder %s32_s23, 0 }
  0x22   : > { %p42_p12 = scmp.ne.s32.totalorder %s1663_s12, %s1659_s11  ;;  %p43_p10 = scmp.eq.s32.totalorder %s1667_s13, 0 }
  0x23   : > { %p1434_p2 = scmp.lt.s32.totalorder %s1667_s13, 2  ;;  %p2185_p0 = scmp.eq.s32.totalorder %s1803_s8, 1 }
  0x24   : > { %s1853_s29 = scalar_select %p33_p9, %s1663_s12, %s35_s22  }
  0x25   : > { %p44_p13 = por %p43_p10, %p42_p12  ;;  %p1857_p3 = por %p2185_p0, %p42_p12 }
  0x26   : > { %s300_s10 = sand.u32 1, %s1663_s12   ;;  %s1392_s14 = sshll.u32 %s1667_s13, 9 }
  0x27   : > { %1424 = dma.hbm_to_vmem [thread:$0]  (!%p1831_p11), %s2184_s7, 3136, %s284_s19, [#allocation7], %s1670_s25, %s1670_s25, %s1671_s26  }
  0x28   : > { %s2186_s30 = scalar_select %p1857_p3, 1, 0 }
  0x29   : > { %s1371_s18 = sshll.u32 %s300_s10, 5  ;;  %s1866_s27 = scalar_lea.hbm %s2165_s0, %s1392_s14 }
  0x2a   : > { %s304_s19 = scalar_lea.vmem [#allocation3], %s1371_s18  ;;  %p1868_p11 = pnand %p1434_p2, %p44_p13 }
  0x2b   : > { %s312_s22 = sshll.u32 %s304_s19, 4  ;;  %s1874_s25 = scalar_lea.sflag [#allocation4], %s300_s10  ;;  %s1872_s22 = int_to_ptr.vmem [resolvable:$true] %s312_s22 }
  0x2c   : > { %s1571_s26 = scalar_lea.hbm %s1866_s27, 512  ;;  %p1573_p7 = pneg %p1868_p11 }
  0x2d   : > { %p1572_p5 = scmp.ne.s32.totalorder %s1866_s27, %s1571_s26  ;;  %s1576_s18 = scalar_lea.hbm %s2165_s0, 1024 }
  0x2e   : > { %p1577_p10 = scmp.lt.s32.totalorder %s1866_s27, %s2165_s0  ;;  %p1578_p2 = scmp.lt.s32.totalorder %s1576_s18, %s1571_s26 }
  0x2f   : > { %p1574_p9 = pnand %p1573_p7, %p1572_p5 }
  0x30   : > { %p1579_p13 = por %p1578_p2, %p1577_p10 }
  0x31   : > { %p1575_p12 = pneg %p1574_p9 }
  0x33   : > { %p1580_p0 = pnand %p1579_p13, %p1575_p12 }
  0x35   : > { %1583 = shalt.err (!%p1580_p0)
}
  0x36   : > { %s1584_s10 = scalar_lea.vmem %s1872_s22, 512  ;;  %s1672_s19 = smov [#allocation3]  }
  0x37   : > { %p1585_p1 = scmp.ne.s32.totalorder %s1872_s22, %s1584_s10  ;;  %s1589_s7 = sshll.u32 %s1672_s19, 4  ;;  %s1590_s7 = int_to_ptr.vmem [resolvable:$false] %s1589_s7 }
  0x38   : > { %s1591_s28 = scalar_lea.vmem %s1590_s7, 1024  ;;  %p1592_p9 = scmp.lt.s32.totalorder %s1872_s22, %s1590_s7 }
  0x39   : > { %p1587_p6 = pnand %p1585_p1, %p1573_p7  ;;  %p1593_p3 = scmp.lt.s32.totalorder %s1591_s28, %s1584_s10 }
  0x3b   : > { %p1588_p5 = pneg %p1587_p6  ;;  %p1594_p4 = por %p1593_p3, %p1592_p9 }
  0x3d   : > { %p1595_p8 = pnand %p1594_p4, %p1588_p5 }
  0x3f   : > { %1598 = shalt.err (!%p1595_p8)
}
  0x40   : > { %s1673_s26 = smov 256   ;;  %s1674_s14 = smov 16  }
  0x41   : > { %1428 = dma.hbm_to_vmem [thread:$0]  (!%p1868_p11), %s1866_s27, 512, %s1872_s22, %s1874_s25, %s1673_s26, %s1673_s26, %s1674_s14  }
  0x42   : > { %p2188_p1 = scmp.ne.s32.totalorder %s2182_s17, 0 }
  0x43   : > { %s1898_s18 = sand.u32 (!%p2188_p1), 1, %s1659_s11   ;;  %p2189_p4 = scmp.ne.s32.totalorder (!%p2188_p1), %s2180_s15, 0 }
  0x44   : > { %324 = sbr.rel (%p2188_p1) target bundleno = 917 (0x395), region = 56  ;;  %s1376_s7 = sshll.u32 (!%p2188_p1), %s1898_s18, 5 }
  0x45   : > { %s327_s20 = scalar_lea.sflag (!%p2188_p1), [#allocation4], %s1898_s18  ;;  %s1904_s24 = scalar_lea.vmem (!%p2188_p1), [#allocation3], %s1376_s7 }
  0x49   : > { %1642 = dma.done.wait (%p2189_p4), %s327_s20, 512  }
  0x4a   : > { %1644 = vsyncadd (%p2189_p4), %s327_s20, 4294966784  ;;  %p2190_p6 = scmp.eq.s32.totalorder %s1803_s8, 0 }
  0x4c   : > { %1646 = dma.done.wait (%p2190_p6), [#allocation7], 3136   ;;  %p2191_p8 = pmov %p2190_p6 }
  0x4d   : > { %v373_v1 = vld [vmem:[%s1904_s24 + $0x10] sm:$0xff]  ;;  %v374_v2 = vld [vmem:[%s1904_s24 + $0x18] sm:$0xff]  ;;  %v371_v3 = vld [vmem:[%s1904_s24] sm:$0xff]  ;;  %v1675_v9 = vmov 0.0   ;;  %vm1676_vm0 = vmmov 0   ;;  %v1677_v10 = vmov 0   ;;  %v697_v44 = vlaneseq }
  0x4e   : > { %1648 = vsyncadd (%p2191_p8), [#allocation7], 4294964160  ;;  %v378_v4 = vadd.f32 %v374_v2, %v373_v1  ;;  %v387_v5 = vmax.f32 %v373_v1, %v374_v2  ;;  %v372_v6 = vld [vmem:[%s1904_s24 + $0x8] sm:$0xff]  ;;  %1401 = vmatprep.subr.mxu0 %v1675_v9  ;;  %1405 = vmatprep.mubr.msk.f32.mxu0 %vm1676_vm0, %v1675_v9  ;;  %v394_v11 = vld [vmem:[%s2167_s2] sm:$0x3]  ;;  %vm390_vm1 = vcmask 7168   ;;  %v672_v31 = vmax.f32 %v371_v3, %v373_v1 }
  0x4f   : > { %v375_v7 = vadd.f32 %v372_v6, %v371_v3  ;;  %v384_v8 = vmax.f32 %v371_v3, %v372_v6  ;;  %1527 = vset.pattern.permute.xlu0 %v1677_v10  ;;  %1528 = vset.pattern.permute.xlu1 %v1677_v10  ;;  %v393_v19 = vld [vmem:[%s2166_s1] sm:$0x3]  ;;  %vm404_vm2 = vcmask 130048   ;;  %vm489_vm3 = vcmask 15360   ;;  %v398_v23 = vld [vmem:[%s2169_s4 + $0x8] sm:$0xff]  ;;  %s1679_s27 = smov 127  }
  0x50   : > { %379 = vadd.xlane.f32.xlu0 %v378_v4  ;;  %388 = vmax.xlane.f32.xlu1 %v387_v5  ;;  %v395_v21 = vld [vmem:[%s2168_s3] sm:$0xff]  ;;  %vm496_vm4 = vcmask 1041408   ;;  %v396_v29 = vld [vmem:[%s2168_s3 + $0x8] sm:$0xff]  ;;  %v679_v32 = vmax.f32 %v372_v6, %v374_v2  ;;  %v673_v33 = vrot.slane %v672_v31, 4  ;;  %v1678_v42 = vmov 1983009808  }
  0x51   : > { %1410 = vmatprep.mubr.msk.f32.mxu1 %vm489_vm3, %v395_v21  ;;  %v397_v22 = vld [vmem:[%s2169_s4] sm:$0xff]  ;;  %v695_v43 = vunpack.c.l.s4 %v1678_v42  ;;  %v1949_v50 = vshrl.u32 %v697_v44, 7  ;;  %vm686_vm5 = vcmask 1040384   ;;  %s1680_s22 = smov 47   ;;  %s1681_s23 = smov 51   ;;  %vm742_vm6 = vcmask 392192  }
  0x52   : > { %v597_v30 = vld [vmem:[%s2170_s5] sm:$0x1]  ;;  %v680_v34 = vrot.slane %v679_v32, 4  ;;  %v674_v35 = vmax.f32 %v672_v31, %v673_v33  ;;  %s1682_s25 = smov 45   ;;  %s1683_s10 = smov 49   ;;  %vm722_vm7 = vcmask 408576  }
  0x53   : > { %v696_v49 = vunpack.c.0.s8 %v695_v43  ;;  %s1684_s19 = smov 34   ;;  %s1685_s28 = smov 50   ;;  %v1211_v5 = vld [vmem:[#allocation2] sm:$0x1]  ;;  %vm762_vm8 = vcmask 375808   ;;  %vm732_vm9 = vcmask 400384  }
  0x54   : > { %376 = vadd.xlane.f32.xlu0 %v375_v7  ;;  %385 = vmax.xlane.f32.xlu1 %v384_v8  ;;  %v681_v36 = vmax.f32 %v679_v32, %v680_v34  ;;  %v675_v37 = vrot.slane %v674_v35, 2  ;;  %s1686_s26 = smov 32   ;;  %s1687_s14 = smov 48   ;;  %v738_v44 = vld [vmem:[#allocation6 + $0xc] sm:$0xf]  ;;  %vm782_vm10 = vcmask 285696  }
  0x55   : > { %v699_v56 = vsub.s32 %v696_v49, %v1949_v50  ;;  %s1688_s20 = smov 30   ;;  %s1689_s15 = smov 46   ;;  %vm712_vm11 = vcmask 416768   ;;  %vm802_vm12 = vcmask 269312   ;;  %vm752_vm13 = vcmask 384000  }
  0x56   : > { %v682_v38 = vrot.slane %v681_v36, 2  ;;  %v676_v39 = vmax.f32 %v674_v35, %v675_v37  ;;  %s1690_s17 = smov 19   ;;  %vm822_vm14 = vcmask 252928   ;;  %vm842_vm15 = vcmask 236544   ;;  %p2192_p11 = scmp.ne.s32.totalorder %s2186_s30, 0 }
  0x57   : > { %vm862_vm0 = vcmask 146432  }
  0x58   : > { %v683_v41 = vmax.f32 %v681_v36, %v682_v38  ;;  %v677_v45 = vrot.slane %v676_v39, 1 }
  0x5a   : > { %v684_v46 = vrot.slane %v683_v41, 1  ;;  %v678_v52 = vmax.f32 %v676_v39, %v677_v45 }
  0x5c   : > { %v685_v54 = vmax.f32 %v683_v41, %v684_v46 }
  0x65   : > { %481 = vperm.xlu1 %1528, %v397_v22  }
  0x69   : > { %486 = vperm.xlu1 %1528, %v398_v23  }
  0x6a   : > { %401 = vperm.xlu0 %1527, %v394_v11  }
  0xd9   : > { %v380_v12 = vpop.xlane.xlu0 %379  ;;  %v389_v13 = vpop.xlane.xlu1 %388 }
  0xda   : > { %v383_v14 = vmul.f32 0.00390625, %v380_v12 }
  0xdc   : > { %v392_v15 = vsel %vm390_vm1, %v383_v14, %v389_v13 }
  0xdd   : > { %1402 = vmatpush3.msra.mxu0 %v392_v15  ;;  %v377_v16 = vpop.xlane.xlu0 %376  ;;  %v386_v17 = vpop.xlane.xlu1 %385 }
  0xde   : > { %v382_v18 = vmul.f32 0.00390625, %v377_v16  ;;  %1403 = vmatprep.subr.mxu0 %v1675_v9 }
  0xe0   : > { %v391_v20 = vsel %vm390_vm1, %v382_v18, %v386_v17 }
  0xe1   : > { %1404 = vmatpush3.msra.mxu0 %v391_v20  ;;  %v482_v40 = vpop.permute.xlu1 %481 }
  0xe2   : > { %1406 = vmatmul.mubr.msk.f32.vlgmr.msra.gmra.mxu0 %vm404_vm2, %v393_v19 }
  0xe5   : > { %v402_v24 = vpop.permute.xlu0 %401  ;;  %v487_v47 = vpop.permute.xlu1 %486 }
 0x1a2   : > { %v474_v25 = vpop.f32.mrf.mxu0 }
 0x1a3   : > { %v475_v26 = vadd.f32 %v474_v25, %v402_v24 }
 0x1a4   : > { %v1407_v27 = vpop.f32.mrf.mxu0 }
 0x1a5   : > { %v478_v28 = vmax.f32 %v475_v26, 0.0 }
 0x1a7   : > { %1408 = vmatprep.subr.msk.mxu1 %vm496_vm4, %v478_v28 }
 0x1a8   : > { %1409 = vmatpush3.msk.msra.mxu1 %vm496_vm4, %v478_v28  ;;  %vm772_vm4 = vcmask 367616  }
 0x1a9   : > { %1411 = vmatmul.mubr.msk.f32.vlgmr.msra.gmra.mxu1 %vm489_vm3, %v396_v29  ;;  %629 = vmatprep.subr.mxu1 %v374_v2 }
 0x1aa   : > { %630 = vmatpush1.msra.mxu1 %v373_v1  ;;  %665 = vmatprep.mubr.f32.mxu1 %v1675_v9 }
 0x1ab   : > { %631 = vmatprep.subr.mxu1 %v372_v6 }
 0x1ac   : > { %632 = vmatpush1.msra.mxu1 %v371_v3  ;;  %v965_v3 = vrot.slane %v1675_v9, %v699_v56 }
 0x1ad   : > { %1383 = vmatmul.mubr.msk.f32.vlgmr.msra.gmra.mxu1 %vm404_vm2, %v597_v30 }
 0x269   : > { %v1412_v48 = vpop.f32.mrf.mxu1 }
 0x26a   : > { %v1951_v51 = vadd.f32 %v1412_v48, %v487_v47 }
 0x26b   : > { %v566_v53 = vpop.f32.mrf.mxu1 }
 0x26c   : > { %579 = vrot.lane.b32.xlu1 %v1951_v51, %s1679_s27  ;;  %v1956_v57 = vadd.f32 %v566_v53, %v482_v40  ;;  %v758_v53 = vld [vmem:[#allocation6 + $0x14] sm:$0xf] }
 0x26d   : > { %v667_v55 = vpop.f32.mrf.mxu1 }
 0x26e   : > { %v687_v58 = vsel %vm686_vm5, %v667_v55, %v678_v52 }
 0x26f   : > { %v693_v59 = vcombine.low %v1675_v9, %v687_v58  ;;  %v669_v60 = vpop.f32.mrf.mxu1 }
 0x270   : > { %v688_v61 = vsel %vm686_vm5, %v669_v60, %v685_v54  ;;  %577 = vrot.lane.b32.xlu1 %v1956_v57, %s1679_s27  ;;  %vm792_vm5 = vcmask 277504  }
 0x271   : > { %v700_v62 = vrot.slane %v693_v59, %v699_v56  ;;  %v707_v63 = vrot.slane %v688_v61, %v699_v56  ;;  %v946_v1 = vcombine.low %v687_v58, %v688_v61  ;;  %v778_v59 = vld [vmem:[#allocation6 + $0x1c] sm:$0xf] }
 0x273   : > { %v708_v0 = vcombine.low %v700_v62, %v707_v63  ;;  %v1961_v2 = vrot.slane %v946_v1, %v699_v56 }
 0x275   : > { %749 = vrot.lane.b32.xlu0 %v708_v0, %s1680_s22  ;;  %709 = vrot.lane.b32.xlu1 %v708_v0, %s1681_s23  ;;  %s1691_s22 = smov 35   ;;  %s1692_s23 = smov 17   ;;  %v966_v4 = vcombine.low %v1961_v2, %v965_v3 }
 0x279   : > { %769 = vrot.lane.b32.xlu0 %v708_v0, %s1682_s25  ;;  %729 = vrot.lane.b32.xlu1 %v708_v0, %s1683_s10  ;;  %s1693_s25 = smov 33   ;;  %s1694_s10 = smov 15  }
 0x27d   : > { %789 = vrot.lane.b32.xlu0 %v708_v0, %s1684_s19  ;;  %719 = vrot.lane.b32.xlu1 %v708_v0, %s1685_s28  ;;  %s1695_s19 = smov 31   ;;  %s1696_s28 = smov 13  }
 0x281   : > { %809 = vrot.lane.b32.xlu0 %v708_v0, %s1686_s26  ;;  %739 = vrot.lane.b32.xlu1 %v708_v0, %s1687_s14  ;;  %s1697_s26 = smov 29   ;;  %s1698_s14 = smov 2  }
 0x285   : > { %829 = vrot.lane.b32.xlu0 %v708_v0, %s1688_s20  ;;  %759 = vrot.lane.b32.xlu1 %v708_v0, %s1689_s15  ;;  %s1699_s20 = smov 18   ;;  %s1700_s15 = smov 16  }
 0x289   : > { %849 = vrot.lane.b32.xlu0 %v708_v0, %s1690_s17  ;;  %779 = vrot.lane.b32.xlu1 %v708_v0, %s1691_s22  ;;  %s1701_s17 = smov 125   ;;  %s1702_s22 = smov 14  }
 0x28d   : > { %869 = vrot.lane.b32.xlu0 %v708_v0, %s1692_s23  ;;  %799 = vrot.lane.b32.xlu1 %v708_v0, %s1693_s25  ;;  %s1703_s23 = smov 114   ;;  %s1704_s25 = smov 3  }
 0x291   : > { %888 = vrot.lane.b32.xlu0 %v708_v0, %s1694_s10  ;;  %819 = vrot.lane.b32.xlu1 %v708_v0, %s1695_s19  ;;  %s1705_s10 = smov 112   ;;  %s1706_s19 = smov 1  }
 0x295   : > { %908 = vrot.lane.b32.xlu0 %v708_v0, %s1696_s28  ;;  %839 = vrot.lane.b32.xlu1 %v708_v0, %s1697_s26  ;;  %s1707_s28 = smov 110   ;;  %s1708_s26 = smov 126  }
 0x299   : > { %928 = vrot.lane.b32.xlu0 %v708_v0, %s1698_s14  ;;  %859 = vrot.lane.b32.xlu1 %v708_v0, %s1699_s20  ;;  %s1710_s14 = smov 115   ;;  %s1711_s20 = smov 97  }
 0x29d   : > { %967 = vrot.lane.b32.xlu0 %v966_v4, %s1679_s27  ;;  %879 = vrot.lane.b32.xlu1 %v708_v0, %s1700_s15  ;;  %s1709_s27 = smov 99  }
 0x2a1   : > { %987 = vrot.lane.b32.xlu0 %v966_v4, %s1701_s17  ;;  %898 = vrot.lane.b32.xlu1 %v708_v0, %s1702_s22  ;;  %s1712_s17 = smov 113   ;;  %s1713_s22 = smov 95  }
 0x2a5   : > { %1007 = vrot.lane.b32.xlu0 %v966_v4, %s1703_s23  ;;  %918 = vrot.lane.b32.xlu1 %v708_v0, %s1704_s25  ;;  %s1714_s23 = smov 111   ;;  %s1715_s25 = smov 93  }
 0x2a9   : > { %1027 = vrot.lane.b32.xlu0 %v966_v4, %s1705_s10  ;;  %937 = vrot.lane.b32.xlu1 %v708_v0, %s1706_s19  ;;  %s1716_s10 = smov 109   ;;  %s1717_s19 = smov 82  }
 0x2ad   : > { %1047 = vrot.lane.b32.xlu0 %v966_v4, %s1707_s28  ;;  %977 = vrot.lane.b32.xlu1 %v966_v4, %s1708_s26  ;;  %s1718_s28 = smov 98   ;;  %s1719_s26 = smov 80  }
 0x2b1   : > { %1067 = vrot.lane.b32.xlu0 %v966_v4, %s1709_s27  ;;  %997 = vrot.lane.b32.xlu1 %v966_v4, %s1710_s14  ;;  %s1720_s27 = smov 96   ;;  %s1721_s14 = smov 78  }
 0x2b5   : > { %1087 = vrot.lane.b32.xlu0 %v966_v4, %s1711_s20  ;;  %1017 = vrot.lane.b32.xlu1 %v966_v4, %s1712_s17  ;;  %s1722_s20 = smov 94   ;;  %s1723_s17 = smov 83  }
 0x2b9   : > { %1107 = vrot.lane.b32.xlu0 %v966_v4, %s1713_s22  ;;  %1037 = vrot.lane.b32.xlu1 %v966_v4, %s1714_s23  ;;  %s1724_s22 = smov 81   ;;  %s1725_s23 = smov 79  }
 0x2bd   : > { %1127 = vrot.lane.b32.xlu0 %v966_v4, %s1715_s25  ;;  %1057 = vrot.lane.b32.xlu1 %v966_v4, %s1716_s10  ;;  %s1726_s25 = smov 77   ;;  %s368_s10 = scalar_lea.vmem [#allocation8], %s1376_s7 }
 0x2c1   : > { %1147 = vrot.lane.b32.xlu0 %v966_v4, %s1717_s19  ;;  %1077 = vrot.lane.b32.xlu1 %v966_v4, %s1718_s28  ;;  %s1284_s19 = sshll.u32 %s368_s10, 4  ;;  %s1394_s28 = sshll.u32 %s1803_s8, 9  ;;  %s2116_s19 = int_to_ptr.vmem [resolvable:$true] %s1284_s19 }
 0x2c2   : > { %s1270_s8 = scalar_lea.sflag [#allocation5], %s1898_s18 }
 0x2c5   : > { %1167 = vrot.lane.b32.xlu0 %v966_v4, %s1719_s26  ;;  %1097 = vrot.lane.b32.xlu1 %v966_v4, %s1720_s27  ;;  %s2121_s27 = scalar_lea.hbm %s2174_s9, %s1394_s28 }
 0x2c9   : > { %1187 = vrot.lane.b32.xlu0 %v966_v4, %s1721_s14  ;;  %1117 = vrot.lane.b32.xlu1 %v966_v4, %s1722_s20  ;;  %s1599_s14 = scalar_lea.vmem %s2116_s19, 512 }
 0x2ca   : > { %p1600_p3 = scmp.ne.s32.totalorder %s2116_s19, %s1599_s14 }
 0x2cc   : > { %p1601_p7 = pnand %p1600_p3, %p2192_p11 }
 0x2cd   : > { %1214 = vperm.xlu0 %1527, %v1211_v5   ;;  %1137 = vrot.lane.b32.xlu1 %v966_v4, %s1723_s17 }
 0x2ce   : > { %p1602_p12 = pneg %p1601_p7 }
 0x2d1   : > { %1157 = vrot.lane.b32.xlu1 %v966_v4, %s1724_s22 }
 0x2d5   : > { %1177 = vrot.lane.b32.xlu1 %v966_v4, %s1725_s23 }
 0x2d9   : > { %1197 = vrot.lane.b32.xlu1 %v966_v4, %s1726_s25  ;;  %v689_v4 = vld [vmem:[#allocation6] sm:$0xf] }
 0x2de   : > { %v580_v6 = vpop.permute.xlu1 %579 }
 0x2df   : > { %v584_v7 = vadd.f32 %v580_v6, %v1951_v51  ;;  %v718_v51 = vld [vmem:[#allocation6 + $0x4] sm:$0xf] }
 0x2e0   : > { %v798_v6 = vld [vmem:[#allocation6 + $0x24] sm:$0xf] }
 0x2e1   : > { %v586_v8 = vsub.f32 0.0, %v584_v7 }
 0x2e2   : > { %v578_v9 = vpop.permute.xlu1 %577 }
 0x2e3   : > { %v589_v10 = vmul.f32 1.442695, %v586_v8  ;;  %v583_v11 = vadd.f32 %v578_v9, %v1956_v57  ;;  %v728_v57 = vld [vmem:[#allocation6 + $0x8] sm:$0xf] }
 0x2e5   : > { %1529 = vpow2.f32 %v589_v10  ;;  %v585_v12 = vsub.f32 0.0, %v583_v11 }
 0x2e7   : > { %v587_v13 = vmul.f32 1.442695, %v585_v12  ;;  %v1969_v14 = vpop.permute.xlu0 %749  ;;  %v1971_v15 = vpop.permute.xlu1 %709  ;;  %v818_v12 = vld [vmem:[#allocation6 + $0x2c] sm:$0xf] }
 0x2e8   : > { %v711_v49 = vrot.slane %v1971_v15, 2  ;;  %v751_v3 = vrot.slane %v1969_v14, 2 }
 0x2e9   : > { %1531 = vpow2.f32 %v587_v13 }
 0x2ea   : > { %v713_v5 = vsel %vm712_vm11, %v1971_v15, %v711_v49  ;;  %v748_v15 = vld [vmem:[#allocation6 + $0x10] sm:$0xf]  ;;  %vm970_vm11 = vcmask 1039360  }
 0x2eb   : > { %v1973_v16 = vpop.permute.xlu0 %769  ;;  %v730_v17 = vpop.permute.xlu1 %729 }
 0x2ec   : > { %v731_v43 = vrot.slane %v730_v17, 2 }
 0x2ee   : > { %v733_v58 = vsel %vm732_vm9, %v730_v17, %v731_v43  ;;  %vm852_vm9 = vcmask 154624  }
 0x2ef   : > { %v1975_v18 = vpop.permute.xlu0 %789  ;;  %v720_v19 = vpop.permute.xlu1 %719  ;;  %v735_v9 = vmul.f32 %v733_v58, %v728_v57 }
 0x2f0   : > { %v721_v41 = vrot.slane %v720_v19, 2 }
 0x2f2   : > { %v1530_v20 = vpop.eup %1529  ;;  %v723_v52 = vsel %vm722_vm7, %v720_v19, %v721_v41  ;;  %v715_v19 = vmul.f32 %v713_v5, %v689_v4  ;;  %v858_v41 = vld [vmem:[#allocation6 + $0x3c] sm:$0xf]  ;;  %vm921_vm7 = vcmask 23552   ;;  %v788_v5 = vld [vmem:[#allocation6 + $0x20] sm:$0xf] }
 0x2f3   : > { %v592_v21 = vadd.f32 1.0, %v1530_v20  ;;  %v1977_v22 = vpop.permute.xlu0 %809  ;;  %v740_v23 = vpop.permute.xlu1 %739  ;;  %v725_v62 = vmul.f32 %v723_v52, %v718_v51  ;;  %v768_v51 = vld [vmem:[#allocation6 + $0x18] sm:$0xf]  ;;  %v791_v52 = vrot.slane %v1975_v18, 2 }
 0x2f4   : > { %v741_v38 = vrot.slane %v740_v23, 2  ;;  %v811_v58 = vrot.slane %v1977_v22, 2 }
 0x2f5   : > { %1533 = vrcp.f32 %v592_v21 }
 0x2f6   : > { %v1532_v24 = vpop.eup %1531  ;;  %v743_v45 = vsel %vm742_vm6, %v740_v23, %v741_v38  ;;  %vm901_vm6 = vcmask 113664  }
 0x2f7   : > { %v591_v25 = vadd.f32 1.0, %v1532_v24  ;;  %v1979_v26 = vpop.permute.xlu0 %829  ;;  %v760_v27 = vpop.permute.xlu1 %759  ;;  %v745_v56 = vmul.f32 %v743_v45, %v738_v44 }
 0x2f8   : > { %v761_v42 = vrot.slane %v760_v27, 2 }
 0x2f9   : > { %1535 = vrcp.f32 %v591_v25  ;;  %v746_v10 = vadd.f32 %v745_v56, %v725_v62  ;;  %v753_v25 = vsel %vm752_vm13, %v1969_v14, %v751_v3  ;;  %vm990_vm13 = vcmask 1022976  }
 0x2fa   : > { %v763_v54 = vsel %vm762_vm8, %v760_v27, %v761_v42  ;;  %v771_v27 = vrot.slane %v1973_v16, 2  ;;  %v755_v44 = vmul.f32 %v753_v25, %v748_v15  ;;  %vm812_vm8 = vcmask 261120   ;;  %v828_v25 = vld [vmem:[#allocation6 + $0x30] sm:$0xf] }
 0x2fb   : > { %v1981_v28 = vpop.permute.xlu0 %849  ;;  %v780_v29 = vpop.permute.xlu1 %779  ;;  %v765_v63 = vmul.f32 %v763_v54, %v758_v53  ;;  %v878_v53 = vld [vmem:[#allocation6 + $0x44] sm:$0xf] }
 0x2fc   : > { %v781_v46 = vrot.slane %v780_v29, 2 }
 0x2fd   : > { %v766_v20 = vadd.f32 %v765_v63, %v746_v10 }
 0x2fe   : > { %v783_v60 = vsel %vm782_vm10, %v780_v29, %v781_v46  ;;  %v838_v29 = vld [vmem:[#allocation6 + $0x34] sm:$0xf]  ;;  %vm872_vm10 = vcmask 138240  }
 0x2ff   : > { %v1983_v30 = vpop.permute.xlu0 %869  ;;  %v800_v31 = vpop.permute.xlu1 %799  ;;  %v785_v11 = vmul.f32 %v783_v60, %v778_v59  ;;  %v897_v59 = vld [vmem:[#allocation6 + $0x4c] sm:$0xf] }
 0x300   : > { %v801_v55 = vrot.slane %v800_v31, 2 }
 0x302   : > { %v1534_v32 = vpop.eup %1533  ;;  %v803_v7 = vsel %vm802_vm12, %v800_v31, %v801_v55  ;;  %vm911_vm12 = vcmask 105472  }
 0x303   : > { %1235 = vperm.xlu0 %1527, %v1534_v32   ;;  %v1985_v33 = vpop.permute.xlu0 %888  ;;  %v820_v34 = vpop.permute.xlu1 %819  ;;  %v805_v21 = vmul.f32 %v803_v7, %v798_v6  ;;  %v831_v6 = vrot.slane %v1979_v26, 2  ;;  %v917_v7 = vld [vmem:[#allocation6 + $0x54] sm:$0xf] }
 0x304   : > { %v821_v61 = vrot.slane %v820_v34, 2 }
 0x306   : > { %v1536_v35 = vpop.eup %1535  ;;  %v823_v13 = vsel %vm822_vm14, %v820_v34, %v821_v61  ;;  %v736_v34 = vadd.f32 %v735_v9, %v715_v19  ;;  %vm1010_vm14 = vcmask 932864  }
 0x307   : > { %v1987_v36 = vpop.permute.xlu0 %908  ;;  %1230 = vperm.xlu1 %1528, %v1536_v35   ;;  %v840_v37 = vpop.permute.xlu1 %839  ;;  %v786_v35 = vadd.f32 %v785_v11, %v766_v20  ;;  %v825_v38 = vmul.f32 %v823_v13, %v818_v12  ;;  %v808_v11 = vld [vmem:[#allocation6 + $0x28] sm:$0xf]  ;;  %v813_v12 = vsel %vm812_vm8, %v1977_v22, %v811_v58  ;;  %v851_v13 = vrot.slane %v1981_v28, 2 }
 0x308   : > { %v841_v8 = vrot.slane %v840_v37, 2  ;;  %v756_v56 = vadd.f32 %v755_v44, %v736_v34  ;;  %v871_v22 = vrot.slane %v1983_v30, 2  ;;  %vm1040_vm8 = vcmask 908288  }
 0x309   : > { %v806_v45 = vadd.f32 %v805_v21, %v786_v35 }
 0x30a   : > { %v843_v31 = vsel %vm842_vm15, %v840_v37, %v841_v8  ;;  %v773_v37 = vsel %vm772_vm4, %v1973_v16, %v771_v27  ;;  %vm1030_vm15 = vcmask 916480   ;;  %vm1050_vm4 = vcmask 900096  }
 0x30b   : > { %v1989_v39 = vpop.permute.xlu0 %928  ;;  %v1991_v40 = vpop.permute.xlu1 %859  ;;  %v845_v46 = vmul.f32 %v843_v31, %v838_v29  ;;  %v775_v62 = vmul.f32 %v773_v37, %v768_v51  ;;  %v910_v51 = vrot.slane %v1987_v36, 2  ;;  %v958_v37 = vld [vmem:[#allocation6 + $0x64] sm:$0xf] }
 0x30c   : > { %v861_v17 = vrot.slane %v1991_v40, 2 }
 0x30d   : > { %v776_v9 = vadd.f32 %v775_v62, %v756_v56  ;;  %v887_v56 = vld [vmem:[#allocation6 + $0x48] sm:$0xf]  ;;  %v912_v62 = vsel %vm911_vm12, %v1987_v36, %v910_v51  ;;  %vm1150_vm12 = vcmask 670720  }
 0x30e   : > { %v863_v42 = vsel %vm862_vm0, %v1991_v40, %v861_v17  ;;  %v826_v40 = vadd.f32 %v825_v38, %v806_v45  ;;  %v936_v17 = vld [vmem:[#allocation6 + $0x5c] sm:$0xf]  ;;  %v848_v38 = vld [vmem:[#allocation6 + $0x38] sm:$0xf]  ;;  %vm980_vm0 = vcmask 1031168  }
 0x30f   : > { %v1993_v47 = vpop.permute.xlu0 %967  ;;  %v1995_v48 = vpop.permute.xlu1 %879  ;;  %v865_v57 = vmul.f32 %v863_v42, %v858_v41  ;;  %v853_v41 = vsel %vm852_vm9, %v1981_v28, %v851_v13  ;;  %v890_v42 = vrot.slane %v1985_v33, 2  ;;  %vm1110_vm9 = vcmask 777216  }
 0x310   : > { %v881_v32 = vrot.slane %v1995_v48, 2  ;;  %v846_v63 = vadd.f32 %v845_v46, %v826_v40  ;;  %v969_v29 = vrot.slane %v1993_v47, 2  ;;  %v868_v46 = vld [vmem:[#allocation6 + $0x40] sm:$0xf] }
 0x312   : > { %v882_v54 = vsel %vm404_vm2, %v1995_v48, %v881_v32  ;;  %v793_v48 = vsel %vm792_vm5, %v1975_v18, %v791_v52  ;;  %vm832_vm2 = vcmask 244736   ;;  %v815_v32 = vmul.f32 %v813_v12, %v808_v11  ;;  %v1006_v12 = vld [vmem:[#allocation6 + $0x74] sm:$0xf] }
 0x313   : > { %v1998_v0 = vpop.permute.xlu0 %987  ;;  %v899_v1 = vpop.permute.xlu1 %898  ;;  %v884_v16 = vmul.f32 %v882_v54, %v878_v53  ;;  %v795_v20 = vmul.f32 %v793_v48, %v788_v5  ;;  %v833_v27 = vsel %vm832_vm2, %v1979_v26, %v831_v6  ;;  %v971_v28 = vsel %vm970_vm11, %v1993_v47, %v969_v29  ;;  %v907_v47 = vld [vmem:[#allocation6 + $0x50] sm:$0xf]  ;;  %v1026_v29 = vld [vmem:[#allocation6 + $0x7c] sm:$0xf] }
 0x314   : > { %v900_v43 = vrot.slane %v899_v1, 2  ;;  %v989_v52 = vrot.slane %v1998_v0, 2  ;;  %v855_v54 = vmul.f32 %v853_v41, %v848_v38  ;;  %vm1020_vm5 = vcmask 924672  }
 0x315   : > { %v796_v31 = vadd.f32 %v795_v20, %v776_v9  ;;  %vm1060_vm2 = vcmask 891904   ;;  %vm1080_vm11 = vcmask 801792  }
 0x316   : > { %v902_v60 = vsel %vm901_vm6, %v899_v1, %v900_v43  ;;  %v866_v1 = vadd.f32 %v865_v57, %v846_v63  ;;  %v835_v43 = vmul.f32 %v833_v27, %v828_v25  ;;  %v930_v57 = vrot.slane %v1989_v39, 2  ;;  %v986_v63 = vld [vmem:[#allocation6 + $0x6c] sm:$0xf] }
 0x317   : > { %v2005_v23 = vpop.permute.xlu0 %1007  ;;  %v919_v24 = vpop.permute.xlu1 %918  ;;  %v904_v10 = vmul.f32 %v902_v60, %v897_v59  ;;  %v816_v53 = vadd.f32 %v815_v32, %v796_v31  ;;  %v973_v59 = vmul.f32 %v971_v28, %v958_v37  ;;  %v976_v32 = vld [vmem:[#allocation6 + $0x68] sm:$0xf]  ;;  %vm1070_vm6 = vcmask 809984   ;;  %v1046_v37 = vld [vmem:[#allocation6 + $0x84] sm:$0xf] }
 0x318   : > { %v920_v55 = vrot.slane %v919_v24, 2  ;;  %v885_v18 = vadd.f32 %v884_v16, %v866_v1  ;;  %v991_v16 = vsel %vm990_vm13, %v1998_v0, %v989_v52  ;;  %v1009_v5 = vrot.slane %v2005_v23, 2 }
 0x319   : > { %v836_v58 = vadd.f32 %v835_v43, %v816_v53  ;;  %v914_v1 = vmul.f32 %v912_v62, %v907_v47  ;;  %v996_v43 = vld [vmem:[#allocation6 + $0x70] sm:$0xf]  ;;  %v1016_v53 = vld [vmem:[#allocation6 + $0x78] sm:$0xf]  ;;  %v1066_v62 = vld [vmem:[#allocation6 + $0x8c] sm:$0xf] }
 0x31a   : > { %v922_v8 = vsel %vm921_vm7, %v919_v24, %v920_v55  ;;  %v905_v34 = vadd.f32 %v904_v10, %v885_v18  ;;  %v993_v10 = vmul.f32 %v991_v16, %v986_v63  ;;  %v1011_v36 = vsel %vm1010_vm14, %v2005_v23, %v1009_v5  ;;  %v1056_v16 = vld [vmem:[#allocation6 + $0x88] sm:$0xf] }
 0x31b   : > { %v2012_v14 = vpop.permute.xlu0 %1027  ;;  %v938_v49 = vpop.permute.xlu1 %937  ;;  %v924_v21 = vmul.f32 %v922_v8, %v917_v7  ;;  %v856_v48 = vadd.f32 %v855_v54, %v836_v58  ;;  %v927_v7 = vld [vmem:[#allocation6 + $0x58] sm:$0xf]  ;;  %v931_v8 = vsel %vm489_vm3, %v1989_v39, %v930_v57  ;;  %v1013_v27 = vmul.f32 %v1011_v36, %v1006_v12 }
 0x31c   : > { %v939_v61 = vrot.slane %v938_v49, 2  ;;  %v1029_v0 = vrot.slane %v2012_v14, 2  ;;  %vm1000_vm3 = vcmask 941056   ;;  %vm1090_vm7 = vcmask 793600  }
 0x31d   : > { %v925_v44 = vadd.f32 %v924_v21, %v905_v34  ;;  %v945_v21 = vld [vmem:[#allocation6 + $0x60] sm:$0xf]  ;;  %vm1120_vm13 = vcmask 769024   ;;  %vm1140_vm14 = vcmask 678912  }
 0x31e   : > { %v940_v19 = vsel %vm390_vm1, %v938_v49, %v939_v61  ;;  %vm891_vm1 = vcmask 121856   ;;  %v873_v49 = vsel %vm872_vm10, %v1983_v30, %v871_v22  ;;  %v1031_v23 = vsel %vm1030_vm15, %v2012_v14, %v1029_v0 }
 0x31f   : > { %v2019_v3 = vpop.permute.xlu0 %1047  ;;  %v2021_v4 = vpop.permute.xlu1 %977  ;;  %v942_v35 = vmul.f32 %v940_v19, %v936_v17  ;;  %v892_v40 = vsel %vm891_vm1, %v1985_v33, %v890_v42  ;;  %v875_v30 = vmul.f32 %v873_v49, %v868_v46  ;;  %v933_v19 = vmul.f32 %v931_v8, %v927_v7 }
 0x320   : > { %v894_v33 = vmul.f32 %v892_v40, %v887_v56  ;;  %v979_v13 = vrot.slane %v2021_v4, 2  ;;  %v1049_v31 = vrot.slane %v2019_v3, 2  ;;  %v955_v42 = vmul.f32 %v1961_v2, %v945_v21  ;;  %v1036_v40 = vld [vmem:[#allocation6 + $0x80] sm:$0xf] }
 0x321   : > { %v943_v55 = vadd.f32 %v942_v35, %v925_v44  ;;  %v876_v9 = vadd.f32 %v875_v30, %v856_v48  ;;  %v1033_v14 = vmul.f32 %v1031_v23, %v1026_v29  ;;  %vm1130_vm10 = vcmask 760832  }
 0x322   : > { %v981_v34 = vsel %vm980_vm0, %v2021_v4, %v979_v13  ;;  %v1051_v28 = vsel %vm1050_vm4, %v2019_v3, %v1049_v31  ;;  %vm1100_vm1 = vcmask 785408   ;;  %v1086_v13 = vld [vmem:[#allocation6 + $0x94] sm:$0xf]  ;;  %vm1170_vm15 = vcmask 654336   ;;  %v1116_v31 = vld [vmem:[#allocation6 + $0xa0] sm:$0xf] }
 0x323   : > { %v2029_v15 = vpop.permute.xlu0 %1067  ;;  %v2031_v24 = vpop.permute.xlu1 %997  ;;  %v974_v6 = vadd.f32 %v973_v59, %v943_v55  ;;  %v895_v17 = vadd.f32 %v894_v33, %v876_v9  ;;  %v983_v49 = vmul.f32 %v981_v34, %v976_v32  ;;  %v1053_v30 = vmul.f32 %v1051_v28, %v1046_v37  ;;  %v1076_v9 = vld [vmem:[#allocation6 + $0x90] sm:$0xf] }
 0x324   : > { %v999_v39 = vrot.slane %v2031_v24, 2  ;;  %v1069_v52 = vrot.slane %v2029_v15, 2  ;;  %vm1160_vm0 = vcmask 662528   ;;  %vm1180_vm4 = vcmask 646144  }
 0x325   : > { %v994_v20 = vadd.f32 %v993_v10, %v974_v6  ;;  %v915_v25 = vadd.f32 %v914_v1, %v895_v17 }
 0x326   : > { %v1001_v44 = vsel %vm1000_vm3, %v2031_v24, %v999_v39  ;;  %vm1190_vm3 = vcmask 637952  }
 0x327   : > { %v2040_v26 = vpop.permute.xlu0 %1087  ;;  %v2042_v45 = vpop.permute.xlu1 %1017  ;;  %v934_v38 = vadd.f32 %v933_v19, %v915_v25  ;;  %v1014_v41 = vadd.f32 %v1013_v27, %v994_v20  ;;  %v1003_v56 = vmul.f32 %v1001_v44, %v996_v43  ;;  %v1096_v19 = vld [vmem:[#allocation6 + $0x98] sm:$0xf] }
 0x328   : > { %v1019_v35 = vrot.slane %v2042_v45, 2  ;;  %v1089_v63 = vrot.slane %v2040_v26, 2 }
 0x329   : > { %v1034_v54 = vadd.f32 %v1033_v14, %v1014_v41  ;;  %v956_v55 = vadd.f32 %v955_v42, %v934_v38  ;;  %v1126_v42 = vld [vmem:[#allocation6 + $0xa4] sm:$0xf] }
 0x32a   : > { %v1021_v2 = vsel %vm1020_vm5, %v2042_v45, %v1019_v35  ;;  %v1071_v45 = vsel %vm1070_vm6, %v2029_v15, %v1069_v52  ;;  %v1146_v52 = vld [vmem:[#allocation6 + $0xac] sm:$0xf]  ;;  %vm1200_vm5 = vcmask 629760  }
 0x32b   : > { %v2053_v60 = vpop.permute.xlu0 %1107  ;;  %v2055_v61 = vpop.permute.xlu1 %1037  ;;  %v984_v3 = vadd.f32 %v983_v49, %v956_v55  ;;  %v1023_v59 = vmul.f32 %v1021_v2, %v1016_v53  ;;  %v1054_v33 = vadd.f32 %v1053_v30, %v1034_v54  ;;  %v1073_v12 = vmul.f32 %v1071_v45, %v1066_v62  ;;  %v1176_v30 = vld [vmem:[#allocation6 + $0xb8] sm:$0xf] }
 0x32c   : > { %v1039_v46 = vrot.slane %v2055_v61, 2  ;;  %v1109_v8 = vrot.slane %v2053_v60, 2 }
 0x32d   : > { %v1004_v6 = vadd.f32 %v1003_v56, %v984_v3  ;;  %v1074_v21 = vadd.f32 %v1073_v12, %v1054_v33 }
 0x32e   : > { %v1041_v57 = vsel %vm1040_vm8, %v2055_v61, %v1039_v46  ;;  %v1111_v29 = vsel %vm1110_vm9, %v2053_v60, %v1109_v8  ;;  %v1136_v46 = vld [vmem:[#allocation6 + $0xa8] sm:$0xf]  ;;  %v1196_v8 = vld [vmem:[#allocation6 + $0xc0] sm:$0xf] }
 0x32f   : > { %v2063_v11 = vpop.permute.xlu1 %1057  ;;  %v2068_v18 = vpop.permute.xlu0 %1127  ;;  %v1043_v61 = vmul.f32 %v1041_v57, %v1036_v40  ;;  %v1024_v15 = vadd.f32 %v1023_v59, %v1004_v6  ;;  %v1166_v57 = vld [vmem:[#allocation6 + $0xb4] sm:$0xf] }
 0x330   : > { %v1059_v24 = vrot.slane %v2063_v11, 2  ;;  %v1129_v17 = vrot.slane %v2068_v18, 2 }
 0x331   : > { %v1044_v25 = vadd.f32 %v1043_v61, %v1024_v15 }
 0x332   : > { %v1061_v5 = vsel %vm1060_vm2, %v2063_v11, %v1059_v24  ;;  %v1091_v11 = vsel %vm1090_vm7, %v2040_v26, %v1089_v63  ;;  %v1131_v43 = vsel %vm1130_vm10, %v2068_v18, %v1129_v17  ;;  %v1156_v24 = vld [vmem:[#allocation6 + $0xb0] sm:$0xf]  ;;  %v1219_v17 = vsub.s32 0, %v1949_v50 }
 0x333   : > { %v1078_v22 = vpop.permute.xlu1 %1077  ;;  %v2078_v51 = vpop.permute.xlu0 %1147  ;;  %v1063_v36 = vmul.f32 %v1061_v5, %v1056_v16  ;;  %v1093_v26 = vmul.f32 %v1091_v11, %v1086_v13  ;;  %v1133_v55 = vmul.f32 %v1131_v43, %v1126_v42  ;;  %v1542_v43 = vld [vmem:[%s1904_s24 + $0x18] sm:$0xff] }
 0x334   : > { %v1079_v58 = vrot.slane %v1078_v22, 2  ;;  %v1149_v23 = vrot.slane %v2078_v51, 2 }
 0x335   : > { %v1064_v34 = vadd.f32 %v1063_v36, %v1044_v25  ;;  %v1094_v49 = vadd.f32 %v1093_v26, %v1074_v21 }
 0x336   : > { %v1081_v1 = vsel %vm1080_vm11, %v1078_v22, %v1079_v58  ;;  %v1106_v22 = vld [vmem:[#allocation6 + $0x9c] sm:$0xf]  ;;  %v1151_v53 = vsel %vm1150_vm12, %v2078_v51, %v1149_v23 }
 0x337   : > { %v1098_v4 = vpop.permute.xlu1 %1097  ;;  %v1168_v7 = vpop.permute.xlu0 %1167  ;;  %v1083_v27 = vmul.f32 %v1081_v1, %v1076_v9  ;;  %v1186_v51 = vld [vmem:[#allocation6 + $0xbc] sm:$0xf] }
 0x338   : > { %v1099_v48 = vrot.slane %v1098_v4, 2  ;;  %v1169_v44 = vrot.slane %v1168_v7, 2 }
 0x339   : > { %v1084_v37 = vadd.f32 %v1083_v27, %v1064_v34 }
 0x33a   : > { %v1101_v20 = vsel %vm1100_vm1, %v1098_v4, %v1099_v48  ;;  %v1113_v4 = vmul.f32 %v1111_v29, %v1106_v22  ;;  %v1171_v58 = vsel %vm1170_vm15, %v1168_v7, %v1169_v44 }
 0x33b   : > { %v1118_v47 = vpop.permute.xlu1 %1117  ;;  %v1103_v35 = vmul.f32 %v1101_v20, %v1096_v19  ;;  %v1188_v38 = vpop.permute.xlu0 %1187  ;;  %v1173_v48 = vmul.f32 %v1171_v58, %v1166_v57 }
 0x33c   : > { %v1119_v10 = vrot.slane %v1118_v47, 2  ;;  %v1189_v2 = vrot.slane %v1188_v38, 2  ;;  %v1114_v59 = vadd.f32 %v1113_v4, %v1094_v49  ;;  %v1543_v4 = vld [vmem:[%s1904_s24] sm:$0xff] }
 0x33d   : > { %v1104_v18 = vadd.f32 %v1103_v35, %v1084_v37 }
 0x33e   : > { %v1121_v32 = vsel %vm1120_vm13, %v1118_v47, %v1119_v10  ;;  %v1153_v47 = vmul.f32 %v1151_v53, %v1146_v52  ;;  %v1191_v63 = vsel %vm1190_vm3, %v1188_v38, %v1189_v2  ;;  %v1134_v5 = vadd.f32 %v1133_v55, %v1114_v59 }
 0x33f   : > { %v1138_v0 = vpop.permute.xlu1 %1137  ;;  %v1123_v28 = vmul.f32 %v1121_v32, %v1116_v31  ;;  %v1193_v7 = vmul.f32 %v1191_v63, %v1186_v51  ;;  %v1249_v32 = vsub.s32 2, %v1949_v50 }
 0x340   : > { %v1139_v39 = vrot.slane %v1138_v0, 2  ;;  %v1154_v1 = vadd.f32 %v1153_v47, %v1134_v5 }
 0x341   : > { %v1124_v62 = vadd.f32 %v1123_v28, %v1104_v18  ;;  %v1544_v28 = vld [vmem:[%s1904_s24 + $0x8] sm:$0xff] }
 0x342   : > { %v1141_v60 = vsel %vm1140_vm14, %v1138_v0, %v1139_v39  ;;  %v1174_v15 = vadd.f32 %v1173_v48, %v1154_v1 }
 0x343   : > { %v1158_v41 = vpop.permute.xlu1 %1157  ;;  %v1143_v56 = vmul.f32 %v1141_v60, %v1136_v46 }
 0x344   : > { %v1159_v14 = vrot.slane %v1158_v41, 2  ;;  %v1194_v13 = vadd.f32 %v1193_v7, %v1174_v15 }
 0x345   : > { %v1144_v33 = vadd.f32 %v1143_v56, %v1124_v62 }
 0x346   : > { %v1161_v54 = vsel %vm1160_vm0, %v1158_v41, %v1159_v14  ;;  %v1541_v41 = vld [vmem:[%s1904_s24 + $0x10] sm:$0xff]  ;;  %s1727_s24 = smov [#allocation8]  }
 0x347   : > { %v1178_v40 = vpop.permute.xlu1 %1177  ;;  %v1163_v45 = vmul.f32 %v1161_v54, %v1156_v24  ;;  %s1603_s20 = sshll.u32 %s1727_s24, 4  ;;  %s1604_s20 = int_to_ptr.vmem [resolvable:$false] %s1603_s20 }
 0x348   : > { %v1179_v3 = vrot.slane %v1178_v40, 2  ;;  %v1215_v20 = vpop.permute.xlu0 %1214  ;;  %s1605_s17 = scalar_lea.vmem %s1604_s20, 1024  ;;  %p1606_p10 = scmp.lt.s32.totalorder %s2116_s19, %s1604_s20 }
 0x349   : > { %v1164_v10 = vadd.f32 %v1163_v45, %v1144_v33  ;;  %v1220_v21 = vrot.slane %v1215_v20, %v1219_v17  ;;  %p1607_p2 = scmp.lt.s32.totalorder %s1605_s17, %s1599_s14 }
 0x34a   : > { %v1181_v16 = vsel %vm1180_vm4, %v1178_v40, %v1179_v3 }
 0x34b   : > { %v1183_v6 = vmul.f32 %v1181_v16, %v1176_v30  ;;  %v1198_v61 = vpop.permute.xlu1 %1197  ;;  %p1608_p13 = por %p1607_p2, %p1606_p10 }
 0x34c   : > { %v1199_v9 = vrot.slane %v1198_v61, 2 }
 0x34d   : > { %v1184_v36 = vadd.f32 %v1183_v6, %v1164_v10  ;;  %p1609_p0 = pnand %p1608_p13, %p1602_p12 }
 0x34e   : > { %v1201_v12 = vsel %vm1200_vm5, %v1198_v61, %v1199_v9 }
 0x34f   : > { %v1203_v0 = vmul.f32 %v1201_v12, %v1196_v8 }
 0x351   : > { %v1204_v11 = vadd.f32 %v1203_v0, %v1184_v36 }
 0x353   : > { %v1205_v19 = vadd.f32 %v1204_v11, %v1194_v13 }
 0x355   : > { %v1384_v39 = vrot.slane %v1205_v19, 9 }
 0x357   : > { %v1210_v25 = vadd.f32 %v1384_v39, %v1205_v19 }
 0x359   : > { %v1221_v27 = vadd.f32 %v1220_v21, %v1210_v25 }
 0x35b   : > { %v1222_v22 = vsub.f32 0.0, %v1221_v27 }
 0x35d   : > { %v1223_v29 = vmul.f32 1.442695, %v1222_v22 }
 0x35f   : > { %1537 = vpow2.f32 %v1223_v29 }
 0x36c   : > { %v1538_v23 = vpop.eup %1537 }
 0x36d   : > { %v1225_v31 = vadd.f32 1.0, %v1538_v23 }
 0x36f   : > { %1539 = vrcp.f32 %v1225_v31 }
 0x37c   : > { %v1540_v26 = vpop.eup %1539 }
 0x37d   : > { %v1246_v34 = vrot.slane %v1540_v26, %v1219_v17  ;;  %v1250_v35 = vrot.slane %v1540_v26, %v1249_v32 }
 0x37e   : > { %v1236_v38 = vpop.permute.xlu0 %1235 }
 0x37f   : > { %v1240_v42 = vmul.f32 %v1541_v41, %v1236_v38  ;;  %v1241_v44 = vmul.f32 %v1542_v43, %v1236_v38  ;;  %v1256_v46 = vrot.slane %v1246_v34, %v1219_v17  ;;  %v1260_v60 = vrot.slane %v1250_v35, %v1219_v17 }
 0x381   : > { %v1263_v14 = vmul.f32 %v1256_v46, %v1240_v42  ;;  %v1264_v49 = vmul.f32 %v1260_v60, %v1241_v44 }
 0x382   : > { %v1231_v50 = vpop.permute.xlu1 %1230 }
 0x383   : > { %1267 = vst [vmem:[%s368_s10 + $0x10] sm:$0xff] %v1263_v14  ;;  %1268 = vst [vmem:[%s368_s10 + $0x18] sm:$0xff] %v1264_v49  ;;  %v1238_v37 = vmul.f32 %v1543_v4, %v1231_v50  ;;  %v1239_v52 = vmul.f32 %v1544_v28, %v1231_v50 }
 0x385   : > { %v1261_v53 = vmul.f32 %v1256_v46, %v1238_v37  ;;  %v1262_v2 = vmul.f32 %v1260_v60, %v1239_v52 }
 0x387   : > { %1265 = vst [vmem:[%s368_s10] sm:$0xff] %v1261_v53  ;;  %1266 = vst [vmem:[%s368_s10 + $0x8] sm:$0xff] %v1262_v2 }
 0x388   : > { %1612 = shalt.err (!%p1609_p0)
}
 0x389   : > { %s1613_s22 = scalar_lea.hbm %s2121_s27, 512  ;;  %s1617_s10 = scalar_lea.hbm %s2174_s9, 1024 }
 0x38a   : > { %p1614_p5 = scmp.ne.s32.totalorder %s2121_s27, %s1613_s22  ;;  %p1618_p4 = scmp.lt.s32.totalorder %s2121_s27, %s2174_s9 }
 0x38b   : > { %p1619_p6 = scmp.lt.s32.totalorder %s1617_s10, %s1613_s22 }
 0x38c   : > { %p1615_p9 = pnand %p1614_p5, %p2192_p11 }
 0x38d   : > { %p1620_p8 = por %p1619_p6, %p1618_p4 }
 0x38e   : > { %p1616_p1 = pneg %p1615_p9 }
 0x390   : > { %p1621_p3 = pnand %p1620_p8, %p1616_p1 }
 0x392   : > { %1624 = shalt.err (!%p1621_p3)
}
 0x393   : > { %s1728_s26 = smov 256  }
 0x394   : > { %1419 = dma.vmem_to_hbm [thread:$0]  (%p2192_p11), %s2116_s19, 512, %s2121_s27, %s1270_s8, %s1728_s26, %s1728_s26, %s1700_s15  }
 0x395 PF: > { %s1299_s14 = sand.u32 1, %s1655_s6   ;;  %p2193_p7 = scmp.ne.s32.totalorder %s2181_s16, 0 }
 0x396   : > { %p2194_p12 = scmp.ge.s32.totalorder %s1667_s13, 2  ;;  %s1300_s24 = scalar_lea.sflag [#allocation5], %s1299_s14 }
 0x398   : > { %p1430_p10 = pnand %p2194_p12, %p2193_p7 }
 0x39a   : > { %p1431_p2 = pneg %p1430_p10 }
 0x39c   : > { %1650 = dma.done.wait (%p1431_p2), %s1300_s24, 512  }
 0x39d   : > { %1652 = vsyncadd (%p1431_p2), %s1300_s24, 4294966784  ;;  %p25_p13 = scmp.ge.s32.totalorder %s1836_s21, 4   ;;  %s2195_s6 = smov %s1659_s11 }
 0x39e   : > { %s2196_s11 = smov %s1663_s12  ;;  %s2197_s12 = smov %s1853_s29 }
 0x39f   : > { %s2198_s13 = smov %s1836_s21  ;;  %27 = sbr.rel (!%p25_p13) target bundleno = 9 (0x9), region = 153 }
 0x3a4   :  { %1305 = vsyncpa [#allocation4], 1 }
 0x3a5   :  { %1307 = vsyncpa [#allocation4 + $0x1], 1 }
 0x3a6   :  { %1308 = vsyncpa [#allocation7], 1 }
 0x3a7   :  { %1309 = vsyncpa [#allocation5], 1 }
 0x3a8   :  { %1311 = vsyncpa [#allocation5 + $0x1], 1 }

</bundles_post_ra>
